<compile_context>
chip_gen: v5e
topology: v5e:2x2
jax: 0.10.0
libtpu: 0.0.40
codegen_flags: <defaults>
</compile_context>

<pallas_src>
import functools

import jax
import jax.numpy as jnp
from jax.experimental import pallas as pl
from jax.experimental.pallas import tpu as pltpu

EPS = 1e-5
LANES = 128


def _round_up(x, m):
    return (x + m - 1) // m * m


def _pick_tile_h(h, w, cinp, cpad, hp, wp, k_elems,
                 target_rows=512, vmem_budget=32 * 1024 * 1024):
    """Largest row tile (divisor of h, rows % 8 == 0) whose per-step working
    set fits the VMEM budget, stopping once rows = tile_h*w >= target_rows."""
    best = 1
    for th in range(1, h + 1):
        if h % th:
            continue
        rows = th * w
        if rows % 8 and th != h:
            continue
        need = 4 * (2 * hp * wp * cinp          # resident padded image (x2 buf)
                    + 2 * k_elems * cinp * cpad  # packed weights (x2 buf)
                    + 2 * rows * cpad            # output tile (x2 buf)
                    + 2 * rows * cpad            # f32 accumulator + temporaries
                    + rows * cinp                # input slab value
                    + 8 * cpad)                  # bias / scale / shift / stats
        if need > vmem_budget:
            break
        best = th
        if rows >= target_rows:
            break
    return best


def _conv_tile(x_ref, w_ref, b_ref, row_start, *, tile_h, w_out, kh_size,
               kw_size):
    """f32 (tile_h*w_out, CPAD) conv for output rows [row_start, row_start+tile_h).

    x_ref : (1, H+2, W+2, Cinp)  whole padded image (resident across row tiles)
    w_ref : (KH*KW, Cinp, CPAD)  per-tap weights, channel-padded
    b_ref : (1, CPAD)            conv bias
    """
    cinp = x_ref.shape[-1]
    rows = tile_h * w_out
    # tile_h + KH - 1 padded input rows (1-row halo on each side for KH=3).
    slab = x_ref[0, pl.ds(row_start, tile_h + kh_size - 1), :, :]
    acc = None
    for kh in range(kh_size):
        row_slab = slab[kh:kh + tile_h]                     # (th, W+2, Cinp)
        for kw in range(kw_size):
            win = row_slab[:, kw:kw + w_out, :]             # (th, W, Cinp)
            lhs = win.reshape(rows, cinp)                   # Cinp stays in lanes
            part = jax.lax.dot_general(
                lhs, w_ref[kh * kw_size + kw],
                dimension_numbers=(((1,), (0,)), ((), ())),
                preferred_element_type=jnp.float32)         # (rows, CPAD), MXU
            acc = part if acc is None else acc + part
    return acc + b_ref[...]


def _conv_stats_kernel(x_ref, w_ref, b_ref, stats_ref, *, tile_h, w_out,
                       kh_size, kw_size):
    """Pass 1: conv recompute + per-tile per-channel [sum, sum_of_squares]."""
    r0 = pl.multiple_of(pl.program_id(1) * tile_h, tile_h)
    acc = _conv_tile(x_ref, w_ref, b_ref, r0, tile_h=tile_h, w_out=w_out,
                     kh_size=kh_size, kw_size=kw_size)      # (rows, CPAD) f32
    rows = tile_h * w_out
    # Ones-matmul reduction (MXU has slack at small Cin; avoids a serial XLU
    # cross-sublane reduce), merged into a single lane-dense (2, CPAD) store.
    ones_r = jnp.ones((8, rows), jnp.float32)
    dn = (((1,), (0,)), ((), ()))
    psum = jax.lax.dot_general(ones_r, acc, dn,
                               preferred_element_type=jnp.float32)
    psq = jax.lax.dot_general(ones_r, acc * acc, dn,
                              preferred_element_type=jnp.float32)
    stats_ref[0, 0] = jnp.concatenate([psum[0:1], psq[0:1]], axis=0)


def _conv_bn_relu_kernel(x_ref, w_ref, b_ref, scale_ref, shift_ref, o_ref, *,
                         tile_h, w_out, kh_size, kw_size):
    """Pass 2: conv recompute fused with per-channel scale/shift + ReLU."""
    r0 = pl.multiple_of(pl.program_id(1) * tile_h, tile_h)
    acc = _conv_tile(x_ref, w_ref, b_ref, r0, tile_h=tile_h, w_out=w_out,
                     kh_size=kh_size, kw_size=kw_size)      # (rows, CPAD) f32
    y = jnp.maximum(acc * scale_ref[...] + shift_ref[...], 0.0)
    o_ref[0] = y.reshape(tile_h, w_out, y.shape[-1])


def conv_bn_relu(x_nchw, w_hwio, bias, gamma, beta):
    """Conv2d(3x3, s=1, p=1, bias) + training-mode BatchNorm2d + ReLU (NCHW io)."""
    N, Cin, H, W = x_nchw.shape
    KH, KW, _, Cout = w_hwio.shape
    CPAD = _round_up(Cout, LANES)
    CINP = _round_up(Cin, 8)
    HP, WP = H + KH - 1, W + KW - 1

    tile_h = _pick_tile_h(H, W, CINP, CPAD, HP, WP, KH * KW)
    G = H // tile_h

    # ---- glue: layout, 1-pixel zero pad, parameter packing (tiny) ----
    x_nhwc = jnp.transpose(x_nchw, (0, 2, 3, 1)).astype(jnp.float32)
    x_pad = jnp.pad(x_nhwc, ((0, 0), (1, 1), (1, 1), (0, CINP - Cin)))
    w_packed = jnp.pad(
        w_hwio.astype(jnp.float32).reshape(KH * KW, Cin, Cout),
        ((0, 0), (0, CINP - Cin), (0, CPAD - Cout)))
    pad_c = ((0, 0), (0, CPAD - Cout))
    b_p = jnp.pad(bias.astype(jnp.float32).reshape(1, Cout), pad_c)
    g_p = jnp.pad(gamma.astype(jnp.float32).reshape(1, Cout), pad_c)
    bt_p = jnp.pad(beta.astype(jnp.float32).reshape(1, Cout), pad_c)

    x_spec = pl.BlockSpec((1, HP, WP, CINP), lambda n, i: (n, 0, 0, 0))
    w_spec = pl.BlockSpec((KH * KW, CINP, CPAD), lambda n, i: (0, 0, 0))
    vec_spec = pl.BlockSpec((1, CPAD), lambda n, i: (0, 0))
    cparams = pltpu.CompilerParams(
        dimension_semantics=("parallel", "parallel"),
        vmem_limit_bytes=48 * 1024 * 1024)

    conv_flops = 2 * N * H * W * KH * KW * CINP * CPAD

    # ---------------- pass 1: stats only (no conv intermediate) ----------------
    stats = pl.pallas_call(
        functools.partial(_conv_stats_kernel, tile_h=tile_h, w_out=W,
                          kh_size=KH, kw_size=KW),
        grid=(N, G),
        in_specs=[x_spec, w_spec, vec_spec],
        out_specs=pl.BlockSpec((1, 1, 2, CPAD), lambda n, i: (n, i, 0, 0)),
        out_shape=jax.ShapeDtypeStruct((N, G, 2, CPAD), jnp.float32),
        compiler_params=cparams,
        cost_estimate=pl.CostEstimate(
            flops=int(conv_flops + 4 * N * H * W * CPAD),
            transcendentals=0,
            bytes_accessed=int(4 * (x_pad.size + w_packed.size + b_p.size
                                    + N * G * 2 * CPAD))),
    )(x_pad, w_packed, b_p)

    # ---- BN fold hoisted out of the per-tile kernel (stats is tiny) ----
    count = float(N * H * W)
    total = jnp.sum(stats, axis=(0, 1))                  # (2, CPAD)
    mean = total[0] / count
    var = total[1] / count - mean * mean                 # biased batch variance
    inv_std = jax.lax.rsqrt(var + EPS)
    scale_vec = g_p[0] * inv_std
    shift_vec = bt_p[0] - mean * scale_vec
    scale = scale_vec.reshape(1, CPAD)
    shift = shift_vec.reshape(1, CPAD)

    # ------------- pass 2: conv recomputed + fused FMA + ReLU -------------
    out_pad = pl.pallas_call(
        functools.partial(_conv_bn_relu_kernel, tile_h=tile_h, w_out=W,
                          kh_size=KH, kw_size=KW),
        grid=(N, G),
        in_specs=[x_spec, w_spec, vec_spec, vec_spec, vec_spec],
        out_specs=pl.BlockSpec((1, tile_h, W, CPAD), lambda n, i: (n, i, 0, 0)),
        out_shape=jax.ShapeDtypeStruct((N, H, W, CPAD), jnp.float32),
        compiler_params=cparams,
        cost_estimate=pl.CostEstimate(
            flops=int(conv_flops + 3 * N * H * W * CPAD),
            transcendentals=0,
            bytes_accessed=int(4 * (x_pad.size + w_packed.size + 3 * CPAD
                                    + N * H * W * CPAD))),
    )(x_pad, w_packed, b_p, scale, shift)

    # glue: drop channel padding, back to NCHW.
    return jnp.transpose(out_pad[..., :Cout], (0, 3, 1, 2))


def _reference(x_nchw, w_hwio, bias, gamma, beta):
    """Pure-JAX reference: conv + training-mode BN + ReLU (NCHW in/out)."""
    x_nhwc = jnp.transpose(x_nchw, (0, 2, 3, 1)).astype(jnp.float32)
    y = jax.lax.conv_general_dilated(
        x_nhwc, w_hwio.astype(jnp.float32),
        window_strides=(1, 1), padding=((1, 1), (1, 1)),
        dimension_numbers=("NHWC", "HWIO", "NHWC"),
    ) + bias.reshape(1, 1, 1, -1)
    mean = jnp.mean(y, axis=(0, 1, 2), keepdims=True)
    var = jnp.mean((y - mean) ** 2, axis=(0, 1, 2), keepdims=True)
    y = (y - mean) * jax.lax.rsqrt(var + EPS) * gamma.reshape(1, 1, 1, -1) \
        + beta.reshape(1, 1, 1, -1)
    return jnp.transpose(jnp.maximum(y, 0.0), (0, 3, 1, 2))


if __name__ == "__main__":
    # Small shapes consistent with the module's forward (NCHW input).
    N, Cin, H, W = 2, 4, 16, 16
    Cout, KH, KW = 8, 3, 3

    key = jax.random.PRNGKey(0)
    kx, kw_, kb, kg, kbe = jax.random.split(key, 5)
    x = jax.random.normal(kx, (N, Cin, H, W), dtype=jnp.float32)
    w = jax.random.normal(kw_, (KH, KW, Cin, Cout), dtype=jnp.float32) * 0.1
    b = jax.random.normal(kb, (Cout,), dtype=jnp.float32) * 0.1
    gamma = 1.0 + 0.1 * jax.random.normal(kg, (Cout,), dtype=jnp.float32)
    beta = 0.1 * jax.random.normal(kbe, (Cout,), dtype=jnp.float32)

    out = jax.block_until_ready(jax.jit(conv_bn_relu)(x, w, b, gamma, beta))
    ref = _reference(x, w, b, gamma, beta)

    assert out.shape == (N, Cout, H, W)
    assert jnp.allclose(out, ref, atol=1e-4, rtol=1e-4), "mismatch vs reference"
    print("KERNEL_OK")
</pallas_src>

<mosaic_0001>
module attributes {stable_mosaic.version = 11 : i64} {
  func.func @_conv_bn_relu_kernel(%arg0: i32, %arg1: i32, %arg2: memref<1x18x18x8xf32, #tpu.memory_space<vmem>>, %arg3: memref<9x8x128xf32, #tpu.memory_space<vmem>>, %arg4: memref<1x128xf32, #tpu.memory_space<vmem>>, %arg5: memref<1x128xf32, #tpu.memory_space<vmem>>, %arg6: memref<1x128xf32, #tpu.memory_space<vmem>>, %arg7: memref<1x16x16x128xf32, #tpu.memory_space<vmem>>) attributes {dimension_semantics = [#tpu.dimension_semantics<parallel>, #tpu.dimension_semantics<parallel>], iteration_bounds = array<i64: 2, 1>, scalar_prefetch = 0 : i64, scratch_operands = 0 : i64, tpu.core_type = #tpu.core_type<tc>, window_params = [{transform_indices = @transform_0, window_bounds = array<i64: 1, 18, 18, 8>}, {pipeline_mode = #tpu.pipeline_mode<synchronous>, transform_indices = @transform_1, window_bounds = array<i64: 9, 8, 128>}, {pipeline_mode = #tpu.pipeline_mode<synchronous>, transform_indices = @transform_2, window_bounds = array<i64: 1, 128>}, {pipeline_mode = #tpu.pipeline_mode<synchronous>, transform_indices = @transform_3, window_bounds = array<i64: 1, 128>}, {pipeline_mode = #tpu.pipeline_mode<synchronous>, transform_indices = @transform_4, window_bounds = array<i64: 1, 128>}, {transform_indices = @transform_5, window_bounds = array<i64: 1, 16, 16, 128>}]} {
    %c16_i32 = arith.constant 16 : i32
    %0 = arith.muli %arg1, %c16_i32 : i32
    %1 = tpu.assume_multiple %0, 16 : i32
    %c0 = arith.constant 0 : index
    %2 = arith.index_cast %1 : i32 to index
    %c0_0 = arith.constant 0 : index
    %c0_1 = arith.constant 0 : index
    %3 = vector.load %arg2[%c0, %2, %c0_0, %c0_1] : memref<1x18x18x8xf32, #tpu.memory_space<vmem>>, vector<1x18x18x8xf32>
    %4 = vector.shape_cast %3 : vector<1x18x18x8xf32> to vector<18x18x8xf32>
    %5 = vector.extract_strided_slice %4 {offsets = [0, 0, 0], sizes = [16, 18, 8], strides = [1, 1, 1]} : vector<18x18x8xf32> to vector<16x18x8xf32>
    %6 = vector.extract_strided_slice %5 {offsets = [0, 0, 0], sizes = [16, 16, 8], strides = [1, 1, 1]} : vector<16x18x8xf32> to vector<16x16x8xf32>
    %7 = vector.shape_cast %6 : vector<16x16x8xf32> to vector<256x8xf32>
    %c0_2 = arith.constant 0 : index
    %c0_3 = arith.constant 0 : index
    %c0_4 = arith.constant 0 : index
    %8 = vector.load %arg3[%c0_2, %c0_3, %c0_4] : memref<9x8x128xf32, #tpu.memory_space<vmem>>, vector<1x8x128xf32>
    %9 = vector.shape_cast %8 : vector<1x8x128xf32> to vector<8x128xf32>
    %cst = arith.constant dense<0.000000e+00> : vector<256x128xf32>
    %10 = tpu.matmul %7, %9, %cst {dimension_numbers = #tpu.dot_dimension_numbers<[1], [0], [0], [1], [0, 0, 1, 1], [], []>} : vector<256x8xf32>, vector<8x128xf32>, vector<256x128xf32> -> vector<256x128xf32>
    %11 = vector.extract_strided_slice %5 {offsets = [0, 1, 0], sizes = [16, 16, 8], strides = [1, 1, 1]} : vector<16x18x8xf32> to vector<16x16x8xf32>
    %12 = vector.shape_cast %11 : vector<16x16x8xf32> to vector<256x8xf32>
    %c1 = arith.constant 1 : index
    %c0_5 = arith.constant 0 : index
    %c0_6 = arith.constant 0 : index
    %13 = vector.load %arg3[%c1, %c0_5, %c0_6] : memref<9x8x128xf32, #tpu.memory_space<vmem>>, vector<1x8x128xf32>
    %14 = vector.shape_cast %13 : vector<1x8x128xf32> to vector<8x128xf32>
    %cst_7 = arith.constant dense<0.000000e+00> : vector<256x128xf32>
    %15 = tpu.matmul %12, %14, %cst_7 {dimension_numbers = #tpu.dot_dimension_numbers<[1], [0], [0], [1], [0, 0, 1, 1], [], []>} : vector<256x8xf32>, vector<8x128xf32>, vector<256x128xf32> -> vector<256x128xf32>
    %16 = arith.addf %10, %15 : vector<256x128xf32>
    %17 = vector.extract_strided_slice %5 {offsets = [0, 2, 0], sizes = [16, 16, 8], strides = [1, 1, 1]} : vector<16x18x8xf32> to vector<16x16x8xf32>
    %18 = vector.shape_cast %17 : vector<16x16x8xf32> to vector<256x8xf32>
    %c2 = arith.constant 2 : index
    %c0_8 = arith.constant 0 : index
    %c0_9 = arith.constant 0 : index
    %19 = vector.load %arg3[%c2, %c0_8, %c0_9] : memref<9x8x128xf32, #tpu.memory_space<vmem>>, vector<1x8x128xf32>
    %20 = vector.shape_cast %19 : vector<1x8x128xf32> to vector<8x128xf32>
    %cst_10 = arith.constant dense<0.000000e+00> : vector<256x128xf32>
    %21 = tpu.matmul %18, %20, %cst_10 {dimension_numbers = #tpu.dot_dimension_numbers<[1], [0], [0], [1], [0, 0, 1, 1], [], []>} : vector<256x8xf32>, vector<8x128xf32>, vector<256x128xf32> -> vector<256x128xf32>
    %22 = arith.addf %16, %21 : vector<256x128xf32>
    %23 = vector.extract_strided_slice %4 {offsets = [1, 0, 0], sizes = [16, 18, 8], strides = [1, 1, 1]} : vector<18x18x8xf32> to vector<16x18x8xf32>
    %24 = vector.extract_strided_slice %23 {offsets = [0, 0, 0], sizes = [16, 16, 8], strides = [1, 1, 1]} : vector<16x18x8xf32> to vector<16x16x8xf32>
    %25 = vector.shape_cast %24 : vector<16x16x8xf32> to vector<256x8xf32>
    %c3 = arith.constant 3 : index
    %c0_11 = arith.constant 0 : index
    %c0_12 = arith.constant 0 : index
    %26 = vector.load %arg3[%c3, %c0_11, %c0_12] : memref<9x8x128xf32, #tpu.memory_space<vmem>>, vector<1x8x128xf32>
    %27 = vector.shape_cast %26 : vector<1x8x128xf32> to vector<8x128xf32>
    %cst_13 = arith.constant dense<0.000000e+00> : vector<256x128xf32>
    %28 = tpu.matmul %25, %27, %cst_13 {dimension_numbers = #tpu.dot_dimension_numbers<[1], [0], [0], [1], [0, 0, 1, 1], [], []>} : vector<256x8xf32>, vector<8x128xf32>, vector<256x128xf32> -> vector<256x128xf32>
    %29 = arith.addf %22, %28 : vector<256x128xf32>
    %30 = vector.extract_strided_slice %23 {offsets = [0, 1, 0], sizes = [16, 16, 8], strides = [1, 1, 1]} : vector<16x18x8xf32> to vector<16x16x8xf32>
    %31 = vector.shape_cast %30 : vector<16x16x8xf32> to vector<256x8xf32>
    %c4 = arith.constant 4 : index
    %c0_14 = arith.constant 0 : index
    %c0_15 = arith.constant 0 : index
    %32 = vector.load %arg3[%c4, %c0_14, %c0_15] : memref<9x8x128xf32, #tpu.memory_space<vmem>>, vector<1x8x128xf32>
    %33 = vector.shape_cast %32 : vector<1x8x128xf32> to vector<8x128xf32>
    %cst_16 = arith.constant dense<0.000000e+00> : vector<256x128xf32>
    %34 = tpu.matmul %31, %33, %cst_16 {dimension_numbers = #tpu.dot_dimension_numbers<[1], [0], [0], [1], [0, 0, 1, 1], [], []>} : vector<256x8xf32>, vector<8x128xf32>, vector<256x128xf32> -> vector<256x128xf32>
    %35 = arith.addf %29, %34 : vector<256x128xf32>
    %36 = vector.extract_strided_slice %23 {offsets = [0, 2, 0], sizes = [16, 16, 8], strides = [1, 1, 1]} : vector<16x18x8xf32> to vector<16x16x8xf32>
    %37 = vector.shape_cast %36 : vector<16x16x8xf32> to vector<256x8xf32>
    %c5 = arith.constant 5 : index
    %c0_17 = arith.constant 0 : index
    %c0_18 = arith.constant 0 : index
    %38 = vector.load %arg3[%c5, %c0_17, %c0_18] : memref<9x8x128xf32, #tpu.memory_space<vmem>>, vector<1x8x128xf32>
    %39 = vector.shape_cast %38 : vector<1x8x128xf32> to vector<8x128xf32>
    %cst_19 = arith.constant dense<0.000000e+00> : vector<256x128xf32>
    %40 = tpu.matmul %37, %39, %cst_19 {dimension_numbers = #tpu.dot_dimension_numbers<[1], [0], [0], [1], [0, 0, 1, 1], [], []>} : vector<256x8xf32>, vector<8x128xf32>, vector<256x128xf32> -> vector<256x128xf32>
    %41 = arith.addf %35, %40 : vector<256x128xf32>
    %42 = vector.extract_strided_slice %4 {offsets = [2, 0, 0], sizes = [16, 18, 8], strides = [1, 1, 1]} : vector<18x18x8xf32> to vector<16x18x8xf32>
    %43 = vector.extract_strided_slice %42 {offsets = [0, 0, 0], sizes = [16, 16, 8], strides = [1, 1, 1]} : vector<16x18x8xf32> to vector<16x16x8xf32>
    %44 = vector.shape_cast %43 : vector<16x16x8xf32> to vector<256x8xf32>
    %c6 = arith.constant 6 : index
    %c0_20 = arith.constant 0 : index
    %c0_21 = arith.constant 0 : index
    %45 = vector.load %arg3[%c6, %c0_20, %c0_21] : memref<9x8x128xf32, #tpu.memory_space<vmem>>, vector<1x8x128xf32>
    %46 = vector.shape_cast %45 : vector<1x8x128xf32> to vector<8x128xf32>
    %cst_22 = arith.constant dense<0.000000e+00> : vector<256x128xf32>
    %47 = tpu.matmul %44, %46, %cst_22 {dimension_numbers = #tpu.dot_dimension_numbers<[1], [0], [0], [1], [0, 0, 1, 1], [], []>} : vector<256x8xf32>, vector<8x128xf32>, vector<256x128xf32> -> vector<256x128xf32>
    %48 = arith.addf %41, %47 : vector<256x128xf32>
    %49 = vector.extract_strided_slice %42 {offsets = [0, 1, 0], sizes = [16, 16, 8], strides = [1, 1, 1]} : vector<16x18x8xf32> to vector<16x16x8xf32>
    %50 = vector.shape_cast %49 : vector<16x16x8xf32> to vector<256x8xf32>
    %c7 = arith.constant 7 : index
    %c0_23 = arith.constant 0 : index
    %c0_24 = arith.constant 0 : index
    %51 = vector.load %arg3[%c7, %c0_23, %c0_24] : memref<9x8x128xf32, #tpu.memory_space<vmem>>, vector<1x8x128xf32>
    %52 = vector.shape_cast %51 : vector<1x8x128xf32> to vector<8x128xf32>
    %cst_25 = arith.constant dense<0.000000e+00> : vector<256x128xf32>
    %53 = tpu.matmul %50, %52, %cst_25 {dimension_numbers = #tpu.dot_dimension_numbers<[1], [0], [0], [1], [0, 0, 1, 1], [], []>} : vector<256x8xf32>, vector<8x128xf32>, vector<256x128xf32> -> vector<256x128xf32>
    %54 = arith.addf %48, %53 : vector<256x128xf32>
    %55 = vector.extract_strided_slice %42 {offsets = [0, 2, 0], sizes = [16, 16, 8], strides = [1, 1, 1]} : vector<16x18x8xf32> to vector<16x16x8xf32>
    %56 = vector.shape_cast %55 : vector<16x16x8xf32> to vector<256x8xf32>
    %c8 = arith.constant 8 : index
    %c0_26 = arith.constant 0 : index
    %c0_27 = arith.constant 0 : index
    %57 = vector.load %arg3[%c8, %c0_26, %c0_27] : memref<9x8x128xf32, #tpu.memory_space<vmem>>, vector<1x8x128xf32>
    %58 = vector.shape_cast %57 : vector<1x8x128xf32> to vector<8x128xf32>
    %cst_28 = arith.constant dense<0.000000e+00> : vector<256x128xf32>
    %59 = tpu.matmul %56, %58, %cst_28 {dimension_numbers = #tpu.dot_dimension_numbers<[1], [0], [0], [1], [0, 0, 1, 1], [], []>} : vector<256x8xf32>, vector<8x128xf32>, vector<256x128xf32> -> vector<256x128xf32>
    %60 = arith.addf %54, %59 : vector<256x128xf32>
    %c0_29 = arith.constant 0 : index
    %c0_30 = arith.constant 0 : index
    %61 = vector.load %arg4[%c0_29, %c0_30] : memref<1x128xf32, #tpu.memory_space<vmem>>, vector<1x128xf32>
    %62 = vector.broadcast %61 : vector<1x128xf32> to vector<256x128xf32>
    %63 = arith.addf %60, %62 : vector<256x128xf32>
    %c0_31 = arith.constant 0 : index
    %c0_32 = arith.constant 0 : index
    %64 = vector.load %arg5[%c0_31, %c0_32] : memref<1x128xf32, #tpu.memory_space<vmem>>, vector<1x128xf32>
    %65 = vector.broadcast %64 : vector<1x128xf32> to vector<256x128xf32>
    %66 = arith.mulf %63, %65 : vector<256x128xf32>
    %c0_33 = arith.constant 0 : index
    %c0_34 = arith.constant 0 : index
    %67 = vector.load %arg6[%c0_33, %c0_34] : memref<1x128xf32, #tpu.memory_space<vmem>>, vector<1x128xf32>
    %68 = vector.broadcast %67 : vector<1x128xf32> to vector<256x128xf32>
    %69 = arith.addf %66, %68 : vector<256x128xf32>
    %cst_35 = arith.constant 0.000000e+00 : f32
    %70 = vector.broadcast %cst_35 : f32 to vector<256x128xf32>
    %71 = arith.maximumf %69, %70 : vector<256x128xf32>
    %72 = vector.shape_cast %71 : vector<256x128xf32> to vector<16x16x128xf32>
    %c0_36 = arith.constant 0 : index
    %c0_37 = arith.constant 0 : index
    %c0_38 = arith.constant 0 : index
    %c0_39 = arith.constant 0 : index
    %73 = vector.load %arg7[%c0_36, %c0_37, %c0_38, %c0_39] : memref<1x16x16x128xf32, #tpu.memory_space<vmem>>, vector<1x16x16x128xf32>
    %74 = vector.shape_cast %73 : vector<1x16x16x128xf32> to vector<16x16x128xf32>
    %75 = vector.shape_cast %72 : vector<16x16x128xf32> to vector<1x16x16x128xf32>
    tpu.vector_store %arg7[%c0_36, %c0_37, %c0_38, %c0_39], %75 {strides = array<i32>} : memref<1x16x16x128xf32, #tpu.memory_space<vmem>>, vector<1x16x16x128xf32>,
    return
  }
  func.func @transform_0(%arg0: i32, %arg1: i32) -> (i32, i32, i32, i32) {
    %c0_i32 = arith.constant 0 : i32
    %c0_i32_0 = arith.constant 0 : i32
    %c0_i32_1 = arith.constant 0 : i32
    %c0_i32_2 = arith.constant 0 : i32
    return %arg0, %c0_i32, %c0_i32_0, %c0_i32_1 : i32, i32, i32, i32
  }
  func.func @transform_1(%arg0: i32, %arg1: i32) -> (i32, i32, i32) {
    %c0_i32 = arith.constant 0 : i32
    %c0_i32_0 = arith.constant 0 : i32
    %c0_i32_1 = arith.constant 0 : i32
    %c0_i32_2 = arith.constant 0 : i32
    return %c0_i32, %c0_i32_0, %c0_i32_1 : i32, i32, i32
  }
  func.func @transform_2(%arg0: i32, %arg1: i32) -> (i32, i32) {
    %c0_i32 = arith.constant 0 : i32
    %c0_i32_0 = arith.constant 0 : i32
    %c0_i32_1 = arith.constant 0 : i32
    return %c0_i32, %c0_i32_0 : i32, i32
  }
  func.func @transform_3(%arg0: i32, %arg1: i32) -> (i32, i32) {
    %c0_i32 = arith.constant 0 : i32
    %c0_i32_0 = arith.constant 0 : i32
    %c0_i32_1 = arith.constant 0 : i32
    return %c0_i32, %c0_i32_0 : i32, i32
  }
  func.func @transform_4(%arg0: i32, %arg1: i32) -> (i32, i32) {
    %c0_i32 = arith.constant 0 : i32
    %c0_i32_0 = arith.constant 0 : i32
    %c0_i32_1 = arith.constant 0 : i32
    return %c0_i32, %c0_i32_0 : i32, i32
  }
  func.func @transform_5(%arg0: i32, %arg1: i32) -> (i32, i32, i32, i32) {
    %c0_i32 = arith.constant 0 : i32
    %c0_i32_0 = arith.constant 0 : i32
    %c0_i32_1 = arith.constant 0 : i32
    return %arg0, %arg1, %c0_i32, %c0_i32_0 : i32, i32, i32, i32
  }
}

module attributes {stable_mosaic.version = 11 : i64} {
  func.func @_conv_stats_kernel(%arg0: i32, %arg1: i32, %arg2: memref<1x18x18x8xf32, #tpu.memory_space<vmem>>, %arg3: memref<9x8x128xf32, #tpu.memory_space<vmem>>, %arg4: memref<1x128xf32, #tpu.memory_space<vmem>>, %arg5: memref<1x1x2x128xf32, #tpu.memory_space<vmem>>) attributes {dimension_semantics = [#tpu.dimension_semantics<parallel>, #tpu.dimension_semantics<parallel>], iteration_bounds = array<i64: 2, 1>, scalar_prefetch = 0 : i64, scratch_operands = 0 : i64, tpu.core_type = #tpu.core_type<tc>, window_params = [{transform_indices = @transform_0, window_bounds = array<i64: 1, 18, 18, 8>}, {pipeline_mode = #tpu.pipeline_mode<synchronous>, transform_indices = @transform_1, window_bounds = array<i64: 9, 8, 128>}, {pipeline_mode = #tpu.pipeline_mode<synchronous>, transform_indices = @transform_2, window_bounds = array<i64: 1, 128>}, {transform_indices = @transform_3, window_bounds = array<i64: 1, 1, 2, 128>}]} {
    %c16_i32 = arith.constant 16 : i32
    %0 = arith.muli %arg1, %c16_i32 : i32
    %1 = tpu.assume_multiple %0, 16 : i32
    %c0 = arith.constant 0 : index
    %2 = arith.index_cast %1 : i32 to index
    %c0_0 = arith.constant 0 : index
    %c0_1 = arith.constant 0 : index
    %3 = vector.load %arg2[%c0, %2, %c0_0, %c0_1] : memref<1x18x18x8xf32, #tpu.memory_space<vmem>>, vector<1x18x18x8xf32>
    %4 = vector.shape_cast %3 : vector<1x18x18x8xf32> to vector<18x18x8xf32>
    %5 = vector.extract_strided_slice %4 {offsets = [0, 0, 0], sizes = [16, 18, 8], strides = [1, 1, 1]} : vector<18x18x8xf32> to vector<16x18x8xf32>
    %6 = vector.extract_strided_slice %5 {offsets = [0, 0, 0], sizes = [16, 16, 8], strides = [1, 1, 1]} : vector<16x18x8xf32> to vector<16x16x8xf32>
    %7 = vector.shape_cast %6 : vector<16x16x8xf32> to vector<256x8xf32>
    %c0_2 = arith.constant 0 : index
    %c0_3 = arith.constant 0 : index
    %c0_4 = arith.constant 0 : index
    %8 = vector.load %arg3[%c0_2, %c0_3, %c0_4] : memref<9x8x128xf32, #tpu.memory_space<vmem>>, vector<1x8x128xf32>
    %9 = vector.shape_cast %8 : vector<1x8x128xf32> to vector<8x128xf32>
    %cst = arith.constant dense<0.000000e+00> : vector<256x128xf32>
    %10 = tpu.matmul %7, %9, %cst {dimension_numbers = #tpu.dot_dimension_numbers<[1], [0], [0], [1], [0, 0, 1, 1], [], []>} : vector<256x8xf32>, vector<8x128xf32>, vector<256x128xf32> -> vector<256x128xf32>
    %11 = vector.extract_strided_slice %5 {offsets = [0, 1, 0], sizes = [16, 16, 8], strides = [1, 1, 1]} : vector<16x18x8xf32> to vector<16x16x8xf32>
    %12 = vector.shape_cast %11 : vector<16x16x8xf32> to vector<256x8xf32>
    %c1 = arith.constant 1 : index
    %c0_5 = arith.constant 0 : index
    %c0_6 = arith.constant 0 : index
    %13 = vector.load %arg3[%c1, %c0_5, %c0_6] : memref<9x8x128xf32, #tpu.memory_space<vmem>>, vector<1x8x128xf32>
    %14 = vector.shape_cast %13 : vector<1x8x128xf32> to vector<8x128xf32>
    %cst_7 = arith.constant dense<0.000000e+00> : vector<256x128xf32>
    %15 = tpu.matmul %12, %14, %cst_7 {dimension_numbers = #tpu.dot_dimension_numbers<[1], [0], [0], [1], [0, 0, 1, 1], [], []>} : vector<256x8xf32>, vector<8x128xf32>, vector<256x128xf32> -> vector<256x128xf32>
    %16 = arith.addf %10, %15 : vector<256x128xf32>
    %17 = vector.extract_strided_slice %5 {offsets = [0, 2, 0], sizes = [16, 16, 8], strides = [1, 1, 1]} : vector<16x18x8xf32> to vector<16x16x8xf32>
    %18 = vector.shape_cast %17 : vector<16x16x8xf32> to vector<256x8xf32>
    %c2 = arith.constant 2 : index
    %c0_8 = arith.constant 0 : index
    %c0_9 = arith.constant 0 : index
    %19 = vector.load %arg3[%c2, %c0_8, %c0_9] : memref<9x8x128xf32, #tpu.memory_space<vmem>>, vector<1x8x128xf32>
    %20 = vector.shape_cast %19 : vector<1x8x128xf32> to vector<8x128xf32>
    %cst_10 = arith.constant dense<0.000000e+00> : vector<256x128xf32>
    %21 = tpu.matmul %18, %20, %cst_10 {dimension_numbers = #tpu.dot_dimension_numbers<[1], [0], [0], [1], [0, 0, 1, 1], [], []>} : vector<256x8xf32>, vector<8x128xf32>, vector<256x128xf32> -> vector<256x128xf32>
    %22 = arith.addf %16, %21 : vector<256x128xf32>
    %23 = vector.extract_strided_slice %4 {offsets = [1, 0, 0], sizes = [16, 18, 8], strides = [1, 1, 1]} : vector<18x18x8xf32> to vector<16x18x8xf32>
    %24 = vector.extract_strided_slice %23 {offsets = [0, 0, 0], sizes = [16, 16, 8], strides = [1, 1, 1]} : vector<16x18x8xf32> to vector<16x16x8xf32>
    %25 = vector.shape_cast %24 : vector<16x16x8xf32> to vector<256x8xf32>
    %c3 = arith.constant 3 : index
    %c0_11 = arith.constant 0 : index
    %c0_12 = arith.constant 0 : index
    %26 = vector.load %arg3[%c3, %c0_11, %c0_12] : memref<9x8x128xf32, #tpu.memory_space<vmem>>, vector<1x8x128xf32>
    %27 = vector.shape_cast %26 : vector<1x8x128xf32> to vector<8x128xf32>
    %cst_13 = arith.constant dense<0.000000e+00> : vector<256x128xf32>
    %28 = tpu.matmul %25, %27, %cst_13 {dimension_numbers = #tpu.dot_dimension_numbers<[1], [0], [0], [1], [0, 0, 1, 1], [], []>} : vector<256x8xf32>, vector<8x128xf32>, vector<256x128xf32> -> vector<256x128xf32>
    %29 = arith.addf %22, %28 : vector<256x128xf32>
    %30 = vector.extract_strided_slice %23 {offsets = [0, 1, 0], sizes = [16, 16, 8], strides = [1, 1, 1]} : vector<16x18x8xf32> to vector<16x16x8xf32>
    %31 = vector.shape_cast %30 : vector<16x16x8xf32> to vector<256x8xf32>
    %c4 = arith.constant 4 : index
    %c0_14 = arith.constant 0 : index
    %c0_15 = arith.constant 0 : index
    %32 = vector.load %arg3[%c4, %c0_14, %c0_15] : memref<9x8x128xf32, #tpu.memory_space<vmem>>, vector<1x8x128xf32>
    %33 = vector.shape_cast %32 : vector<1x8x128xf32> to vector<8x128xf32>
    %cst_16 = arith.constant dense<0.000000e+00> : vector<256x128xf32>
    %34 = tpu.matmul %31, %33, %cst_16 {dimension_numbers = #tpu.dot_dimension_numbers<[1], [0], [0], [1], [0, 0, 1, 1], [], []>} : vector<256x8xf32>, vector<8x128xf32>, vector<256x128xf32> -> vector<256x128xf32>
    %35 = arith.addf %29, %34 : vector<256x128xf32>
    %36 = vector.extract_strided_slice %23 {offsets = [0, 2, 0], sizes = [16, 16, 8], strides = [1, 1, 1]} : vector<16x18x8xf32> to vector<16x16x8xf32>
    %37 = vector.shape_cast %36 : vector<16x16x8xf32> to vector<256x8xf32>
    %c5 = arith.constant 5 : index
    %c0_17 = arith.constant 0 : index
    %c0_18 = arith.constant 0 : index
    %38 = vector.load %arg3[%c5, %c0_17, %c0_18] : memref<9x8x128xf32, #tpu.memory_space<vmem>>, vector<1x8x128xf32>
    %39 = vector.shape_cast %38 : vector<1x8x128xf32> to vector<8x128xf32>
    %cst_19 = arith.constant dense<0.000000e+00> : vector<256x128xf32>
    %40 = tpu.matmul %37, %39, %cst_19 {dimension_numbers = #tpu.dot_dimension_numbers<[1], [0], [0], [1], [0, 0, 1, 1], [], []>} : vector<256x8xf32>, vector<8x128xf32>, vector<256x128xf32> -> vector<256x128xf32>
    %41 = arith.addf %35, %40 : vector<256x128xf32>
    %42 = vector.extract_strided_slice %4 {offsets = [2, 0, 0], sizes = [16, 18, 8], strides = [1, 1, 1]} : vector<18x18x8xf32> to vector<16x18x8xf32>
    %43 = vector.extract_strided_slice %42 {offsets = [0, 0, 0], sizes = [16, 16, 8], strides = [1, 1, 1]} : vector<16x18x8xf32> to vector<16x16x8xf32>
    %44 = vector.shape_cast %43 : vector<16x16x8xf32> to vector<256x8xf32>
    %c6 = arith.constant 6 : index
    %c0_20 = arith.constant 0 : index
    %c0_21 = arith.constant 0 : index
    %45 = vector.load %arg3[%c6, %c0_20, %c0_21] : memref<9x8x128xf32, #tpu.memory_space<vmem>>, vector<1x8x128xf32>
    %46 = vector.shape_cast %45 : vector<1x8x128xf32> to vector<8x128xf32>
    %cst_22 = arith.constant dense<0.000000e+00> : vector<256x128xf32>
    %47 = tpu.matmul %44, %46, %cst_22 {dimension_numbers = #tpu.dot_dimension_numbers<[1], [0], [0], [1], [0, 0, 1, 1], [], []>} : vector<256x8xf32>, vector<8x128xf32>, vector<256x128xf32> -> vector<256x128xf32>
    %48 = arith.addf %41, %47 : vector<256x128xf32>
    %49 = vector.extract_strided_slice %42 {offsets = [0, 1, 0], sizes = [16, 16, 8], strides = [1, 1, 1]} : vector<16x18x8xf32> to vector<16x16x8xf32>
    %50 = vector.shape_cast %49 : vector<16x16x8xf32> to vector<256x8xf32>
    %c7 = arith.constant 7 : index
    %c0_23 = arith.constant 0 : index
    %c0_24 = arith.constant 0 : index
    %51 = vector.load %arg3[%c7, %c0_23, %c0_24] : memref<9x8x128xf32, #tpu.memory_space<vmem>>, vector<1x8x128xf32>
    %52 = vector.shape_cast %51 : vector<1x8x128xf32> to vector<8x128xf32>
    %cst_25 = arith.constant dense<0.000000e+00> : vector<256x128xf32>
    %53 = tpu.matmul %50, %52, %cst_25 {dimension_numbers = #tpu.dot_dimension_numbers<[1], [0], [0], [1], [0, 0, 1, 1], [], []>} : vector<256x8xf32>, vector<8x128xf32>, vector<256x128xf32> -> vector<256x128xf32>
    %54 = arith.addf %48, %53 : vector<256x128xf32>
    %55 = vector.extract_strided_slice %42 {offsets = [0, 2, 0], sizes = [16, 16, 8], strides = [1, 1, 1]} : vector<16x18x8xf32> to vector<16x16x8xf32>
    %56 = vector.shape_cast %55 : vector<16x16x8xf32> to vector<256x8xf32>
    %c8 = arith.constant 8 : index
    %c0_26 = arith.constant 0 : index
    %c0_27 = arith.constant 0 : index
    %57 = vector.load %arg3[%c8, %c0_26, %c0_27] : memref<9x8x128xf32, #tpu.memory_space<vmem>>, vector<1x8x128xf32>
    %58 = vector.shape_cast %57 : vector<1x8x128xf32> to vector<8x128xf32>
    %cst_28 = arith.constant dense<0.000000e+00> : vector<256x128xf32>
    %59 = tpu.matmul %56, %58, %cst_28 {dimension_numbers = #tpu.dot_dimension_numbers<[1], [0], [0], [1], [0, 0, 1, 1], [], []>} : vector<256x8xf32>, vector<8x128xf32>, vector<256x128xf32> -> vector<256x128xf32>
    %60 = arith.addf %54, %59 : vector<256x128xf32>
    %c0_29 = arith.constant 0 : index
    %c0_30 = arith.constant 0 : index
    %61 = vector.load %arg4[%c0_29, %c0_30] : memref<1x128xf32, #tpu.memory_space<vmem>>, vector<1x128xf32>
    %62 = vector.broadcast %61 : vector<1x128xf32> to vector<256x128xf32>
    %63 = arith.addf %60, %62 : vector<256x128xf32>
    %cst_31 = arith.constant 1.000000e+00 : f32
    %64 = vector.broadcast %cst_31 : f32 to vector<8x256xf32>
    %cst_32 = arith.constant dense<0.000000e+00> : vector<8x128xf32>
    %65 = tpu.matmul %64, %63, %cst_32 {dimension_numbers = #tpu.dot_dimension_numbers<[1], [0], [0], [1], [0, 0, 1, 1], [], []>} : vector<8x256xf32>, vector<256x128xf32>, vector<8x128xf32> -> vector<8x128xf32>
    %66 = arith.mulf %63, %63 : vector<256x128xf32>
    %cst_33 = arith.constant dense<0.000000e+00> : vector<8x128xf32>
    %67 = tpu.matmul %64, %66, %cst_33 {dimension_numbers = #tpu.dot_dimension_numbers<[1], [0], [0], [1], [0, 0, 1, 1], [], []>} : vector<8x256xf32>, vector<256x128xf32>, vector<8x128xf32> -> vector<8x128xf32>
    %68 = vector.extract_strided_slice %65 {offsets = [0, 0], sizes = [1, 128], strides = [1, 1]} : vector<8x128xf32> to vector<1x128xf32>
    %69 = vector.extract_strided_slice %67 {offsets = [0, 0], sizes = [1, 128], strides = [1, 1]} : vector<8x128xf32> to vector<1x128xf32>
    %70 = tpu.concatenate %68, %69 in 0 : vector<1x128xf32>, vector<1x128xf32> -> vector<2x128xf32>
    %c0_34 = arith.constant 0 : index
    %c0_35 = arith.constant 0 : index
    %c0_36 = arith.constant 0 : index
    %c0_37 = arith.constant 0 : index
    %71 = vector.load %arg5[%c0_34, %c0_35, %c0_36, %c0_37] : memref<1x1x2x128xf32, #tpu.memory_space<vmem>>, vector<1x1x2x128xf32>
    %72 = vector.shape_cast %71 : vector<1x1x2x128xf32> to vector<2x128xf32>
    %73 = vector.shape_cast %70 : vector<2x128xf32> to vector<1x1x2x128xf32>
    tpu.vector_store %arg5[%c0_34, %c0_35, %c0_36, %c0_37], %73 {strides = array<i32>} : memref<1x1x2x128xf32, #tpu.memory_space<vmem>>, vector<1x1x2x128xf32>,
    return
  }
  func.func @transform_0(%arg0: i32, %arg1: i32) -> (i32, i32, i32, i32) {
    %c0_i32 = arith.constant 0 : i32
    %c0_i32_0 = arith.constant 0 : i32
    %c0_i32_1 = arith.constant 0 : i32
    %c0_i32_2 = arith.constant 0 : i32
    return %arg0, %c0_i32, %c0_i32_0, %c0_i32_1 : i32, i32, i32, i32
  }
  func.func @transform_1(%arg0: i32, %arg1: i32) -> (i32, i32, i32) {
    %c0_i32 = arith.constant 0 : i32
    %c0_i32_0 = arith.constant 0 : i32
    %c0_i32_1 = arith.constant 0 : i32
    %c0_i32_2 = arith.constant 0 : i32
    return %c0_i32, %c0_i32_0, %c0_i32_1 : i32, i32, i32
  }
  func.func @transform_2(%arg0: i32, %arg1: i32) -> (i32, i32) {
    %c0_i32 = arith.constant 0 : i32
    %c0_i32_0 = arith.constant 0 : i32
    %c0_i32_1 = arith.constant 0 : i32
    return %c0_i32, %c0_i32_0 : i32, i32
  }
  func.func @transform_3(%arg0: i32, %arg1: i32) -> (i32, i32, i32, i32) {
    %c0_i32 = arith.constant 0 : i32
    %c0_i32_0 = arith.constant 0 : i32
    %c0_i32_1 = arith.constant 0 : i32
    return %arg0, %arg1, %c0_i32, %c0_i32_0 : i32, i32, i32, i32
  }
}

</mosaic_0001>

<bundles_post_ra>
// kernel: conv_bn_relu.2
= control target key start
LH: loop header
LB: loop body
LE: loop exit
PB: predicated region body
PF: predicated region fallthrough
CT: control target
= control target key end

     0   :  { %s2586_s12 = smov 0   ;;  %s2588_s13 = smov 0   ;;  %s4157_s0 = inlined_call_operand.vmem [shape: f32[2,18,18,8], index: 0, kind: input, shape index: {}]   ;;  %s4158_s1 = inlined_call_operand.vmem [shape: f32[9,8,128], index: 1, kind: input, shape index: {}]   ;;  %s4159_s2 = inlined_call_operand.vmem [shape: f32[1,128], index: 2, kind: input, shape index: {}]   ;;  %s4160_s3 = inlined_call_operand.vmem [shape: f32[2,1,2,128], index: 3, kind: output, shape index: {}]  }
   0x1   :  { %s2590_s14 = smov 0  }
   0x2 LB: > { %s25_s15 = sadd.s32 1, %s2559_s13  ;;  %p2188_p0 = scmp.ge.s32.totalorder %s2563_s14, 1  ;;  %s2563_s14 = sphi %s2590_s14, %s13_s14   ;;  %s2559_s13 = sphi %s2588_s13, %s4376_s13   ;;  %s2555_s12 = sphi %s2586_s12, %s4375_s12  }
   0x3   : > { %p27_p1 = scmp.ge.s32.totalorder %s25_s15, 2  ;;  %p151_p2 = scmp.lt.s32.totalorder %s2563_s14, 3 }
   0x5   : > { %s4378_s15 = smov (%p27_p1, %s25_s15), 0  ;;  %p152_p3 = pnand %p2188_p0, %p151_p2 }
   0x7   : > { %155 = sbr.rel (%p152_p3) target bundleno = 906 (0x38a), region = 32 }
   0xc   : > { %v2191_v0 = vld [vmem:[%s4158_s1 + $0x8] sm:$0xff]  ;;  %p177_p4 = scmp.lt.s32.totalorder %s2555_s12, 1  ;;  %v246_v1 = vld [vmem:[%s4158_s1] sm:$0xff]  ;;  %vm295_vm0 = vcmask 1046528   ;;  %vm378_vm1 = vcmask 64512   ;;  %vm733_vm2 = vcmask 1045504  }
   0xd   : > { %2489 = vmatpush.msra.mxu1 %v2191_v0  ;;  %2490 = vmatpush.msra.mxu2 %v2191_v0  ;;  %vm2108_vm3 = vcmask 1040384  }
   0xe   : > { %s4380_s12 = smov (!%p177_p4, %s2555_s12), 1  ;;  %458 = vmatpush.msra.mxu0 %v2191_v0  ;;  %2491 = vmatpush.msra.mxu3 %v2191_v0 }
   0xf   : > { %s2492_s18 = smul.u32 432, %s4380_s12  ;;  %635 = vmatpush.msrb.mxu1 %v246_v1  ;;  %s2190_s17 = sshll.u32 %s4380_s12, 1 }
  0x10   : > { %s188_s20 = scalar_lea.vmem %s4160_s3, %s2190_s17 }
  0x11   : > { %s2616_s23 = scalar_lea.vmem %s4157_s0, %s2492_s18 }
  0x12   : > { %v2619_v2 = vld [vmem:[%s2616_s23 + $0x78] sm:$0xff]  ;;  %v2622_v3 = vld [vmem:[%s2616_s23 + $0x80] sm:$0xff]  ;;  %v2625_v4 = vld [vmem:[%s2616_s23 + $0xa8] sm:$0xff] }
  0x13   : > { %v321_v5 = vrot.slane %v2619_v2, 1  ;;  %v322_v6 = vrot.slane %v2622_v3, 1  ;;  %v2630_v7 = vld [vmem:[%s2616_s23 + $0xb0] sm:$0xff]  ;;  %v331_v8 = vrot.slane %v2625_v4, 1  ;;  %v2634_v9 = vld [vmem:[%s2616_s23] sm:$0xff]  ;;  %v2637_v10 = vld [vmem:[%s2616_s23 + $0x8] sm:$0xff] }
  0x14   : > { %v332_v11 = vrot.slane %v2630_v7, 1  ;;  %v296_v12 = vrot.slane %v2634_v9, 1  ;;  %v297_v13 = vrot.slane %v2637_v10, 1  ;;  %v2643_v14 = vld [vmem:[%s2616_s23 + $0x110] sm:$0xff]  ;;  %v2646_v15 = vld [vmem:[%s2616_s23 + $0x118] sm:$0x3] }
  0x15   : > { %4227 = vst [vmem:[#allocation2_spill] sm:$0xff] %v2646_v15  ;;  %v2649_v16 = vsel %vm295_vm0, %v321_v5, %v322_v6  ;;  %v4161_v17 = vrot.slane %v2643_v14, 1  ;;  %v354_v18 = vrot.slane %v2646_v15, 1  ;;  %v2654_v19 = vld [vmem:[%s2616_s23 + $0x88] sm:$0x3]  ;;  %v2669_v24 = vld [vmem:[%s2616_s23 + $0x120] sm:$0xff] }
  0x16   : > { %4228 = vst [vmem:[#allocation3_spill] sm:$0xff] %v2649_v16  ;;  %v2657_v20 = vld [vmem:[%s2616_s23 + $0xb8] sm:$0x3]  ;;  %2202 = vmatmul.msk.f32.vlgmr.msra.gmra.mxu1 %vm378_vm1, %v2649_v16  ;;  %v2662_v21 = vsel %vm295_vm0, %v331_v8, %v332_v11  ;;  %v298_v22 = vsel %vm295_vm0, %v296_v12, %v297_v13  ;;  %v2666_v23 = vld [vmem:[%s2616_s23 + $0x10] sm:$0x3]  ;;  %v2672_v25 = vld [vmem:[%s2616_s23 + $0x128] sm:$0xff] }
  0x17   : > { %4229 = vst [vmem:[#allocation4_spill] sm:$0xff] %v2662_v21  ;;  %2206 = vmatmul.msk.f32.vlgmr.msra.gmra.mxu2 %vm378_vm1, %v2662_v21  ;;  %2192 = vmatmul.msk.f32.vlgmr.msra.gmra.mxu0 %vm378_vm1, %v298_v22  ;;  %v2680_v26 = vsel %vm295_vm0, %v4161_v17, %v354_v18  ;;  %v324_v27 = vrot.slane %v2654_v19, 1  ;;  %v334_v28 = vrot.slane %v2657_v20, 1  ;;  %v299_v29 = vrot.slane %v2666_v23, 1  ;;  %v2697_v35 = vld [vmem:[%s2616_s23 + $0x90] sm:$0xff]  ;;  %v2700_v36 = vld [vmem:[%s2616_s23 + $0x98] sm:$0xff] }
  0x18   : > { %4230 = vst [vmem:[#allocation5_spill] sm:$0xff] %v2680_v26  ;;  %2215 = vmatmul.msk.f32.vlgmr.msra.gmra.mxu3 %vm378_vm1, %v2680_v26  ;;  %v356_v30 = vrot.slane %v2669_v24, 1  ;;  %v357_v31 = vrot.slane %v2672_v25, 1  ;;  %v2703_v37 = vld [vmem:[%s2616_s23 + $0xc0] sm:$0xff]  ;;  %v2709_v39 = vld [vmem:[%s2616_s23 + $0xc8] sm:$0xff]  ;;  %v2712_v40 = vld [vmem:[%s2616_s23 + $0x18] sm:$0xff] }
  0x19   : > { %v2690_v32 = vsel %vm295_vm0, %v322_v6, %v324_v27  ;;  %v2693_v33 = vsel %vm295_vm0, %v332_v11, %v334_v28  ;;  %v300_v34 = vsel %vm295_vm0, %v297_v13, %v299_v29  ;;  %v2715_v41 = vld [vmem:[%s2616_s23 + $0x20] sm:$0xff]  ;;  %v2720_v42 = vld [vmem:[%s2616_s23 + $0x130] sm:$0x3]  ;;  %v326_v43 = vrot.slane %v2697_v35, 1  ;;  %v2753_v56 = vld [vmem:[%s2616_s23 + $0x28] sm:$0x3] }
  0x1a   : > { %4231 = vst [vmem:[#allocation6_spill] sm:$0xff] %v2690_v32  ;;  %v2706_v38 = vsel %vm295_vm0, %v356_v30, %v357_v31  ;;  %v327_v44 = vrot.slane %v2700_v36, 1  ;;  %v336_v45 = vrot.slane %v2703_v37, 1  ;;  %v337_v46 = vrot.slane %v2709_v39, 1  ;;  %v2744_v53 = vld [vmem:[%s2616_s23 + $0xa0] sm:$0x3] }
  0x1b   : > { %4232 = vst [vmem:[#allocation7_spill] sm:$0xff] %v2693_v33  ;;  %v301_v47 = vrot.slane %v2712_v40, 1  ;;  %v302_v48 = vrot.slane %v2715_v41, 1  ;;  %v359_v49 = vrot.slane %v2720_v42, 1  ;;  %v2750_v55 = vld [vmem:[%s2616_s23 + $0xd0] sm:$0x3] }
  0x1c   : > { %4233 = vst [vmem:[#allocation8_spill] sm:$0xff] %v2706_v38  ;;  %v2735_v50 = vsel %vm295_vm0, %v326_v43, %v327_v44  ;;  %v2738_v51 = vsel %vm295_vm0, %v336_v45, %v337_v46  ;;  %v2758_v57 = vld [vmem:[%s2616_s23 + $0x138] sm:$0xff]  ;;  %v2761_v58 = vld [vmem:[%s2616_s23 + $0x140] sm:$0xff]  ;;  %v329_v59 = vrot.slane %v2744_v53, 1  ;;  %v339_v60 = vrot.slane %v2750_v55, 1  ;;  %v2793_v12 = vld [vmem:[%s2616_s23 + $0x30] sm:$0xff] }
  0x1d   : > { %4234 = vst [vmem:[#allocation9_spill] sm:$0xff] %v2720_v42  ;;  %v2741_v52 = vsel %vm295_vm0, %v301_v47, %v302_v48  ;;  %v2747_v54 = vsel %vm295_vm0, %v357_v31, %v359_v49  ;;  %v304_v61 = vrot.slane %v2753_v56, 1  ;;  %v361_v62 = vrot.slane %v2758_v57, 1  ;;  %v2784_v6 = vld [vmem:[%s2616_s23 + $0xd8] sm:$0xff]  ;;  %v2790_v11 = vld [vmem:[%s2616_s23 + $0xe0] sm:$0xff] }
  0x1e   : > { %2203 = vmatmul.msk.f32.gmra.mxu1 %vm378_vm1, %v2690_v32  ;;  %4235 = vst [vmem:[#allocation10_spill] sm:$0xff] %v2735_v50  ;;  %v362_v63 = vrot.slane %v2761_v58, 1  ;;  %v2775_v0 = vsel %vm295_vm0, %v327_v44, %v329_v59  ;;  %v2778_v1 = vsel %vm295_vm0, %v337_v46, %v339_v60  ;;  %v2796_v13 = vld [vmem:[%s2616_s23 + $0x38] sm:$0xff]  ;;  %v2801_v18 = vld [vmem:[%s2616_s23 + $0x148] sm:$0x3]  ;;  %v341_v22 = vrot.slane %v2784_v6, 1 }
  0x1f   : > { %2207 = vmatmul.msk.f32.gmra.mxu2 %vm378_vm1, %v2693_v33  ;;  %2193 = vmatmul.msk.f32.gmra.mxu0 %vm378_vm1, %v300_v34  ;;  %4236 = vst [vmem:[#allocation11_spill] sm:$0xff] %v2738_v51  ;;  %v2781_v5 = vsel %vm295_vm0, %v302_v48, %v304_v61  ;;  %v342_v27 = vrot.slane %v2790_v11, 1  ;;  %v306_v28 = vrot.slane %v2793_v12, 1  ;;  %v307_v29 = vrot.slane %v2796_v13, 1  ;;  %v2824_v44 = vld [vmem:[%s2616_s23 + $0xe8] sm:$0x3] }
  0x20   : > { %2216 = vmatmul.msk.f32.gmra.mxu3 %vm378_vm1, %v2706_v38  ;;  %4237 = vst [vmem:[#allocation12_spill] sm:$0xff] %v2747_v54  ;;  %v2787_v8 = vsel %vm295_vm0, %v361_v62, %v362_v63  ;;  %v364_v30 = vrot.slane %v2801_v18, 1  ;;  %v2827_v45 = vld [vmem:[%s2616_s23 + $0x40] sm:$0x3]  ;;  %v2832_v46 = vld [vmem:[%s2616_s23 + $0x150] sm:$0xff]  ;;  %v2835_v47 = vld [vmem:[%s2616_s23 + $0x158] sm:$0xff] }
  0x21   : > { %4238 = vst [vmem:[#allocation13_spill] sm:$0xff] %v2758_v57  ;;  %v2815_v31 = vsel %vm295_vm0, %v341_v22, %v342_v27  ;;  %v2818_v34 = vsel %vm295_vm0, %v306_v28, %v307_v29  ;;  %v344_v48 = vrot.slane %v2824_v44, 1  ;;  %v309_v49 = vrot.slane %v2827_v45, 1  ;;  %v2256_v59 = vld [vmem:[%s4158_s1 + $0x10] sm:$0xff]  ;;  %v2907_v38 = vld [vmem:[%s2616_s23 + $0x58] sm:$0x3] }
  0x22   : > { %4239 = vst [vmem:[#allocation14_spill] sm:$0xff] %v2761_v58  ;;  %v2821_v43 = vsel %vm295_vm0, %v362_v63, %v364_v30  ;;  %v366_v60 = vrot.slane %v2832_v46, 1  ;;  %v367_v61 = vrot.slane %v2835_v47, 1  ;;  %895 = vmatpush.msrb.mxu2 %v2256_v59  ;;  %v2857_v22 = vld [vmem:[%s2616_s23 + $0xf0] sm:$0xff]  ;;  %v734_v28 = vrot.slane %v2634_v9, 2  ;;  %v2944_v26 = vld [vmem:[%s2616_s23 + $0x60] sm:$0xff] }
  0x23   : > { %4240 = vst [vmem:[#allocation15_spill] sm:$0xff] %v2775_v0  ;;  %v2851_v62 = vsel %vm295_vm0, %v342_v27, %v344_v48  ;;  %v2854_v63 = vsel %vm295_vm0, %v307_v29, %v309_v49  ;;  %v735_v30 = vrot.slane %v2637_v10, 2  ;;  %v2871_v59 = vld [vmem:[%s2616_s23 + $0x50] sm:$0xff]  ;;  %v2876_v27 = vld [vmem:[%s2616_s23 + $0x160] sm:$0x3]  ;;  %v2289_v29 = vld [vmem:[%s4158_s1 + $0x18] sm:$0xff] }
  0x24   : > { %4241 = vst [vmem:[#allocation16_spill] sm:$0xff] %v2778_v1  ;;  %v2862_v17 = vsel %vm295_vm0, %v366_v60, %v367_v61  ;;  %v312_v60 = vrot.slane %v2871_v59, 1  ;;  %1048 = vmatpush.msrb.mxu3 %v2289_v29  ;;  %v2912_v29 = vld [vmem:[%s2616_s23 + $0x168] sm:$0xff] }
  0x25   : > { %4242 = vst [vmem:[#allocation17_spill] sm:$0xff] %v2787_v8  ;;  %v2947_v58 = vld [vmem:[%s2616_s23 + $0x68] sm:$0xff] }
  0x26   : > { %2204 = vmatmul.msk.f32.gmra.mxu1 %vm378_vm1, %v2735_v50  ;;  %4243 = vst [vmem:[#allocation18_spill] sm:$0xff] %v2801_v18  ;;  %v2865_v18 = vld [vmem:[%s2616_s23 + $0xf8] sm:$0xff] }
  0x27   : > { %2208 = vmatmul.msk.f32.gmra.mxu2 %vm378_vm1, %v2738_v51  ;;  %2194 = vmatmul.msk.f32.gmra.mxu0 %vm378_vm1, %v2741_v52  ;;  %4244 = vst [vmem:[#allocation19_spill] sm:$0xff] %v2821_v43  ;;  %v347_v48 = vrot.slane %v2865_v18, 1 }
  0x28   : > { %2217 = vmatmul.msk.f32.gmra.mxu3 %vm378_vm1, %v2747_v54  ;;  %4245 = vst [vmem:[#allocation20_spill] sm:$0xff] %v2832_v46  ;;  %v737_v54 = vrot.slane %v2666_v23, 2  ;;  %v2322_v23 = vld [vmem:[%s4158_s1 + $0x20] sm:$0xff] }
  0x29   : > { %4246 = vst [vmem:[#allocation21_spill] sm:$0xff] %v2835_v47  ;;  %v2904_v47 = vld [vmem:[%s2616_s23 + $0x100] sm:$0x3]  ;;  %1205 = vmatpush.msrb.mxu0 %v2322_v23  ;;  %v2952_v23 = vld [vmem:[%s2616_s23 + $0x178] sm:$0x3] }
  0x2a   : > { %4247 = vst [vmem:[#allocation22_spill] sm:$0xff] %v2862_v17 }
  0x2b   : > { %4249 = vst [vmem:[#allocation24_spill] sm:$0xff] %v2871_v59 }
  0x2c   : > { %4250 = vst [vmem:[#allocation25_spill] sm:$0xff] %v2876_v27 }
  0x2d   : > { %4253 = vst [vmem:[#allocation28_spill] sm:$0xff] %v2912_v29 }
  0x2e   : > { %2205 = vmatmul.msk.f32.gmra.mxu1 %vm378_vm1, %v2775_v0  ;;  %4257 = vst [vmem:[#allocation32_spill] sm:$0xff] %v2944_v26 }
  0x2f   : > { %2209 = vmatmul.msk.f32.gmra.mxu2 %vm378_vm1, %v2778_v1  ;;  %2195 = vmatmul.msk.f32.gmra.mxu0 %vm378_vm1, %v2781_v5  ;;  %4258 = vst [vmem:[#allocation33_spill] sm:$0xff] %v2947_v58 }
  0x30   : > { %2218 = vmatmul.msk.f32.gmra.mxu3 %vm378_vm1, %v2787_v8 }
  0x36   : > { %2224 = vmatmul.msk.f32.vlgmr.msrb.gmra.mxu1 %vm378_vm1, %v2634_v9  ;;  %v736_v9 = vsel %vm733_vm2, %v734_v28, %v735_v30  ;;  %v369_v28 = vrot.slane %v2876_v27, 1 }
  0x37   : > { %2210 = vmatmul.msk.f32.gmra.mxu2 %vm378_vm1, %v2815_v31  ;;  %2196 = vmatmul.msk.f32.gmra.mxu0 %vm378_vm1, %v2818_v34 }
  0x38   : > { %2219 = vmatmul.msk.f32.gmra.mxu3 %vm378_vm1, %v2821_v43  ;;  %v2868_v43 = vld [vmem:[%s2616_s23 + $0x48] sm:$0xff] }
  0x39   : > { %4248 = vst [vmem:[#allocation23_spill] sm:$0xff] %v2868_v43  ;;  %v311_v49 = vrot.slane %v2868_v43, 1 }
  0x3b   : > { %v2897_v42 = vsel %vm295_vm0, %v311_v49, %v312_v60  ;;  %v738_v49 = vsel %vm733_vm2, %v735_v30, %v737_v54  ;;  %v371_v54 = vrot.slane %v2912_v29, 1 }
  0x3c   : > { %4251 = vst [vmem:[#allocation26_spill] sm:$0xff] %v2897_v42 }
  0x3e   : > { %2225 = vmatmul.msk.f32.gmra.mxu1 %vm378_vm1, %v2637_v10  ;;  %v346_v10 = vrot.slane %v2857_v22, 1 }
  0x3f   : > { %2211 = vmatmul.msk.f32.gmra.mxu2 %vm378_vm1, %v2851_v62  ;;  %2197 = vmatmul.msk.f32.gmra.mxu0 %vm378_vm1, %v2854_v63 }
  0x40   : > { %2220 = vmatmul.msk.f32.gmra.mxu3 %vm378_vm1, %v2862_v17  ;;  %v2894_v8 = vsel %vm295_vm0, %v346_v10, %v347_v48  ;;  %v2901_v17 = vsel %vm295_vm0, %v367_v61, %v369_v28  ;;  %v2915_v10 = vld [vmem:[%s2616_s23 + $0x170] sm:$0xff]  ;;  %v349_v61 = vrot.slane %v2904_v47, 1  ;;  %v314_v28 = vrot.slane %v2907_v38, 1 }
  0x41   : > { %4252 = vst [vmem:[#allocation27_spill] sm:$0xff] %v2901_v17  ;;  %v372_v30 = vrot.slane %v2915_v10, 1 }
  0x42   : > { %4254 = vst [vmem:[#allocation29_spill] sm:$0xff] %v2915_v10  ;;  %v2932_v27 = vsel %vm295_vm0, %v347_v48, %v349_v61  ;;  %v2935_v46 = vsel %vm295_vm0, %v312_v60, %v314_v28  ;;  %v316_v60 = vrot.slane %v2944_v26, 1  ;;  %v317_v61 = vrot.slane %v2947_v58, 1 }
  0x43   : > { %4255 = vst [vmem:[#allocation30_spill] sm:$0xff] %v2935_v46  ;;  %v2938_v15 = vsel %vm295_vm0, %v371_v54, %v372_v30  ;;  %v374_v28 = vrot.slane %v2952_v23, 1  ;;  %v4259_v54 = vrot.slane %v2643_v14, 1 }
  0x44   : > { %4256 = vst [vmem:[#allocation31_spill] sm:$0xff] %v2938_v15  ;;  %v2970_v29 = vsel %vm295_vm0, %v316_v60, %v317_v61 }
  0x45   : > { %4260 = vst [vmem:[#allocation34_spill] sm:$0xff] %v2970_v29  ;;  %v2973_v57 = vsel %vm295_vm0, %v372_v30, %v374_v28  ;;  %v739_v30 = vrot.slane %v2712_v40, 2 }
  0x46   : > { %2226 = vmatmul.msk.f32.gmra.mxu1 %vm378_vm1, %v2712_v40  ;;  %4261 = vst [vmem:[#allocation35_spill] sm:$0xff] %v2973_v57 }
  0x47   : > { %2212 = vmatmul.msk.f32.gmra.mxu2 %vm378_vm1, %v2894_v8  ;;  %2198 = vmatmul.msk.f32.gmra.mxu0 %vm378_vm1, %v2897_v42 }
  0x48   : > { %2221 = vmatmul.msk.f32.gmra.mxu3 %vm378_vm1, %v2901_v17  ;;  %v2941_v17 = vld [vmem:[%s2616_s23 + $0x108] sm:$0xff] }
  0x49   : > { %v351_v48 = vrot.slane %v2941_v17, 1 }
  0x4b   : > { %v2967_v10 = vsel %vm295_vm0, %v351_v48, %v4259_v54  ;;  %v749_v54 = vrot.slane %v2868_v43, 2 }
  0x4e   : > { %2227 = vmatmul.msk.f32.gmra.mxu1 %vm378_vm1, %v2715_v41 }
  0x4f   : > { %2213 = vmatmul.msk.f32.gmra.mxu2 %vm378_vm1, %v2932_v27  ;;  %2199 = vmatmul.msk.f32.gmra.mxu0 %vm378_vm1, %v2935_v46 }
  0x50   : > { %2222 = vmatmul.msk.f32.gmra.mxu3 %vm378_vm1, %v2938_v15  ;;  %v2976_v15 = vld [vmem:[%s2616_s23 + $0x70] sm:$0x3] }
  0x51   : > { %v319_v48 = vrot.slane %v2976_v15, 1 }
  0x53   : > { %v2988_v60 = vsel %vm295_vm0, %v317_v61, %v319_v48  ;;  %v750_v48 = vrot.slane %v2871_v59, 2 }
  0x54   : > { %4262 = vst [vmem:[#allocation36_spill] sm:$0xff] %v2988_v60 }
  0x56   : > { %2228 = vmatmul.msk.f32.gmra.mxu1 %vm378_vm1, %v2793_v12 }
  0x57   : > { %2214 = vmatmul.msk.f32.gmra.mxu2 %vm378_vm1, %v2967_v10  ;;  %2200 = vmatmul.msk.f32.gmra.mxu0 %vm378_vm1, %v2970_v29 }
  0x58   : > { %2223 = vmatmul.msk.f32.gmra.mxu3 %vm378_vm1, %v2973_v57 }
  0x5e   : > { %2229 = vmatmul.msk.f32.gmra.mxu1 %vm378_vm1, %v2796_v13 }
  0x5f   : > { %2257 = vmatmul.msk.f32.vlgmr.msrb.gmra.mxu2 %vm378_vm1, %v736_v9  ;;  %2201 = vmatmul.msk.f32.gmra.mxu0 %vm378_vm1, %v2988_v60  ;;  %v740_v9 = vrot.slane %v2715_v41, 2 }
  0x60   : > { %2290 = vmatmul.msk.f32.vlgmr.msrb.gmra.mxu3 %vm378_vm1, %v2712_v40 }
  0x61   : > { %v3007_v61 = vsel %vm733_vm2, %v739_v30, %v740_v9  ;;  %v752_v30 = vrot.slane %v2907_v38, 2  ;;  %v754_v38 = vrot.slane %v2944_v26, 2 }
  0x66   : > { %2230 = vmatmul.msk.f32.gmra.mxu1 %vm378_vm1, %v2868_v43 }
  0x67   : > { %2258 = vmatmul.msk.f32.gmra.mxu2 %vm378_vm1, %v738_v49  ;;  %2323 = vmatmul.msk.f32.vlgmr.msrb.gmra.mxu0 %vm378_vm1, %v2741_v52  ;;  %v742_v52 = vrot.slane %v2753_v56, 2  ;;  %v747_v49 = vrot.slane %v2827_v45, 2  ;;  %v3057_v45 = vsel %vm733_vm2, %v749_v54, %v750_v48 }
  0x68   : > { %2291 = vmatmul.msk.f32.gmra.mxu3 %vm378_vm1, %v2715_v41  ;;  %v744_v41 = vrot.slane %v2793_v12, 2 }
  0x69   : > { %v3019_v40 = vsel %vm733_vm2, %v740_v9, %v742_v52 }
  0x6e   : > { %2231 = vmatmul.msk.f32.gmra.mxu1 %vm378_vm1, %v2871_v59 }
  0x6f   : > { %2259 = vmatmul.msk.f32.gmra.mxu2 %vm378_vm1, %v3007_v61  ;;  %2324 = vmatmul.msk.f32.gmra.mxu0 %vm378_vm1, %v2781_v5  ;;  %v745_v5 = vrot.slane %v2796_v13, 2 }
  0x70   : > { %2292 = vmatmul.msk.f32.gmra.mxu3 %vm378_vm1, %v2793_v12 }
  0x71   : > { %v3032_v56 = vsel %vm733_vm2, %v744_v41, %v745_v5  ;;  %v3044_v28 = vsel %vm733_vm2, %v745_v5, %v747_v49  ;;  %v3073_v41 = vsel %vm733_vm2, %v750_v48, %v752_v30  ;;  %v755_v5 = vrot.slane %v2947_v58, 2 }
  0x76   : > { %2232 = vmatmul.msk.f32.gmra.mxu1 %vm378_vm1, %v2944_v26 }
  0x77   : > { %2260 = vmatmul.msk.f32.gmra.mxu2 %vm378_vm1, %v3019_v40  ;;  %2325 = vmatmul.msk.f32.gmra.mxu0 %vm378_vm1, %v2818_v34 }
  0x78   : > { %2293 = vmatmul.msk.f32.gmra.mxu3 %vm378_vm1, %v2796_v13 }
  0x7e   : > { %2233 = vmatmul.msk.f32.gmra.mxu1 %vm378_vm1, %v2947_v58 }
  0x7f   : > { %2261 = vmatmul.msk.f32.gmra.mxu2 %vm378_vm1, %v3032_v56  ;;  %2326 = vmatmul.msk.f32.gmra.mxu0 %vm378_vm1, %v2854_v63 }
  0x80   : > { %2294 = vmatmul.msk.f32.gmra.mxu3 %vm378_vm1, %v2868_v43 }
  0x86   : > { %2234 = vmatmul.msk.f32.gmra.mxu1 %vm378_vm1, %v2619_v2 }
  0x87   : > { %2262 = vmatmul.msk.f32.gmra.mxu2 %vm378_vm1, %v3044_v28  ;;  %2327 = vmatmul.msk.f32.gmra.mxu0 %vm378_vm1, %v2897_v42 }
  0x88   : > { %2295 = vmatmul.msk.f32.gmra.mxu3 %vm378_vm1, %v2871_v59 }
  0x8e   : > { %2235 = vmatmul.msk.f32.gmra.mxu1 %vm378_vm1, %v2622_v3 }
  0x8f   : > { %2263 = vmatmul.msk.f32.gmra.mxu2 %vm378_vm1, %v3057_v45  ;;  %2328 = vmatmul.msk.f32.gmra.mxu0 %vm378_vm1, %v2935_v46  ;;  %v3094_v46 = vsel %vm733_vm2, %v754_v38, %v755_v5 }
  0x90   : > { %2296 = vmatmul.msk.f32.gmra.mxu3 %vm378_vm1, %v2944_v26 }
  0x93   : > { %v3068_v9 = vpop.f32.mrf.mxu1 }
  0x94   : > { %v3070_v52 = vpop.f32.mrf.mxu0 }
  0x96   : > { %2236 = vmatmul.msk.f32.gmra.mxu1 %vm378_vm1, %v2697_v35 }
  0x97   : > { %2264 = vmatmul.msk.f32.gmra.mxu2 %vm378_vm1, %v3073_v41  ;;  %2329 = vmatmul.msk.f32.gmra.mxu0 %vm378_vm1, %v2970_v29 }
  0x98   : > { %2297 = vmatmul.msk.f32.gmra.mxu3 %vm378_vm1, %v2947_v58  ;;  %v757_v58 = vrot.slane %v2976_v15, 2  ;;  %v759_v15 = vrot.slane %v2619_v2, 2 }
  0x9a   : > { %v3085_v49 = vpop.f32.mrf.mxu2  ;;  %v3114_v59 = vsel %vm733_vm2, %v755_v5, %v757_v58 }
  0x9b   : > { %v3087_v54 = vpop.f32.mrf.mxu1  ;;  %v3089_v48 = vpop.f32.mrf.mxu3  ;;  %4265 = vst [vmem:[#allocation39_spill] sm:$0xff] %v3114_v59 }
  0x9c   : > { %4263 = vst [vmem:[#allocation37_spill] sm:$0xff] %v3089_v48  ;;  %v3091_v30 = vpop.f32.mrf.mxu0 }
  0x9e   : > { %2237 = vmatmul.msk.f32.gmra.mxu1 %vm378_vm1, %v2700_v36 }
  0x9f   : > { %2265 = vmatmul.msk.f32.gmra.mxu2 %vm378_vm1, %v3094_v46  ;;  %2330 = vmatmul.msk.f32.gmra.mxu0 %vm378_vm1, %v2988_v60 }
  0xa0   : > { %2298 = vmatmul.msk.f32.gmra.mxu3 %vm378_vm1, %v2619_v2  ;;  %v762_v2 = vrot.slane %v2654_v19, 2  ;;  %v764_v19 = vrot.slane %v2697_v35, 2 }
  0xa2   : > { %v3105_v48 = vpop.f32.mrf.mxu2 }
  0xa3   : > { %v3107_v29 = vpop.f32.mrf.mxu1  ;;  %v3109_v38 = vpop.f32.mrf.mxu3 }
  0xa4   : > { %4264 = vst [vmem:[#allocation38_spill] sm:$0xff] %v3109_v38  ;;  %v3111_v26 = vpop.f32.mrf.mxu0  ;;  %v760_v38 = vrot.slane %v2622_v3, 2 }
  0xa6   : > { %2238 = vmatmul.msk.f32.gmra.mxu1 %vm378_vm1, %v2625_v4  ;;  %v3135_v43 = vsel %vm733_vm2, %v759_v15, %v760_v38 }
  0xa7   : > { %2266 = vmatmul.msk.f32.gmra.mxu2 %vm378_vm1, %v3114_v59  ;;  %2331 = vmatmul.msk.f32.gmra.mxu0 %vm378_vm1, %v2649_v16  ;;  %4267 = vst [vmem:[#allocation41_spill] sm:$0xff] %v3135_v43  ;;  %v3153_v59 = vsel %vm733_vm2, %v760_v38, %v762_v2 }
  0xa8   : > { %2299 = vmatmul.msk.f32.gmra.mxu3 %vm378_vm1, %v2622_v3  ;;  %4269 = vst [vmem:[#allocation43_spill] sm:$0xff] %v3153_v59 }
  0xaa   : > { %v3126_v60 = vpop.f32.mrf.mxu2 }
  0xab   : > { %v3128_v58 = vpop.f32.mrf.mxu1  ;;  %v3130_v5 = vpop.f32.mrf.mxu3 }
  0xac   : > { %4266 = vst [vmem:[#allocation40_spill] sm:$0xff] %v3130_v5  ;;  %v3132_v42 = vpop.f32.mrf.mxu0 }
  0xae   : > { %2239 = vmatmul.msk.f32.gmra.mxu1 %vm378_vm1, %v2630_v7 }
  0xaf   : > { %2267 = vmatmul.msk.f32.gmra.mxu2 %vm378_vm1, %v3135_v43  ;;  %2332 = vmatmul.msk.f32.gmra.mxu0 %vm378_vm1, %v2690_v32 }
  0xb0   : > { %2300 = vmatmul.msk.f32.gmra.mxu3 %vm378_vm1, %v2697_v35  ;;  %v767_v35 = vrot.slane %v2744_v53, 2  ;;  %v769_v53 = vrot.slane %v2625_v4, 2 }
  0xb2   : > { %v3146_v3 = vpop.f32.mrf.mxu2 }
  0xb3   : > { %v3148_v5 = vpop.f32.mrf.mxu3  ;;  %v637_v15 = vpop.f32.mrf.mxu1 }
  0xb4   : > { %4268 = vst [vmem:[#allocation42_spill] sm:$0xff] %v3148_v5  ;;  %v3150_v16 = vpop.f32.mrf.mxu0  ;;  %v765_v5 = vrot.slane %v2700_v36, 2 }
  0xb6   : > { %2240 = vmatmul.msk.f32.gmra.mxu1 %vm378_vm1, %v2703_v37 }
  0xb7   : > { %2268 = vmatmul.msk.f32.gmra.mxu2 %vm378_vm1, %v3153_v59  ;;  %2333 = vmatmul.msk.f32.gmra.mxu0 %vm378_vm1, %v2735_v50  ;;  %v3174_v59 = vsel %vm733_vm2, %v764_v19, %v765_v5 }
  0xb8   : > { %2301 = vmatmul.msk.f32.gmra.mxu3 %vm378_vm1, %v2700_v36  ;;  %4272 = vst [vmem:[#allocation46_spill] sm:$0xff] %v3174_v59 }
  0xba   : > { %v3165_v32 = vpop.f32.mrf.mxu2 }
  0xbb   : > { %4270 = vst [vmem:[#allocation44_spill] sm:$0xff] %v3165_v32  ;;  %v3167_v38 = vpop.f32.mrf.mxu3  ;;  %v3169_v2 = vpop.f32.mrf.mxu1  ;;  %v3194_v32 = vsel %vm733_vm2, %v765_v5, %v767_v35 }
  0xbc   : > { %4271 = vst [vmem:[#allocation45_spill] sm:$0xff] %v3167_v38  ;;  %v3171_v43 = vpop.f32.mrf.mxu0 }
  0xbd   : > { %4275 = vst [vmem:[#allocation49_spill] sm:$0xff] %v3194_v32 }
  0xbe   : > { %2241 = vmatmul.msk.f32.gmra.mxu1 %vm378_vm1, %v2709_v39 }
  0xbf   : > { %2269 = vmatmul.msk.f32.gmra.mxu2 %vm378_vm1, %v3174_v59  ;;  %2334 = vmatmul.msk.f32.gmra.mxu0 %vm378_vm1, %v2775_v0 }
  0xc0   : > { %2302 = vmatmul.msk.f32.gmra.mxu3 %vm378_vm1, %v2625_v4  ;;  %v772_v4 = vrot.slane %v2657_v20, 2  ;;  %v774_v20 = vrot.slane %v2703_v37, 2 }
  0xc2   : > { %v3185_v36 = vpop.f32.mrf.mxu2 }
  0xc3   : > { %4273 = vst [vmem:[#allocation47_spill] sm:$0xff] %v3185_v36  ;;  %v3187_v38 = vpop.f32.mrf.mxu3  ;;  %v3189_v19 = vpop.f32.mrf.mxu1 }
  0xc4   : > { %4274 = vst [vmem:[#allocation48_spill] sm:$0xff] %v3187_v38  ;;  %v3191_v50 = vpop.f32.mrf.mxu0  ;;  %v770_v38 = vrot.slane %v2630_v7, 2 }
  0xc6   : > { %2242 = vmatmul.msk.f32.gmra.mxu1 %vm378_vm1, %v2784_v6 }
  0xc7   : > { %2270 = vmatmul.msk.f32.gmra.mxu2 %vm378_vm1, %v3194_v32  ;;  %2335 = vmatmul.msk.f32.gmra.mxu0 %vm378_vm1, %v2662_v21  ;;  %v3215_v32 = vsel %vm733_vm2, %v769_v53, %v770_v38 }
  0xc8   : > { %2303 = vmatmul.msk.f32.gmra.mxu3 %vm378_vm1, %v2630_v7  ;;  %4278 = vst [vmem:[#allocation52_spill] sm:$0xff] %v3215_v32 }
  0xca   : > { %v3206_v0 = vpop.f32.mrf.mxu2 }
  0xcb   : > { %4276 = vst [vmem:[#allocation50_spill] sm:$0xff] %v3206_v0  ;;  %v3208_v5 = vpop.f32.mrf.mxu3  ;;  %v3210_v35 = vpop.f32.mrf.mxu1  ;;  %v3235_v0 = vsel %vm733_vm2, %v770_v38, %v772_v4 }
  0xcc   : > { %4277 = vst [vmem:[#allocation51_spill] sm:$0xff] %v3208_v5  ;;  %v3212_v59 = vpop.f32.mrf.mxu0 }
  0xcd   : > { %4281 = vst [vmem:[#allocation55_spill] sm:$0xff] %v3235_v0 }
  0xce   : > { %2243 = vmatmul.msk.f32.gmra.mxu1 %vm378_vm1, %v2790_v11 }
  0xcf   : > { %2271 = vmatmul.msk.f32.gmra.mxu2 %vm378_vm1, %v3215_v32  ;;  %2336 = vmatmul.msk.f32.gmra.mxu0 %vm378_vm1, %v2693_v33 }
  0xd0   : > { %2304 = vmatmul.msk.f32.gmra.mxu3 %vm378_vm1, %v2703_v37  ;;  %v777_v37 = vrot.slane %v2750_v55, 2  ;;  %v779_v55 = vrot.slane %v2784_v6, 2 }
  0xd2   : > { %v3226_v7 = vpop.f32.mrf.mxu2 }
  0xd3   : > { %4279 = vst [vmem:[#allocation53_spill] sm:$0xff] %v3226_v7  ;;  %v3228_v5 = vpop.f32.mrf.mxu3  ;;  %v3230_v53 = vpop.f32.mrf.mxu1 }
  0xd4   : > { %4280 = vst [vmem:[#allocation54_spill] sm:$0xff] %v3228_v5  ;;  %v3232_v21 = vpop.f32.mrf.mxu0  ;;  %v775_v5 = vrot.slane %v2709_v39, 2 }
  0xd6   : > { %2244 = vmatmul.msk.f32.gmra.mxu1 %vm378_vm1, %v2857_v22  ;;  %v3271_v36 = vsel %vm733_vm2, %v775_v5, %v777_v37 }
  0xd7   : > { %2272 = vmatmul.msk.f32.gmra.mxu2 %vm378_vm1, %v3235_v0  ;;  %2337 = vmatmul.msk.f32.gmra.mxu0 %vm378_vm1, %v2738_v51  ;;  %v3256_v0 = vsel %vm733_vm2, %v774_v20, %v775_v5 }
  0xd8   : > { %2305 = vmatmul.msk.f32.gmra.mxu3 %vm378_vm1, %v2709_v39  ;;  %4284 = vst [vmem:[#allocation58_spill] sm:$0xff] %v3256_v0  ;;  %v638_v39 = vadd.f32 %v637_v15, %v3070_v52  ;;  %v780_v52 = vrot.slane %v2790_v11, 2 }
  0xda   : > { %v3247_v33 = vpop.f32.mrf.mxu2 }
  0xdb   : > { %4282 = vst [vmem:[#allocation56_spill] sm:$0xff] %v3247_v33  ;;  %v3249_v38 = vpop.f32.mrf.mxu3  ;;  %v3251_v4 = vpop.f32.mrf.mxu1 }
  0xdc   : > { %4283 = vst [vmem:[#allocation57_spill] sm:$0xff] %v3249_v38  ;;  %v3253_v32 = vpop.f32.mrf.mxu0 }
  0xde   : > { %2245 = vmatmul.msk.f32.gmra.mxu1 %vm378_vm1, %v2865_v18 }
  0xdf   : > { %2273 = vmatmul.msk.f32.gmra.mxu2 %vm378_vm1, %v3256_v0  ;;  %2338 = vmatmul.msk.f32.gmra.mxu0 %vm378_vm1, %v2778_v1 }
  0xe0   : > { %2306 = vmatmul.msk.f32.gmra.mxu3 %vm378_vm1, %v2784_v6  ;;  %v782_v6 = vrot.slane %v2824_v44, 2  ;;  %v785_v44 = vrot.slane %v2865_v18, 2 }
  0xe2   : > { %v897_v38 = vpop.f32.mrf.mxu2 }
  0xe3   : > { %v993_v51 = vadd.f32 %v897_v38, %v638_v39  ;;  %v3268_v20 = vpop.f32.mrf.mxu1  ;;  %v1050_v33 = vpop.f32.mrf.mxu3  ;;  %v3290_v38 = vsel %vm733_vm2, %v779_v55, %v780_v52 }
  0xe4   : > { %v1207_v7 = vpop.f32.mrf.mxu0 }
  0xe5   : > { %v1146_v0 = vadd.f32 %v1050_v33, %v993_v51  ;;  %v641_v33 = vadd.f32 %v3169_v2, %v3091_v30 }
  0xe6   : > { %2246 = vmatmul.msk.f32.gmra.mxu1 %vm378_vm1, %v2941_v17 }
  0xe7   : > { %v3275_v1 = vadd.f32 %v1207_v7, %v1146_v0  ;;  %2274 = vmatmul.msk.f32.gmra.mxu2 %vm378_vm1, %v3271_v36  ;;  %2339 = vmatmul.msk.f32.gmra.mxu0 %vm378_vm1, %v2815_v31 }
  0xe8   : > { %2307 = vmatmul.msk.f32.gmra.mxu3 %vm378_vm1, %v2790_v11  ;;  %v644_v11 = vadd.f32 %v3189_v19, %v3111_v26  ;;  %v784_v26 = vrot.slane %v2857_v22, 2  ;;  %v647_v19 = vadd.f32 %v3210_v35, %v3132_v42  ;;  %v787_v42 = vrot.slane %v2904_v47, 2 }
  0xe9   : > { %v790_v47 = vrot.slane %v2643_v14, 2 }
  0xea   : > { %v900_v51 = vpop.f32.mrf.mxu2 }
  0xeb   : > { %v994_v15 = vadd.f32 %v900_v51, %v641_v33  ;;  %v3287_v0 = vpop.f32.mrf.mxu1  ;;  %v1053_v5 = vpop.f32.mrf.mxu3 }
  0xec   : > { %v1210_v7 = vpop.f32.mrf.mxu0 }
  0xed   : > { %v1147_v37 = vadd.f32 %v1053_v5, %v994_v15  ;;  %v3308_v15 = vsel %vm733_vm2, %v780_v52, %v782_v6 }
  0xee   : > { %2247 = vmatmul.msk.f32.gmra.mxu1 %vm378_vm1, %v2643_v14 }
  0xef   : > { %v3294_v39 = vadd.f32 %v1210_v7, %v1147_v37  ;;  %2275 = vmatmul.msk.f32.gmra.mxu2 %vm378_vm1, %v3290_v38  ;;  %2340 = vmatmul.msk.f32.gmra.mxu0 %vm378_vm1, %v2851_v62 }
  0xf0   : > { %2308 = vmatmul.msk.f32.gmra.mxu3 %vm378_vm1, %v2857_v22 }
  0xf2   : > { %v903_v30 = vpop.f32.mrf.mxu2 }
  0xf3   : > { %v995_v2 = vadd.f32 %v903_v30, %v644_v11  ;;  %v3305_v55 = vpop.f32.mrf.mxu1  ;;  %v1056_v33 = vpop.f32.mrf.mxu3 }
  0xf4   : > { %v1213_v51 = vpop.f32.mrf.mxu0 }
  0xf5   : > { %v1148_v5 = vadd.f32 %v1056_v33, %v995_v2  ;;  %v3327_v2 = vsel %vm733_vm2, %v784_v26, %v785_v44 }
  0xf6   : > { %2248 = vmatmul.msk.f32.gmra.mxu1 %vm378_vm1, %v2669_v24 }
  0xf7   : > { %v3312_v7 = vadd.f32 %v1213_v51, %v1148_v5  ;;  %2276 = vmatmul.msk.f32.gmra.mxu2 %vm378_vm1, %v3308_v15  ;;  %2341 = vmatmul.msk.f32.gmra.mxu0 %vm378_vm1, %v2894_v8 }
  0xf8   : > { %2309 = vmatmul.msk.f32.gmra.mxu3 %vm378_vm1, %v2865_v18  ;;  %v650_v18 = vadd.f32 %v3230_v53, %v3150_v16  ;;  %v789_v16 = vrot.slane %v2941_v17, 2  ;;  %v653_v53 = vadd.f32 %v3251_v4, %v3171_v43  ;;  %v656_v4 = vadd.f32 %v3268_v20, %v3191_v50  ;;  %v4293_v50 = vld [vmem:[#allocation8_spill] sm:$0xff] }
  0xf9   : > { %v794_v20 = vrot.slane %v2669_v24, 2 }
  0xfa   : > { %v906_v52 = vpop.f32.mrf.mxu2 }
  0xfb   : > { %v996_v37 = vadd.f32 %v906_v52, %v647_v19  ;;  %v3324_v6 = vpop.f32.mrf.mxu1  ;;  %v1059_v11 = vpop.f32.mrf.mxu3  ;;  %v3345_v52 = vsel %vm733_vm2, %v785_v44, %v787_v42 }
  0xfc   : > { %v1216_v30 = vpop.f32.mrf.mxu0 }
  0xfd   : > { %v1149_v33 = vadd.f32 %v1059_v11, %v996_v37  ;;  %v4285_v11 = vld [vmem:[#allocation13_spill] sm:$0xff] }
  0xfe   : > { %2249 = vmatmul.msk.f32.gmra.mxu1 %vm378_vm1, %v2672_v25 }
  0xff   : > { %v3331_v51 = vadd.f32 %v1216_v30, %v1149_v33  ;;  %2277 = vmatmul.msk.f32.gmra.mxu2 %vm378_vm1, %v3327_v2  ;;  %2342 = vmatmul.msk.f32.gmra.mxu0 %vm378_vm1, %v2932_v27 }
 0x100   : > { %2310 = vmatmul.msk.f32.gmra.mxu3 %vm378_vm1, %v2941_v17  ;;  %v4290_v17 = vld [vmem:[#allocation2_spill] sm:$0xff] }
 0x101   : > { %v792_v43 = vrot.slane %v4290_v17, 2 }
 0x102   : > { %v909_v22 = vpop.f32.mrf.mxu2 }
 0x103   : > { %v997_v35 = vadd.f32 %v909_v22, %v650_v18  ;;  %v3342_v5 = vpop.f32.mrf.mxu1  ;;  %v1062_v26 = vpop.f32.mrf.mxu3 }
 0x104   : > { %v1219_v19 = vpop.f32.mrf.mxu0 }
 0x105   : > { %v1150_v37 = vadd.f32 %v1062_v26, %v997_v35  ;;  %v3364_v35 = vsel %vm733_vm2, %v789_v16, %v790_v47 }
 0x106   : > { %2250 = vmatmul.msk.f32.gmra.mxu1 %vm378_vm1, %v4285_v11 }
 0x107   : > { %v3349_v30 = vadd.f32 %v1219_v19, %v1150_v37  ;;  %2278 = vmatmul.msk.f32.gmra.mxu2 %vm378_vm1, %v3345_v52  ;;  %2343 = vmatmul.msk.f32.gmra.mxu0 %vm378_vm1, %v2967_v10  ;;  %v4287_v19 = vld [vmem:[#allocation14_spill] sm:$0xff] }
 0x108   : > { %2311 = vmatmul.msk.f32.gmra.mxu3 %vm378_vm1, %v2643_v14  ;;  %v4289_v14 = vld [vmem:[#allocation5_spill] sm:$0xff] }
 0x109   : > { %4286 = vst [vmem:[#allocation13_spill] sm:$0xff] %v3349_v30  ;;  %v4291_v30 = vld [vmem:[#allocation20_spill] sm:$0xff] }
 0x10a   : > { %v912_v44 = vpop.f32.mrf.mxu2 }
 0x10b   : > { %v998_v33 = vadd.f32 %v912_v44, %v653_v53  ;;  %v3361_v42 = vpop.f32.mrf.mxu1  ;;  %v1065_v18 = vpop.f32.mrf.mxu3 }
 0x10c   : > { %v1222_v22 = vpop.f32.mrf.mxu0 }
 0x10d   : > { %v1151_v26 = vadd.f32 %v1065_v18, %v998_v33 }
 0x10e   : > { %2251 = vmatmul.msk.f32.gmra.mxu1 %vm378_vm1, %v4287_v19 }
 0x10f   : > { %v3368_v37 = vadd.f32 %v1222_v22, %v1151_v26  ;;  %2279 = vmatmul.msk.f32.gmra.mxu2 %vm378_vm1, %v3364_v35  ;;  %2344 = vmatmul.msk.f32.gmra.mxu0 %vm378_vm1, %v4289_v14  ;;  %v3382_v22 = vsel %vm733_vm2, %v790_v47, %v792_v43  ;;  %v795_v47 = vrot.slane %v2672_v25, 2  ;;  %v659_v43 = vadd.f32 %v3287_v0, %v3212_v59  ;;  %v2388_v59 = vld [vmem:[%s4158_s1 + $0x30] sm:$0xff]  ;;  %v4297_v0 = vld [vmem:[#allocation9_spill] sm:$0xff] }
 0x110   : > { %2312 = vmatmul.msk.f32.gmra.mxu3 %vm378_vm1, %v2669_v24  ;;  %1514 = vmatpush.msra.mxu2 %v2388_v59 }
 0x111   : > { %4288 = vst [vmem:[#allocation14_spill] sm:$0xff] %v3368_v37  ;;  %v2355_v37 = vld [vmem:[%s4158_s1 + $0x28] sm:$0xff] }
 0x112   : > { %v915_v16 = vpop.f32.mrf.mxu2  ;;  %1361 = vmatpush.msra.mxu1 %v2355_v37  ;;  %v797_v37 = vrot.slane %v4297_v0, 2  ;;  %v4298_v0 = vld [vmem:[#allocation28_spill] sm:$0xff] }
 0x113   : > { %v999_v53 = vadd.f32 %v915_v16, %v656_v4  ;;  %v3379_v44 = vpop.f32.mrf.mxu1  ;;  %v1068_v33 = vpop.f32.mrf.mxu3 }
 0x114   : > { %v1225_v18 = vpop.f32.mrf.mxu0 }
 0x115   : > { %v1152_v26 = vadd.f32 %v1068_v33, %v999_v53 }
 0x116   : > { %2252 = vmatmul.msk.f32.gmra.mxu1 %vm378_vm1, %v4291_v30 }
 0x117   : > { %v3389_v17 = vadd.f32 %v1225_v18, %v1152_v26  ;;  %2280 = vmatmul.msk.f32.gmra.mxu2 %vm378_vm1, %v3382_v22  ;;  %2345 = vmatmul.msk.f32.gmra.mxu0 %vm378_vm1, %v4293_v50  ;;  %v3404_v26 = vsel %vm733_vm2, %v794_v20, %v795_v47  ;;  %v4294_v50 = vld [vmem:[#allocation21_spill] sm:$0xff] }
 0x118   : > { %2313 = vmatmul.msk.f32.gmra.mxu3 %vm378_vm1, %v2672_v25  ;;  %v4296_v25 = vld [vmem:[#allocation12_spill] sm:$0xff] }
 0x119   : > { %4292 = vst [vmem:[#allocation5_spill] sm:$0xff] %v3389_v17 }
 0x11a   : > { %v918_v4 = vpop.f32.mrf.mxu2 }
 0x11b   : > { %v1000_v16 = vadd.f32 %v918_v4, %v659_v43  ;;  %v3401_v53 = vpop.f32.mrf.mxu1  ;;  %v1071_v33 = vpop.f32.mrf.mxu3 }
 0x11c   : > { %v1228_v18 = vpop.f32.mrf.mxu0 }
 0x11d   : > { %v1153_v17 = vadd.f32 %v1071_v33, %v1000_v16  ;;  %v2421_v33 = vld [vmem:[%s4158_s1 + $0x38] sm:$0xff] }
 0x11e   : > { %2253 = vmatmul.msk.f32.gmra.mxu1 %vm378_vm1, %v4294_v50  ;;  %1671 = vmatpush.msra.mxu3 %v2421_v33 }
 0x11f   : > { %v3408_v24 = vadd.f32 %v1228_v18, %v1153_v17  ;;  %2281 = vmatmul.msk.f32.gmra.mxu2 %vm378_vm1, %v3404_v26  ;;  %2346 = vmatmul.msk.f32.gmra.mxu0 %vm378_vm1, %v4296_v25  ;;  %v662_v17 = vadd.f32 %v3305_v55, %v3232_v21  ;;  %v4300_v21 = vld [vmem:[#allocation17_spill] sm:$0xff]  ;;  %v799_v55 = vrot.slane %v4285_v11, 2 }
 0x120   : > { %2314 = vmatmul.msk.f32.gmra.mxu3 %vm378_vm1, %v4285_v11 }
 0x121   : > { %4295 = vst [vmem:[#allocation2_spill] sm:$0xff] %v3408_v24  ;;  %v3428_v24 = vsel %vm733_vm2, %v795_v47, %v797_v37  ;;  %v800_v47 = vrot.slane %v4287_v19, 2  ;;  %v665_v37 = vadd.f32 %v3324_v6, %v3253_v32  ;;  %v4303_v32 = vld [vmem:[#allocation19_spill] sm:$0xff]  ;;  %v4304_v6 = vld [vmem:[#allocation18_spill] sm:$0xff] }
 0x122   : > { %v921_v20 = vpop.f32.mrf.mxu2 }
 0x123   : > { %v1001_v43 = vadd.f32 %v921_v20, %v662_v17  ;;  %v3422_v4 = vpop.f32.mrf.mxu1  ;;  %v1074_v16 = vpop.f32.mrf.mxu3 }
 0x124   : > { %v1231_v18 = vpop.f32.mrf.mxu0 }
 0x125   : > { %v1154_v25 = vadd.f32 %v1074_v16, %v1001_v43  ;;  %v2454_v16 = vld [vmem:[%s4158_s1 + $0x40] sm:$0xff] }
 0x126   : > { %2254 = vmatmul.msk.f32.gmra.mxu1 %vm378_vm1, %v4298_v0  ;;  %1827 = vmatpush.msra.mxu0 %v2454_v16 }
 0x127   : > { %v3432_v59 = vadd.f32 %v1231_v18, %v1154_v25  ;;  %2282 = vmatmul.msk.f32.gmra.mxu2 %vm378_vm1, %v3428_v24  ;;  %2347 = vmatmul.msk.f32.gmra.mxu0 %vm378_vm1, %v4300_v21  ;;  %v3450_v18 = vsel %vm733_vm2, %v799_v55, %v800_v47  ;;  %v668_v55 = vadd.f32 %v3342_v5, %v3068_v9  ;;  %v804_v9 = vrot.slane %v4291_v30, 2 }
 0x128   : > { %2315 = vmatmul.msk.f32.gmra.mxu3 %vm378_vm1, %v4287_v19  ;;  %v805_v5 = vrot.slane %v4294_v50, 2 }
 0x129   : > { %4299 = vst [vmem:[#allocation20_spill] sm:$0xff] %v3432_v59  ;;  %v4301_v59 = vld [vmem:[#allocation29_spill] sm:$0xff] }
 0x12a   : > { %v924_v17 = vpop.f32.mrf.mxu2 }
 0x12b   : > { %v1002_v20 = vadd.f32 %v924_v17, %v665_v37  ;;  %v3444_v25 = vpop.f32.mrf.mxu1  ;;  %v1077_v43 = vpop.f32.mrf.mxu3  ;;  %v802_v37 = vrot.slane %v4304_v6, 2  ;;  %v4306_v6 = vld [vmem:[#allocation22_spill] sm:$0xff] }
 0x12c   : > { %v1234_v33 = vpop.f32.mrf.mxu0 }
 0x12d   : > { %v1155_v11 = vadd.f32 %v1077_v43, %v1002_v20 }
 0x12e   : > { %2255 = vmatmul.msk.f32.gmra.mxu1 %vm378_vm1, %v4301_v59 }
 0x12f   : > { %v3454_v19 = vadd.f32 %v1234_v33, %v1155_v11  ;;  %2283 = vmatmul.msk.f32.gmra.mxu2 %vm378_vm1, %v3450_v18  ;;  %2348 = vmatmul.msk.f32.gmra.mxu0 %vm378_vm1, %v4303_v32  ;;  %v3468_v11 = vsel %vm733_vm2, %v800_v47, %v802_v37  ;;  %v671_v47 = vadd.f32 %v3361_v42, %v3087_v54  ;;  %v4309_v54 = vld [vmem:[#allocation25_spill] sm:$0xff] }
 0x130   : > { %2316 = vmatmul.msk.f32.gmra.mxu3 %vm378_vm1, %v4291_v30  ;;  %v4308_v30 = vld [vmem:[#allocation27_spill] sm:$0xff]  ;;  %v807_v42 = vrot.slane %v4309_v54, 2  ;;  %v677_v54 = vadd.f32 %v3401_v53, %v3128_v58  ;;  %v812_v53 = vrot.slane %v2952_v23, 2 }
 0x131   : > { %4302 = vst [vmem:[#allocation21_spill] sm:$0xff] %v3454_v19 }
 0x132   : > { %v927_v17 = vpop.f32.mrf.mxu2 }
 0x133   : > { %v1003_v20 = vadd.f32 %v927_v17, %v668_v55  ;;  %v3465_v43 = vpop.f32.mrf.mxu1  ;;  %v1080_v16 = vpop.f32.mrf.mxu3 }
 0x134   : > { %v1237_v33 = vpop.f32.mrf.mxu0 }
 0x135   : > { %v1156_v19 = vadd.f32 %v1080_v16, %v1003_v20  ;;  %v3487_v20 = vsel %vm733_vm2, %v804_v9, %v805_v5 }
 0x136   : > { %2356 = vmatmul.msk.f32.vlgmr.msra.gmra.mxu1 %vm378_vm1, %v3007_v61 }
 0x137   : > { %v3472_v32 = vadd.f32 %v1237_v33, %v1156_v19  ;;  %2284 = vmatmul.msk.f32.gmra.mxu2 %vm378_vm1, %v3468_v11  ;;  %2349 = vmatmul.msk.f32.gmra.mxu0 %vm378_vm1, %v4306_v6 }
 0x138   : > { %2317 = vmatmul.msk.f32.gmra.mxu3 %vm378_vm1, %v4294_v50  ;;  %v674_v50 = vadd.f32 %v3379_v44, %v3107_v29  ;;  %v4311_v29 = vld [vmem:[#allocation31_spill] sm:$0xff]  ;;  %v809_v44 = vrot.slane %v4298_v0, 2 }
 0x139   : > { %4305 = vst [vmem:[#allocation9_spill] sm:$0xff] %v3472_v32  ;;  %v3527_v32 = vld [vmem:[%s2616_s23 + $0x180] sm:$0xff] }
 0x13a   : > { %v930_v37 = vpop.f32.mrf.mxu2  ;;  %v1179_v58 = vrot.slane %v3527_v32, 1 }
 0x13b   : > { %v1004_v61 = vadd.f32 %v930_v37, %v671_v47  ;;  %v3484_v19 = vpop.f32.mrf.mxu1  ;;  %v1083_v55 = vpop.f32.mrf.mxu3 }
 0x13c   : > { %v1240_v17 = vpop.f32.mrf.mxu0 }
 0x13d   : > { %v1157_v16 = vadd.f32 %v1083_v55, %v1004_v61  ;;  %v3505_v55 = vsel %vm733_vm2, %v805_v5, %v807_v42  ;;  %v810_v5 = vrot.slane %v4301_v59, 2 }
 0x13e   : > { %2357 = vmatmul.msk.f32.gmra.mxu1 %vm378_vm1, %v3019_v40 }
 0x13f   : > { %v3491_v33 = vadd.f32 %v1240_v17, %v1157_v16  ;;  %2285 = vmatmul.msk.f32.gmra.mxu2 %vm378_vm1, %v3487_v20  ;;  %2350 = vmatmul.msk.f32.gmra.mxu0 %vm378_vm1, %v4308_v30 }
 0x140   : > { %2318 = vmatmul.msk.f32.gmra.mxu3 %vm378_vm1, %v4298_v0 }
 0x141   : > { %4307 = vst [vmem:[#allocation28_spill] sm:$0xff] %v3491_v33  ;;  %v3530_v33 = vld [vmem:[%s2616_s23 + $0x188] sm:$0xff] }
 0x142   : > { %v933_v9 = vpop.f32.mrf.mxu2 }
 0x143   : > { %v1005_v47 = vadd.f32 %v933_v9, %v674_v50  ;;  %v3502_v37 = vpop.f32.mrf.mxu1  ;;  %v1086_v40 = vpop.f32.mrf.mxu3 }
 0x144   : > { %v1243_v61 = vpop.f32.mrf.mxu0 }
 0x145   : > { %v1158_v17 = vadd.f32 %v1086_v40, %v1005_v47 }
 0x146   : > { %2358 = vmatmul.msk.f32.gmra.mxu1 %vm378_vm1, %v3032_v56 }
 0x147   : > { %v3509_v16 = vadd.f32 %v1243_v61, %v1158_v17  ;;  %2286 = vmatmul.msk.f32.gmra.mxu2 %vm378_vm1, %v3505_v55  ;;  %2351 = vmatmul.msk.f32.gmra.mxu0 %vm378_vm1, %v4311_v29  ;;  %v3524_v61 = vsel %vm733_vm2, %v809_v44, %v810_v5  ;;  %v680_v44 = vadd.f32 %v3422_v4, %v3085_v49 }
 0x148   : > { %2319 = vmatmul.msk.f32.gmra.mxu3 %vm378_vm1, %v4301_v59  ;;  %v1180_v59 = vrot.slane %v3530_v33, 1  ;;  %v683_v4 = vadd.f32 %v3444_v25, %v3105_v48  ;;  %v686_v48 = vadd.f32 %v3465_v43, %v3126_v60 }
 0x149   : > { %4310 = vst [vmem:[#allocation17_spill] sm:$0xff] %v3509_v16 }
 0x14a   : > { %v936_v42 = vpop.f32.mrf.mxu2  ;;  %v3553_v16 = vsel %vm295_vm0, %v1179_v58, %v1180_v59 }
 0x14b   : > { %v1006_v50 = vadd.f32 %v936_v42, %v677_v54  ;;  %v3521_v9 = vpop.f32.mrf.mxu1  ;;  %v1089_v47 = vpop.f32.mrf.mxu3 }
 0x14c   : > { %v1246_v40 = vpop.f32.mrf.mxu0 }
 0x14d   : > { %v1159_v17 = vadd.f32 %v1089_v47, %v1006_v50 }
 0x14e   : > { %2359 = vmatmul.msk.f32.gmra.mxu1 %vm378_vm1, %v3044_v28 }
 0x14f   : > { %v3534_v0 = vadd.f32 %v1246_v40, %v1159_v17  ;;  %2287 = vmatmul.msk.f32.gmra.mxu2 %vm378_vm1, %v3524_v61  ;;  %2352 = vmatmul.msk.f32.gmra.mxu0 %vm378_vm1, %v2973_v57  ;;  %v3550_v17 = vsel %vm733_vm2, %v810_v5, %v812_v53  ;;  %v3556_v57 = vld [vmem:[%s2616_s23 + $0x190] sm:$0x3] }
 0x150   : > { %2320 = vmatmul.msk.f32.gmra.mxu3 %vm378_vm1, %v3527_v32  ;;  %v1182_v49 = vrot.slane %v3556_v57, 1 }
 0x151   : > { %4312 = vst [vmem:[#allocation29_spill] sm:$0xff] %v3534_v0 }
 0x152   : > { %v939_v54 = vpop.f32.mrf.mxu2 }
 0x153   : > { %v1007_v42 = vadd.f32 %v939_v54, %v680_v44  ;;  %v3547_v50 = vpop.f32.mrf.mxu1  ;;  %v1092_v47 = vpop.f32.mrf.mxu3  ;;  %v3574_v54 = vsel %vm295_vm0, %v1180_v59, %v1182_v49 }
 0x154   : > { %v1249_v40 = vpop.f32.mrf.mxu0 }
 0x155   : > { %v1160_v0 = vadd.f32 %v1092_v47, %v1007_v42 }
 0x156   : > { %2360 = vmatmul.msk.f32.gmra.mxu1 %vm378_vm1, %v3057_v45 }
 0x157   : > { %v3560_v23 = vadd.f32 %v1249_v40, %v1160_v0  ;;  %2288 = vmatmul.msk.f32.gmra.mxu2 %vm378_vm1, %v3550_v17  ;;  %2353 = vmatmul.msk.f32.gmra.mxu0 %vm378_vm1, %v3553_v16 }
 0x158   : > { %2321 = vmatmul.msk.f32.gmra.mxu3 %vm378_vm1, %v3530_v33 }
 0x15a   : > { %v942_v5 = vpop.f32.mrf.mxu2 }
 0x15b   : > { %v1008_v58 = vadd.f32 %v942_v5, %v683_v4  ;;  %v3571_v53 = vpop.f32.mrf.mxu1  ;;  %v1095_v0 = vpop.f32.mrf.mxu3 }
 0x15c   : > { %v1252_v44 = vpop.f32.mrf.mxu0 }
 0x15d   : > { %v1161_v42 = vadd.f32 %v1095_v0, %v1008_v58 }
 0x15e   : > { %2361 = vmatmul.msk.f32.gmra.mxu1 %vm378_vm1, %v3073_v41 }
 0x15f   : > { %v3578_v47 = vadd.f32 %v1252_v44, %v1161_v42  ;;  %2389 = vmatmul.msk.f32.vlgmr.msra.gmra.mxu2 %vm378_vm1, %v2793_v12  ;;  %2354 = vmatmul.msk.f32.gmra.mxu0 %vm378_vm1, %v3574_v54 }
 0x160   : > { %2422 = vmatmul.msk.f32.vlgmr.msra.gmra.mxu3 %vm378_vm1, %v2818_v34  ;;  %v689_v34 = vadd.f32 %v3484_v19, %v3146_v3 }
 0x162   : > { %v945_v25 = vpop.f32.mrf.mxu2 }
 0x163   : > { %v1009_v59 = vadd.f32 %v945_v25, %v686_v48  ;;  %v3588_v40 = vpop.f32.mrf.mxu1  ;;  %v1098_v49 = vpop.f32.mrf.mxu3  ;;  %v4313_v48 = vld [vmem:[#allocation39_spill] sm:$0xff] }
 0x164   : > { %v1255_v4 = vpop.f32.mrf.mxu0  ;;  %v4314_v25 = vld [vmem:[#allocation23_spill] sm:$0xff] }
 0x165   : > { %v1162_v5 = vadd.f32 %v1098_v49, %v1009_v59 }
 0x166   : > { %2362 = vmatmul.msk.f32.gmra.mxu1 %vm378_vm1, %v3094_v46 }
 0x167   : > { %v3592_v12 = vadd.f32 %v1255_v4, %v1162_v5  ;;  %2390 = vmatmul.msk.f32.gmra.mxu2 %vm378_vm1, %v2796_v13  ;;  %2455 = vmatmul.msk.f32.vlgmr.msra.gmra.mxu0 %vm378_vm1, %v3032_v56  ;;  %v4316_v56 = vld [vmem:[#allocation44_spill] sm:$0xff] }
 0x168   : > { %2423 = vmatmul.msk.f32.gmra.mxu3 %vm378_vm1, %v2854_v63  ;;  %v4315_v63 = vld [vmem:[#allocation26_spill] sm:$0xff]  ;;  %v692_v3 = vadd.f32 %v3502_v37, %v4316_v56  ;;  %v4320_v37 = vld [vmem:[#allocation47_spill] sm:$0xff] }
 0x16a   : > { %v948_v60 = vpop.f32.mrf.mxu2 }
 0x16b   : > { %v1010_v43 = vadd.f32 %v948_v60, %v689_v34  ;;  %v3602_v58 = vpop.f32.mrf.mxu1  ;;  %v1101_v0 = vpop.f32.mrf.mxu3  ;;  %v4317_v60 = vld [vmem:[#allocation41_spill] sm:$0xff] }
 0x16c   : > { %v1258_v44 = vpop.f32.mrf.mxu0 }
 0x16d   : > { %v1163_v42 = vadd.f32 %v1101_v0, %v1010_v43  ;;  %v4318_v0 = vld [vmem:[#allocation24_spill] sm:$0xff] }
 0x16e   : > { %2363 = vmatmul.msk.f32.gmra.mxu1 %vm378_vm1, %v4313_v48 }
 0x16f   : > { %v3606_v13 = vadd.f32 %v1258_v44, %v1163_v42  ;;  %2391 = vmatmul.msk.f32.gmra.mxu2 %vm378_vm1, %v4314_v25  ;;  %2456 = vmatmul.msk.f32.gmra.mxu0 %vm378_vm1, %v3044_v28  ;;  %v4319_v28 = vld [vmem:[#allocation30_spill] sm:$0xff]  ;;  %v695_v44 = vadd.f32 %v3521_v9, %v4320_v37 }
 0x170   : > { %2424 = vmatmul.msk.f32.gmra.mxu3 %vm378_vm1, %v4315_v63  ;;  %v4324_v9 = vld [vmem:[#allocation50_spill] sm:$0xff] }
 0x172   : > { %v951_v19 = vpop.f32.mrf.mxu2 }
 0x173   : > { %v1011_v59 = vadd.f32 %v951_v19, %v692_v3  ;;  %v3616_v49 = vpop.f32.mrf.mxu1  ;;  %v1104_v4 = vpop.f32.mrf.mxu3 }
 0x174   : > { %v1261_v5 = vpop.f32.mrf.mxu0 }
 0x175   : > { %v1164_v34 = vadd.f32 %v1104_v4, %v1011_v59  ;;  %v4321_v59 = vld [vmem:[#allocation43_spill] sm:$0xff] }
 0x176   : > { %2364 = vmatmul.msk.f32.gmra.mxu1 %vm378_vm1, %v4317_v60 }
 0x177   : > { %v3620_v43 = vadd.f32 %v1261_v5, %v1164_v34  ;;  %2392 = vmatmul.msk.f32.gmra.mxu2 %vm378_vm1, %v4318_v0  ;;  %2457 = vmatmul.msk.f32.gmra.mxu0 %vm378_vm1, %v3057_v45  ;;  %v4322_v5 = vld [vmem:[#allocation32_spill] sm:$0xff]  ;;  %v4323_v45 = vld [vmem:[#allocation34_spill] sm:$0xff]  ;;  %v698_v34 = vadd.f32 %v3547_v50, %v4324_v9 }
 0x178   : > { %2425 = vmatmul.msk.f32.gmra.mxu3 %vm378_vm1, %v4319_v28  ;;  %v4327_v50 = vld [vmem:[#allocation36_spill] sm:$0xff] }
 0x17a   : > { %v954_v42 = vpop.f32.mrf.mxu2 }
 0x17b   : > { %v1012_v25 = vadd.f32 %v954_v42, %v695_v44  ;;  %v3630_v63 = vpop.f32.mrf.mxu1  ;;  %v1107_v56 = vpop.f32.mrf.mxu3 }
 0x17c   : > { %v1264_v3 = vpop.f32.mrf.mxu0 }
 0x17d   : > { %v1165_v19 = vadd.f32 %v1107_v56, %v1012_v25  ;;  %v4325_v56 = vld [vmem:[#allocation46_spill] sm:$0xff] }
 0x17e   : > { %2365 = vmatmul.msk.f32.gmra.mxu1 %vm378_vm1, %v4321_v59 }
 0x17f   : > { %v3634_v4 = vadd.f32 %v1264_v3, %v1165_v19  ;;  %2393 = vmatmul.msk.f32.gmra.mxu2 %vm378_vm1, %v4322_v5  ;;  %2458 = vmatmul.msk.f32.gmra.mxu0 %vm378_vm1, %v3073_v41  ;;  %v4326_v41 = vld [vmem:[#allocation33_spill] sm:$0xff] }
 0x180   : > { %2426 = vmatmul.msk.f32.gmra.mxu3 %vm378_vm1, %v4323_v45  ;;  %v4328_v19 = vld [vmem:[#allocation53_spill] sm:$0xff] }
 0x181   : > { %v701_v5 = vadd.f32 %v3571_v53, %v4328_v19  ;;  %v4331_v53 = vld [vmem:[#allocation3_spill] sm:$0xff] }
 0x182   : > { %v957_v0 = vpop.f32.mrf.mxu2 }
 0x183   : > { %v1013_v28 = vadd.f32 %v957_v0, %v698_v34  ;;  %v3644_v37 = vpop.f32.mrf.mxu1  ;;  %v1110_v44 = vpop.f32.mrf.mxu3 }
 0x184   : > { %v1267_v42 = vpop.f32.mrf.mxu0 }
 0x185   : > { %v1166_v25 = vadd.f32 %v1110_v44, %v1013_v28 }
 0x186   : > { %2366 = vmatmul.msk.f32.gmra.mxu1 %vm378_vm1, %v4325_v56 }
 0x187   : > { %v3648_v3 = vadd.f32 %v1267_v42, %v1166_v25  ;;  %2394 = vmatmul.msk.f32.gmra.mxu2 %vm378_vm1, %v4326_v41  ;;  %2459 = vmatmul.msk.f32.gmra.mxu0 %vm378_vm1, %v3094_v46  ;;  %v4329_v42 = vld [vmem:[#allocation49_spill] sm:$0xff]  ;;  %v4332_v41 = vld [vmem:[#allocation56_spill] sm:$0xff] }
 0x188   : > { %2427 = vmatmul.msk.f32.gmra.mxu3 %vm378_vm1, %v4327_v50  ;;  %v2519_v46 = vld [vmem:[%s2616_s23 + $0x78] sm:$0xff]  ;;  %v704_v50 = vadd.f32 %v3588_v40, %v4332_v41  ;;  %v4335_v40 = vld [vmem:[#allocation6_spill] sm:$0xff] }
 0x18a   : > { %v960_v45 = vpop.f32.mrf.mxu2 }
 0x18b   : > { %v1014_v9 = vadd.f32 %v960_v45, %v701_v5  ;;  %v3658_v34 = vpop.f32.mrf.mxu1  ;;  %v1113_v0 = vpop.f32.mrf.mxu3 }
 0x18c   : > { %v1270_v28 = vpop.f32.mrf.mxu0 }
 0x18d   : > { %v1167_v44 = vadd.f32 %v1113_v0, %v1014_v9 }
 0x18e   : > { %2367 = vmatmul.msk.f32.gmra.mxu1 %vm378_vm1, %v4329_v42 }
 0x18f   : > { %v3662_v25 = vadd.f32 %v1270_v28, %v1167_v44  ;;  %2395 = vmatmul.msk.f32.gmra.mxu2 %vm378_vm1, %v2519_v46  ;;  %2460 = vmatmul.msk.f32.gmra.mxu0 %vm378_vm1, %v4313_v48  ;;  %v4333_v44 = vld [vmem:[#allocation52_spill] sm:$0xff]  ;;  %v2520_v48 = vld [vmem:[%s2616_s23 + $0x80] sm:$0xff] }
 0x190   : > { %2428 = vmatmul.msk.f32.gmra.mxu3 %vm378_vm1, %v4331_v53  ;;  %v4336_v53 = vld [vmem:[#allocation37_spill] sm:$0xff] }
 0x191   : > { %4330 = vst [vmem:[#allocation18_spill] sm:$0xff] %v3662_v25  ;;  %v707_v41 = vadd.f32 %v3602_v58, %v4336_v53  ;;  %v4339_v58 = vld [vmem:[#allocation10_spill] sm:$0xff] }
 0x192   : > { %v963_v19 = vpop.f32.mrf.mxu2 }
 0x193   : > { %v1015_v5 = vadd.f32 %v963_v19, %v704_v50  ;;  %v3672_v45 = vpop.f32.mrf.mxu1  ;;  %v1116_v9 = vpop.f32.mrf.mxu3 }
 0x194   : > { %v1273_v0 = vpop.f32.mrf.mxu0 }
 0x195   : > { %v1168_v28 = vadd.f32 %v1116_v9, %v1015_v5 }
 0x196   : > { %2368 = vmatmul.msk.f32.gmra.mxu1 %vm378_vm1, %v4333_v44 }
 0x197   : > { %v3676_v46 = vadd.f32 %v1273_v0, %v1168_v28  ;;  %2396 = vmatmul.msk.f32.gmra.mxu2 %vm378_vm1, %v2520_v48  ;;  %2461 = vmatmul.msk.f32.gmra.mxu0 %vm378_vm1, %v4317_v60  ;;  %v4337_v28 = vld [vmem:[#allocation55_spill] sm:$0xff]  ;;  %v2521_v60 = vld [vmem:[%s2616_s23 + $0x90] sm:$0xff] }
 0x198   : > { %2429 = vmatmul.msk.f32.gmra.mxu3 %vm378_vm1, %v4335_v40  ;;  %v4340_v40 = vld [vmem:[#allocation38_spill] sm:$0xff] }
 0x199   : > { %4334 = vst [vmem:[#allocation22_spill] sm:$0xff] %v3676_v46  ;;  %v710_v53 = vadd.f32 %v3616_v49, %v4340_v40  ;;  %v4342_v49 = vld [vmem:[#allocation15_spill] sm:$0xff] }
 0x19a   : > { %v966_v50 = vpop.f32.mrf.mxu2 }
 0x19b   : > { %v1016_v19 = vadd.f32 %v966_v50, %v707_v41  ;;  %v3686_v5 = vpop.f32.mrf.mxu1  ;;  %v1119_v9 = vpop.f32.mrf.mxu3 }
 0x19c   : > { %v1276_v25 = vpop.f32.mrf.mxu0 }
 0x19d   : > { %v1169_v0 = vadd.f32 %v1119_v9, %v1016_v19 }
 0x19e   : > { %2369 = vmatmul.msk.f32.gmra.mxu1 %vm378_vm1, %v4337_v28 }
 0x19f   : > { %v3690_v48 = vadd.f32 %v1276_v25, %v1169_v0  ;;  %2397 = vmatmul.msk.f32.gmra.mxu2 %vm378_vm1, %v2521_v60  ;;  %2462 = vmatmul.msk.f32.gmra.mxu0 %vm378_vm1, %v4321_v59  ;;  %v4341_v0 = vld [vmem:[#allocation58_spill] sm:$0xff]  ;;  %v2522_v59 = vld [vmem:[%s2616_s23 + $0x98] sm:$0xff] }
 0x1a0   : > { %2430 = vmatmul.msk.f32.gmra.mxu3 %vm378_vm1, %v4339_v58  ;;  %v4343_v58 = vld [vmem:[#allocation40_spill] sm:$0xff] }
 0x1a1   : > { %4338 = vst [vmem:[#allocation27_spill] sm:$0xff] %v3690_v48  ;;  %v713_v40 = vadd.f32 %v3630_v63, %v4343_v58  ;;  %v4345_v63 = vld [vmem:[#allocation4_spill] sm:$0xff] }
 0x1a2   : > { %v969_v41 = vpop.f32.mrf.mxu2 }
 0x1a3   : > { %v1017_v50 = vadd.f32 %v969_v41, %v710_v53  ;;  %v3700_v19 = vpop.f32.mrf.mxu1  ;;  %v1122_v9 = vpop.f32.mrf.mxu3 }
 0x1a4   : > { %v1279_v46 = vpop.f32.mrf.mxu0 }
 0x1a5   : > { %v1170_v25 = vadd.f32 %v1122_v9, %v1017_v50 }
 0x1a6   : > { %2370 = vmatmul.msk.f32.gmra.mxu1 %vm378_vm1, %v4341_v0 }
 0x1a7   : > { %v3704_v60 = vadd.f32 %v1279_v46, %v1170_v25  ;;  %2398 = vmatmul.msk.f32.gmra.mxu2 %vm378_vm1, %v2522_v59  ;;  %2463 = vmatmul.msk.f32.gmra.mxu0 %vm378_vm1, %v4325_v56  ;;  %v2523_v56 = vld [vmem:[%s2616_s23 + $0xa8] sm:$0xff]  ;;  %v4346_v59 = vld [vmem:[#allocation42_spill] sm:$0xff] }
 0x1a8   : > { %2431 = vmatmul.msk.f32.gmra.mxu3 %vm378_vm1, %v4342_v49  ;;  %v716_v49 = vadd.f32 %v3644_v37, %v4346_v59  ;;  %v4348_v37 = vld [vmem:[#allocation7_spill] sm:$0xff] }
 0x1aa   : > { %v972_v53 = vpop.f32.mrf.mxu2 }
 0x1ab   : > { %v1018_v41 = vadd.f32 %v972_v53, %v713_v40  ;;  %v3714_v50 = vpop.f32.mrf.mxu1  ;;  %v1125_v9 = vpop.f32.mrf.mxu3 }
 0x1ac   : > { %v1282_v48 = vpop.f32.mrf.mxu0 }
 0x1ad   : > { %v1171_v46 = vadd.f32 %v1125_v9, %v1018_v41 }
 0x1ae   : > { %2371 = vmatmul.msk.f32.gmra.mxu1 %vm378_vm1, %v3271_v36 }
 0x1af   : > { %v3718_v25 = vadd.f32 %v1282_v48, %v1171_v46  ;;  %2399 = vmatmul.msk.f32.gmra.mxu2 %vm378_vm1, %v2523_v56  ;;  %2464 = vmatmul.msk.f32.gmra.mxu0 %vm378_vm1, %v4329_v42  ;;  %v2524_v42 = vld [vmem:[%s2616_s23 + $0xb0] sm:$0xff]  ;;  %v4349_v56 = vld [vmem:[#allocation45_spill] sm:$0xff] }
 0x1b0   : > { %2432 = vmatmul.msk.f32.gmra.mxu3 %vm378_vm1, %v4345_v63  ;;  %v719_v63 = vadd.f32 %v3658_v34, %v4349_v56  ;;  %v4350_v34 = vld [vmem:[#allocation11_spill] sm:$0xff] }
 0x1b1   : > { %4344 = vst [vmem:[#allocation25_spill] sm:$0xff] %v3718_v25 }
 0x1b2   : > { %v975_v58 = vpop.f32.mrf.mxu2 }
 0x1b3   : > { %v1019_v40 = vadd.f32 %v975_v58, %v716_v49  ;;  %v1128_v53 = vpop.f32.mrf.mxu3  ;;  %v3728_v41 = vpop.f32.mrf.mxu1 }
 0x1b4   : > { %v1285_v9 = vpop.f32.mrf.mxu0 }
 0x1b5   : > { %v1172_v48 = vadd.f32 %v1128_v53, %v1019_v40 }
 0x1b6   : > { %2372 = vmatmul.msk.f32.gmra.mxu1 %vm378_vm1, %v3290_v38 }
 0x1b7   : > { %v3732_v46 = vadd.f32 %v1285_v9, %v1172_v48  ;;  %2400 = vmatmul.msk.f32.gmra.mxu2 %vm378_vm1, %v2524_v42  ;;  %2465 = vmatmul.msk.f32.gmra.mxu0 %vm378_vm1, %v4333_v44  ;;  %v2525_v44 = vld [vmem:[%s2616_s23 + $0xc0] sm:$0xff]  ;;  %v4351_v42 = vld [vmem:[#allocation48_spill] sm:$0xff] }
 0x1b8   : > { %2433 = vmatmul.msk.f32.gmra.mxu3 %vm378_vm1, %v4348_v37  ;;  %v722_v37 = vadd.f32 %v3672_v45, %v4351_v42  ;;  %v4352_v45 = vld [vmem:[#allocation16_spill] sm:$0xff] }
 0x1b9   : > { %4347 = vst [vmem:[#allocation31_spill] sm:$0xff] %v3732_v46 }
 0x1ba   : > { %v978_v59 = vpop.f32.mrf.mxu2 }
 0x1bb   : > { %v1020_v49 = vadd.f32 %v978_v59, %v719_v63  ;;  %v1131_v58 = vpop.f32.mrf.mxu3  ;;  %v3742_v40 = vpop.f32.mrf.mxu1 }
 0x1bc   : > { %v1288_v53 = vpop.f32.mrf.mxu0 }
 0x1bd   : > { %v1173_v9 = vadd.f32 %v1131_v58, %v1020_v49 }
 0x1be   : > { %2373 = vmatmul.msk.f32.gmra.mxu1 %vm378_vm1, %v3308_v15 }
 0x1bf   : > { %v3746_v48 = vadd.f32 %v1288_v53, %v1173_v9  ;;  %2401 = vmatmul.msk.f32.gmra.mxu2 %vm378_vm1, %v2525_v44  ;;  %2466 = vmatmul.msk.f32.gmra.mxu0 %vm378_vm1, %v4337_v28  ;;  %v2526_v28 = vld [vmem:[%s2616_s23 + $0xc8] sm:$0xff] }
 0x1c0   : > { %2434 = vmatmul.msk.f32.gmra.mxu3 %vm378_vm1, %v4350_v34  ;;  %v4353_v44 = vld [vmem:[#allocation51_spill] sm:$0xff] }
 0x1c1   : > { %v725_v34 = vadd.f32 %v3686_v5, %v4353_v44  ;;  %v4354_v5 = vld [vmem:[#allocation54_spill] sm:$0xff] }
 0x1c2   : > { %v981_v56 = vpop.f32.mrf.mxu2 }
 0x1c3   : > { %v1021_v63 = vadd.f32 %v981_v56, %v722_v37  ;;  %v1134_v59 = vpop.f32.mrf.mxu3  ;;  %v3756_v49 = vpop.f32.mrf.mxu1 }
 0x1c4   : > { %v1291_v58 = vpop.f32.mrf.mxu0 }
 0x1c5   : > { %v1174_v53 = vadd.f32 %v1134_v59, %v1021_v63 }
 0x1c6   : > { %2374 = vmatmul.msk.f32.gmra.mxu1 %vm378_vm1, %v3327_v2 }
 0x1c7   : > { %v3760_v9 = vadd.f32 %v1291_v58, %v1174_v53  ;;  %2402 = vmatmul.msk.f32.gmra.mxu2 %vm378_vm1, %v2526_v28  ;;  %2467 = vmatmul.msk.f32.gmra.mxu0 %vm378_vm1, %v4341_v0  ;;  %v2527_v0 = vld [vmem:[%s2616_s23 + $0xd8] sm:$0xff]  ;;  %v728_v28 = vadd.f32 %v3700_v19, %v4354_v5 }
 0x1c8   : > { %2435 = vmatmul.msk.f32.gmra.mxu3 %vm378_vm1, %v4352_v45 }
 0x1ca   : > { %v984_v42 = vpop.f32.mrf.mxu2 }
 0x1cb   : > { %v1022_v37 = vadd.f32 %v984_v42, %v725_v34  ;;  %v1137_v56 = vpop.f32.mrf.mxu3  ;;  %v3770_v63 = vpop.f32.mrf.mxu1 }
 0x1cc   : > { %v1294_v59 = vpop.f32.mrf.mxu0 }
 0x1cd   : > { %v1175_v58 = vadd.f32 %v1137_v56, %v1022_v37 }
 0x1ce   : > { %2375 = vmatmul.msk.f32.gmra.mxu1 %vm378_vm1, %v3345_v52 }
 0x1cf   : > { %v3774_v53 = vadd.f32 %v1294_v59, %v1175_v58  ;;  %2403 = vmatmul.msk.f32.gmra.mxu2 %vm378_vm1, %v2527_v0  ;;  %2468 = vmatmul.msk.f32.gmra.mxu0 %vm378_vm1, %v3271_v36  ;;  %v2528_v36 = vld [vmem:[%s2616_s23 + $0xe0] sm:$0xff] }
 0x1d0   : > { %2436 = vmatmul.msk.f32.gmra.mxu3 %vm378_vm1, %v2815_v31  ;;  %v4355_v31 = vld [vmem:[#allocation57_spill] sm:$0xff] }
 0x1d1   : > { %v731_v19 = vadd.f32 %v3714_v50, %v4355_v31 }
 0x1d2   : > { %v987_v45 = vpop.f32.mrf.mxu2 }
 0x1d3   : > { %v1023_v44 = vadd.f32 %v987_v45, %v728_v28  ;;  %v1140_v34 = vpop.f32.mrf.mxu3  ;;  %v3784_v42 = vpop.f32.mrf.mxu1 }
 0x1d4   : > { %v1297_v37 = vpop.f32.mrf.mxu0 }
 0x1d5   : > { %v1176_v56 = vadd.f32 %v1140_v34, %v1023_v44 }
 0x1d6   : > { %2376 = vmatmul.msk.f32.gmra.mxu1 %vm378_vm1, %v3364_v35 }
 0x1d7   : > { %v3788_v59 = vadd.f32 %v1297_v37, %v1176_v56  ;;  %2404 = vmatmul.msk.f32.gmra.mxu2 %vm378_vm1, %v2528_v36  ;;  %2469 = vmatmul.msk.f32.gmra.mxu0 %vm378_vm1, %v3290_v38  ;;  %v2529_v38 = vld [vmem:[%s2616_s23 + $0xf0] sm:$0xff] }
 0x1d8   : > { %2437 = vmatmul.msk.f32.gmra.mxu3 %vm378_vm1, %v2851_v62  ;;  %v1459_v62 = vadd.f32 %v3728_v41, %v3275_v1  ;;  %v1460_v1 = vadd.f32 %v3742_v40, %v3294_v39 }
 0x1da   : > { %v990_v58 = vpop.f32.mrf.mxu2 }
 0x1db   : > { %v1024_v0 = vadd.f32 %v990_v58, %v731_v19  ;;  %v1143_v5 = vpop.f32.mrf.mxu3  ;;  %v3798_v28 = vpop.f32.mrf.mxu1 }
 0x1dc   : > { %v1300_v45 = vpop.f32.mrf.mxu0 }
 0x1dd   : > { %v1177_v44 = vadd.f32 %v1143_v5, %v1024_v0 }
 0x1de   : > { %2377 = vmatmul.msk.f32.gmra.mxu1 %vm378_vm1, %v3382_v22 }
 0x1df   : > { %v3802_v34 = vadd.f32 %v1300_v45, %v1177_v44  ;;  %2405 = vmatmul.msk.f32.gmra.mxu2 %vm378_vm1, %v2529_v38  ;;  %2470 = vmatmul.msk.f32.gmra.mxu0 %vm378_vm1, %v3308_v15  ;;  %v2530_v15 = vld [vmem:[%s2616_s23 + $0xf8] sm:$0xff] }
 0x1e0   : > { %2438 = vmatmul.msk.f32.gmra.mxu3 %vm378_vm1, %v2894_v8 }
 0x1e2   : > { %v1516_v50 = vpop.f32.mrf.mxu2 }
 0x1e3   : > { %v1612_v37 = vadd.f32 %v1516_v50, %v1459_v62  ;;  %v3812_v56 = vpop.f32.mrf.mxu1  ;;  %v1673_v36 = vpop.f32.mrf.mxu3 }
 0x1e4   : > { %v1829_v31 = vpop.f32.mrf.mxu0 }
 0x1e5   : > { %v1769_v19 = vadd.f32 %v1673_v36, %v1612_v37 }
 0x1e6   : > { %2378 = vmatmul.msk.f32.gmra.mxu1 %vm378_vm1, %v3404_v26 }
 0x1e7   : > { %v3816_v58 = vadd.f32 %v1829_v31, %v1769_v19  ;;  %2406 = vmatmul.msk.f32.gmra.mxu2 %vm378_vm1, %v2530_v15  ;;  %2471 = vmatmul.msk.f32.gmra.mxu0 %vm378_vm1, %v3327_v2  ;;  %v2531_v2 = vld [vmem:[%s2616_s23 + $0x108] sm:$0xff] }
 0x1e8   : > { %2439 = vmatmul.msk.f32.gmra.mxu3 %vm378_vm1, %v2932_v27  ;;  %v1461_v27 = vadd.f32 %v3756_v49, %v3312_v7 }
 0x1ea   : > { %v1519_v8 = vpop.f32.mrf.mxu2 }
 0x1eb   : > { %v1613_v41 = vadd.f32 %v1519_v8, %v1460_v1  ;;  %v3826_v0 = vpop.f32.mrf.mxu1  ;;  %v1676_v5 = vpop.f32.mrf.mxu3 }
 0x1ec   : > { %v1832_v45 = vpop.f32.mrf.mxu0 }
 0x1ed   : > { %v1770_v44 = vadd.f32 %v1676_v5, %v1613_v41 }
 0x1ee   : > { %2379 = vmatmul.msk.f32.gmra.mxu1 %vm378_vm1, %v3428_v24 }
 0x1ef   : > { %v3830_v38 = vadd.f32 %v1832_v45, %v1770_v44  ;;  %2407 = vmatmul.msk.f32.gmra.mxu2 %vm378_vm1, %v2531_v2  ;;  %2472 = vmatmul.msk.f32.gmra.mxu0 %vm378_vm1, %v3345_v52  ;;  %v2532_v52 = vld [vmem:[%s2616_s23 + $0x110] sm:$0xff] }
 0x1f0   : > { %2440 = vmatmul.msk.f32.gmra.mxu3 %vm378_vm1, %v2967_v10  ;;  %v1462_v10 = vadd.f32 %v3770_v63, %v3331_v51  ;;  %v4356_v51 = vld [vmem:[#allocation8_spill] sm:$0xff] }
 0x1f2   : > { %v1522_v39 = vpop.f32.mrf.mxu2 }
 0x1f3   : > { %v1614_v40 = vadd.f32 %v1522_v39, %v1461_v27  ;;  %v3840_v62 = vpop.f32.mrf.mxu1  ;;  %v1679_v50 = vpop.f32.mrf.mxu3 }
 0x1f4   : > { %v1835_v37 = vpop.f32.mrf.mxu0 }
 0x1f5   : > { %v1771_v36 = vadd.f32 %v1679_v50, %v1614_v40  ;;  %v4359_v50 = vld [vmem:[#allocation14_spill] sm:$0xff] }
 0x1f6   : > { %2380 = vmatmul.msk.f32.gmra.mxu1 %vm378_vm1, %v3450_v18 }
 0x1f7   : > { %v3844_v31 = vadd.f32 %v1835_v37, %v1771_v36  ;;  %2408 = vmatmul.msk.f32.gmra.mxu2 %vm378_vm1, %v2532_v52  ;;  %2473 = vmatmul.msk.f32.gmra.mxu0 %vm378_vm1, %v3364_v35  ;;  %v2533_v35 = vld [vmem:[%s2616_s23 + $0x120] sm:$0xff]  ;;  %v1464_v37 = vadd.f32 %v3798_v28, %v4359_v50  ;;  %v4360_v28 = vld [vmem:[#allocation5_spill] sm:$0xff] }
 0x1f8   : > { %2441 = vmatmul.msk.f32.gmra.mxu3 %vm378_vm1, %v4289_v14  ;;  %v4357_v14 = vld [vmem:[#allocation13_spill] sm:$0xff] }
 0x1f9   : > { %v1463_v63 = vadd.f32 %v3784_v42, %v4357_v14  ;;  %v4358_v42 = vld [vmem:[#allocation12_spill] sm:$0xff] }
 0x1fa   : > { %v1525_v7 = vpop.f32.mrf.mxu2 }
 0x1fb   : > { %v1615_v49 = vadd.f32 %v1525_v7, %v1462_v10  ;;  %v3854_v19 = vpop.f32.mrf.mxu1  ;;  %v1682_v15 = vpop.f32.mrf.mxu3 }
 0x1fc   : > { %v1838_v1 = vpop.f32.mrf.mxu0 }
 0x1fd   : > { %v1772_v8 = vadd.f32 %v1682_v15, %v1615_v49 }
 0x1fe   : > { %2381 = vmatmul.msk.f32.gmra.mxu1 %vm378_vm1, %v3468_v11 }
 0x1ff   : > { %v3858_v41 = vadd.f32 %v1838_v1, %v1772_v8  ;;  %2409 = vmatmul.msk.f32.gmra.mxu2 %vm378_vm1, %v2533_v35  ;;  %2474 = vmatmul.msk.f32.gmra.mxu0 %vm378_vm1, %v3382_v22  ;;  %v2534_v22 = vld [vmem:[%s2616_s23 + $0x128] sm:$0xff]  ;;  %v1465_v8 = vadd.f32 %v3812_v56, %v4360_v28  ;;  %v4362_v56 = vld [vmem:[#allocation2_spill] sm:$0xff] }
 0x200   : > { %2442 = vmatmul.msk.f32.gmra.mxu3 %vm378_vm1, %v4356_v51 }
 0x202   : > { %v1528_v5 = vpop.f32.mrf.mxu2 }
 0x203   : > { %v1616_v45 = vadd.f32 %v1528_v5, %v1463_v63  ;;  %v3868_v44 = vpop.f32.mrf.mxu1  ;;  %v1685_v2 = vpop.f32.mrf.mxu3 }
 0x204   : > { %v1841_v27 = vpop.f32.mrf.mxu0 }
 0x205   : > { %v1773_v39 = vadd.f32 %v1685_v2, %v1616_v45 }
 0x206   : > { %2382 = vmatmul.msk.f32.gmra.mxu1 %vm378_vm1, %v3487_v20 }
 0x207   : > { %v3872_v40 = vadd.f32 %v1841_v27, %v1773_v39  ;;  %2410 = vmatmul.msk.f32.gmra.mxu2 %vm378_vm1, %v2534_v22  ;;  %2475 = vmatmul.msk.f32.gmra.mxu0 %vm378_vm1, %v3404_v26  ;;  %v2535_v26 = vld [vmem:[%s2616_s23 + $0x138] sm:$0xff]  ;;  %v1466_v27 = vadd.f32 %v3826_v0, %v4362_v56  ;;  %v4363_v0 = vld [vmem:[#allocation20_spill] sm:$0xff] }
 0x208   : > { %2443 = vmatmul.msk.f32.gmra.mxu3 %vm378_vm1, %v4358_v42 }
 0x20a   : > { %v1531_v36 = vpop.f32.mrf.mxu2 }
 0x20b   : > { %v1617_v52 = vadd.f32 %v1531_v36, %v1464_v37  ;;  %v3882_v10 = vpop.f32.mrf.mxu1  ;;  %v1688_v7 = vpop.f32.mrf.mxu3 }
 0x20c   : > { %v1844_v49 = vpop.f32.mrf.mxu0 }
 0x20d   : > { %v1774_v15 = vadd.f32 %v1688_v7, %v1617_v52  ;;  %v1335_v52 = vrot.slane %v3527_v32, 2 }
 0x20e   : > { %2383 = vmatmul.msk.f32.gmra.mxu1 %vm378_vm1, %v3505_v55 }
 0x20f   : > { %v3886_v1 = vadd.f32 %v1844_v49, %v1774_v15  ;;  %2411 = vmatmul.msk.f32.gmra.mxu2 %vm378_vm1, %v2535_v26  ;;  %2476 = vmatmul.msk.f32.gmra.mxu0 %vm378_vm1, %v3428_v24  ;;  %v2536_v24 = vld [vmem:[%s2616_s23 + $0x140] sm:$0xff]  ;;  %v2537_v49 = vld [vmem:[%s2616_s23 + $0x150] sm:$0xff]  ;;  %v1467_v15 = vadd.f32 %v3840_v62, %v4363_v0 }
 0x210   : > { %2444 = vmatmul.msk.f32.gmra.mxu3 %vm378_vm1, %v4300_v21  ;;  %v4361_v21 = vld [vmem:[#allocation19_spill] sm:$0xff] }
 0x212   : > { %v1534_v35 = vpop.f32.mrf.mxu2 }
 0x213   : > { %v1618_v51 = vadd.f32 %v1534_v35, %v1465_v8  ;;  %v3896_v14 = vpop.f32.mrf.mxu1  ;;  %v1691_v63 = vpop.f32.mrf.mxu3 }
 0x214   : > { %v1847_v5 = vpop.f32.mrf.mxu0 }
 0x215   : > { %v1775_v45 = vadd.f32 %v1691_v63, %v1618_v51 }
 0x216   : > { %2384 = vmatmul.msk.f32.gmra.mxu1 %vm378_vm1, %v3524_v61 }
 0x217   : > { %v3900_v2 = vadd.f32 %v1847_v5, %v1775_v45  ;;  %2412 = vmatmul.msk.f32.gmra.mxu2 %vm378_vm1, %v2536_v24  ;;  %2477 = vmatmul.msk.f32.gmra.mxu0 %vm378_vm1, %v3450_v18  ;;  %v1336_v18 = vrot.slane %v3530_v33, 2 }
 0x218   : > { %2445 = vmatmul.msk.f32.gmra.mxu3 %vm378_vm1, %v4361_v21 }
 0x219   : > { %v1337_v51 = vsel %vm733_vm2, %v1335_v52, %v1336_v18 }
 0x21a   : > { %v1537_v39 = vpop.f32.mrf.mxu2 }
 0x21b   : > { %v1619_v22 = vadd.f32 %v1537_v39, %v1466_v27  ;;  %v3910_v42 = vpop.f32.mrf.mxu1  ;;  %v1694_v50 = vpop.f32.mrf.mxu3  ;;  %v2539_v39 = vld [vmem:[%s2616_s23 + $0x168] sm:$0xff] }
 0x21c   : > { %v1850_v37 = vpop.f32.mrf.mxu0 }
 0x21d   : > { %v1776_v36 = vadd.f32 %v1694_v50, %v1619_v22 }
 0x21e   : > { %2385 = vmatmul.msk.f32.gmra.mxu1 %vm378_vm1, %v3550_v17 }
 0x21f   : > { %v3916_v7 = vadd.f32 %v1850_v37, %v1776_v36  ;;  %2413 = vmatmul.msk.f32.gmra.mxu2 %vm378_vm1, %v2537_v49  ;;  %2478 = vmatmul.msk.f32.gmra.mxu0 %vm378_vm1, %v3468_v11  ;;  %v2538_v11 = vld [vmem:[%s2616_s23 + $0x158] sm:$0xff]  ;;  %v2540_v37 = vld [vmem:[%s2616_s23 + $0x170] sm:$0xff] }
 0x220   : > { %2446 = vmatmul.msk.f32.gmra.mxu3 %vm378_vm1, %v4306_v6  ;;  %v1338_v6 = vrot.slane %v3556_v57, 2 }
 0x222   : > { %v1540_v26 = vpop.f32.mrf.mxu2  ;;  %v1339_v56 = vsel %vm733_vm2, %v1336_v18, %v1338_v6  ;;  %v245_v6 = vld [vmem:[%s2616_s23 + $0x1a8] sm:$0x3] }
 0x223   : > { %v1620_v28 = vadd.f32 %v1540_v26, %v1467_v15  ;;  %v3926_v8 = vpop.f32.mrf.mxu1  ;;  %v1697_v35 = vpop.f32.mrf.mxu3  ;;  %v243_v26 = vld [vmem:[%s2616_s23 + $0x198] sm:$0xff] }
 0x224   : > { %v1853_v63 = vpop.f32.mrf.mxu0 }
 0x225   : > { %v1777_v5 = vadd.f32 %v1697_v35, %v1620_v28  ;;  %v244_v28 = vld [vmem:[%s2616_s23 + $0x1a0] sm:$0xff] }
 0x226   : > { %2386 = vmatmul.msk.f32.gmra.mxu1 %vm378_vm1, %v1337_v51 }
 0x227   : > { %v3930_v45 = vadd.f32 %v1853_v63, %v1777_v5  ;;  %2414 = vmatmul.msk.f32.gmra.mxu2 %vm378_vm1, %v2538_v11  ;;  %2479 = vmatmul.msk.f32.gmra.mxu0 %vm378_vm1, %v3487_v20 }
 0x228   : > { %2447 = vmatmul.msk.f32.gmra.mxu3 %vm378_vm1, %v4308_v30 }
 0x22a   : > { %v3939_v62 = vpop.f32.mrf.mxu2 }
 0x22b   : > { %v3941_v24 = vpop.f32.mrf.mxu1  ;;  %v3943_v21 = vpop.f32.mrf.mxu3 }
 0x22c   : > { %v3946_v27 = vpop.f32.mrf.mxu0 }
 0x22e   : > { %2387 = vmatmul.msk.f32.gmra.mxu1 %vm378_vm1, %v1339_v56 }
 0x22f   : > { %2415 = vmatmul.msk.f32.gmra.mxu2 %vm378_vm1, %v2539_v39  ;;  %2480 = vmatmul.msk.f32.gmra.mxu0 %vm378_vm1, %v3505_v55  ;;  %v4364_v55 = vld [vmem:[#allocation35_spill] sm:$0xff] }
 0x230   : > { %2448 = vmatmul.msk.f32.gmra.mxu3 %vm378_vm1, %v4311_v29 }
 0x232   : > { %v3955_v57 = vpop.f32.mrf.mxu2 }
 0x233   : > { %v1411_v20 = vpop.f32.mrf.mxu1  ;;  %v3957_v30 = vpop.f32.mrf.mxu3 }
 0x234   : > { %v3960_v22 = vadd.f32 %v1411_v20, %v3592_v12  ;;  %v3962_v50 = vpop.f32.mrf.mxu0  ;;  %v1473_v20 = vadd.f32 %v3926_v8, %v3560_v23  ;;  %v1804_v23 = vrot.slane %v245_v6, 2 }
 0x237   : > { %2416 = vmatmul.msk.f32.gmra.mxu2 %vm378_vm1, %v2540_v37  ;;  %2481 = vmatmul.msk.f32.gmra.mxu0 %vm378_vm1, %v3524_v61 }
 0x238   : > { %2449 = vmatmul.msk.f32.gmra.mxu3 %vm378_vm1, %v4364_v55 }
 0x23a   : > { %v1549_v29 = vpop.f32.mrf.mxu2 }
 0x23b   : > { %v1414_v36 = vpop.f32.mrf.mxu1  ;;  %v3970_v52 = vpop.f32.mrf.mxu3 }
 0x23c   : > { %v3973_v12 = vadd.f32 %v1414_v36, %v3606_v13  ;;  %v3975_v18 = vpop.f32.mrf.mxu0 }
 0x23f   : > { %2417 = vmatmul.msk.f32.gmra.mxu2 %vm378_vm1, %v3527_v32  ;;  %2482 = vmatmul.msk.f32.gmra.mxu0 %vm378_vm1, %v3550_v17  ;;  %v1645_v32 = vrot.slane %v243_v26, 1 }
 0x240   : > { %2450 = vmatmul.msk.f32.gmra.mxu3 %vm378_vm1, %v3553_v16  ;;  %v1646_v16 = vrot.slane %v244_v28, 1 }
 0x242   : > { %v1552_v61 = vpop.f32.mrf.mxu2  ;;  %v1647_v11 = vsel %vm295_vm0, %v1645_v32, %v1646_v16  ;;  %v4365_v32 = vld [vmem:[#allocation29_spill] sm:$0xff] }
 0x243   : > { %v1417_v49 = vpop.f32.mrf.mxu1  ;;  %v1709_v0 = vpop.f32.mrf.mxu3 }
 0x244   : > { %v3984_v15 = vadd.f32 %v1417_v49, %v3620_v43  ;;  %v3986_v13 = vpop.f32.mrf.mxu0 }
 0x247   : > { %2418 = vmatmul.msk.f32.gmra.mxu2 %vm378_vm1, %v3530_v33  ;;  %2483 = vmatmul.msk.f32.gmra.mxu0 %vm378_vm1, %v1337_v51  ;;  %v1801_v33 = vrot.slane %v243_v26, 2  ;;  %v1648_v51 = vrot.slane %v245_v6, 1 }
 0x248   : > { %2451 = vmatmul.msk.f32.gmra.mxu3 %vm378_vm1, %v3574_v54  ;;  %v1802_v54 = vrot.slane %v244_v28, 2 }
 0x24a   : > { %v1555_v17 = vpop.f32.mrf.mxu2  ;;  %v1803_v49 = vsel %vm733_vm2, %v1801_v33, %v1802_v54 }
 0x24b   : > { %v1420_v35 = vpop.f32.mrf.mxu1  ;;  %v1712_v63 = vpop.f32.mrf.mxu3 }
 0x24c   : > { %v3996_v43 = vadd.f32 %v1420_v35, %v3634_v4  ;;  %v1868_v5 = vpop.f32.mrf.mxu0  ;;  %v1649_v35 = vsel %vm295_vm0, %v1646_v16, %v1648_v51  ;;  %v4368_v16 = vld [vmem:[#allocation9_spill] sm:$0xff] }
 0x24d   : > { %v1469_v51 = vadd.f32 %v3868_v44, %v4368_v16 }
 0x24f   : > { %2419 = vmatmul.msk.f32.gmra.mxu2 %vm378_vm1, %v243_v26  ;;  %2484 = vmatmul.msk.f32.gmra.mxu0 %vm378_vm1, %v1339_v56  ;;  %v1472_v56 = vadd.f32 %v3910_v42, %v4365_v32  ;;  %v1474_v42 = vadd.f32 %v3941_v24, %v3578_v47  ;;  %v4369_v32 = vld [vmem:[#allocation21_spill] sm:$0xff] }
 0x250   : > { %2452 = vmatmul.msk.f32.gmra.mxu3 %vm378_vm1, %v1647_v11  ;;  %v4366_v11 = vld [vmem:[#allocation17_spill] sm:$0xff]  ;;  %v1468_v6 = vadd.f32 %v3854_v19, %v4369_v32 }
 0x251   : > { %v1471_v25 = vadd.f32 %v3896_v14, %v4366_v11  ;;  %v1625_v46 = vadd.f32 %v1555_v17, %v1472_v56  ;;  %v1622_v56 = vadd.f32 %v3955_v57, %v1469_v51 }
 0x252   : > { %v1558_v39 = vpop.f32.mrf.mxu2 }
 0x253   : > { %v1423_v37 = vpop.f32.mrf.mxu1  ;;  %v1715_v4 = vpop.f32.mrf.mxu3  ;;  %v1626_v26 = vadd.f32 %v1558_v39, %v1473_v20  ;;  %v1624_v33 = vadd.f32 %v1552_v61, %v1471_v25  ;;  %v1782_v20 = vadd.f32 %v1712_v63, %v1625_v46  ;;  %v1805_v25 = vsel %vm733_vm2, %v1802_v54, %v1804_v23  ;;  %v4034_v46 = vld [vmem:[%s4159_s2] ss:$0 sm:$0xff] }
 0x254   : > { %v4006_v55 = vadd.f32 %v1423_v37, %v3648_v3  ;;  %v1871_v36 = vpop.f32.mrf.mxu0  ;;  %v4367_v3 = vld [vmem:[#allocation28_spill] sm:$0xff] }
 0x255   : > { %v1470_v8 = vadd.f32 %v3882_v10, %v4367_v3  ;;  %v1783_v39 = vadd.f32 %v1715_v4, %v1626_v26  ;;  %v4370_v10 = vld [vmem:[#allocation18_spill] sm:$0xff]  ;;  %v1781_v24 = vadd.f32 %v1709_v0, %v1624_v33  ;;  %v1938_v63 = vadd.f32 %v1868_v5, %v1782_v20 }
 0x256   : > { %v1779_v4 = vadd.f32 %v3957_v30, %v1622_v56 }
 0x257   : > { %2420 = vmatmul.msk.f32.gmra.mxu2 %vm378_vm1, %v244_v28  ;;  %2485 = vmatmul.msk.f32.gmra.mxu0 %vm378_vm1, %v1803_v49  ;;  %v1623_v17 = vadd.f32 %v1549_v29, %v1470_v8  ;;  %v1939_v61 = vadd.f32 %v1871_v36, %v1783_v39  ;;  %v1621_v29 = vadd.f32 %v3939_v62, %v1468_v6  ;;  %v4372_v6 = vld [vmem:[#allocation27_spill] sm:$0xff] }
 0x258   : > { %2453 = vmatmul.msk.f32.gmra.mxu3 %vm378_vm1, %v1649_v35  ;;  %v1937_v54 = vadd.f32 %v3986_v13, %v1781_v24  ;;  %v1974_v23 = vadd.f32 %v4034_v46, %v1938_v63  ;;  %v1935_v30 = vadd.f32 %v3962_v50, %v1779_v4  ;;  %v4371_v13 = vld [vmem:[#allocation22_spill] sm:$0xff] }
 0x259   : > { %v1780_v19 = vadd.f32 %v3970_v52, %v1623_v17  ;;  %v1975_v0 = vadd.f32 %v4034_v46, %v1939_v61  ;;  %v1778_v62 = vadd.f32 %v3943_v21, %v1621_v29  ;;  %v1968_v61 = vadd.f32 %v4034_v46, %v3916_v7 }
 0x25a   : > { %v1561_v14 = vpop.f32.mrf.mxu2  ;;  %v1973_v39 = vadd.f32 %v4034_v46, %v1937_v54  ;;  %v1971_v50 = vadd.f32 %v4034_v46, %v1935_v30  ;;  %v1967_v29 = vadd.f32 %v4034_v46, %v3900_v2  ;;  %v1965_v2 = vadd.f32 %v4034_v46, %v3872_v40 }
 0x25b   : > { %v1627_v28 = vadd.f32 %v1561_v14, %v1474_v42  ;;  %v1426_v37 = vpop.f32.mrf.mxu1  ;;  %v1718_v49 = vpop.f32.mrf.mxu3  ;;  %v1936_v11 = vadd.f32 %v3975_v18, %v1780_v19  ;;  %v2047_v18 = vmul.f32 %v1975_v0, %v1975_v0  ;;  %v1934_v16 = vadd.f32 %v3946_v27, %v1778_v62 }
 0x25c   : > { %v4027_v35 = vadd.f32 %v1426_v37, %v4370_v10  ;;  %v1874_v47 = vpop.f32.mrf.mxu0  ;;  %v2046_v14 = vmul.f32 %v1974_v23, %v1974_v23  ;;  %v2045_v17 = vmul.f32 %v1973_v39, %v1973_v39  ;;  %v2043_v24 = vmul.f32 %v1971_v50, %v1971_v50 }
 0x25d   : > { %v1784_v44 = vadd.f32 %v1718_v49, %v1627_v28  ;;  %v1972_v51 = vadd.f32 %v4034_v46, %v1936_v11  ;;  %v1970_v28 = vadd.f32 %v4034_v46, %v1934_v16  ;;  %v2040_v54 = vmul.f32 %v1968_v61, %v1968_v61 }
 0x25e   : > { %v1962_v40 = vadd.f32 %v4034_v46, %v3830_v38  ;;  %v1961_v30 = vadd.f32 %v4034_v46, %v3816_v58 }
 0x25f   : > { %v1940_v57 = vadd.f32 %v1874_v47, %v1784_v44  ;;  %2486 = vmatmul.msk.f32.gmra.mxu0 %vm378_vm1, %v1805_v25  ;;  %v2044_v32 = vmul.f32 %v1972_v51, %v1972_v51  ;;  %v1969_v47 = vadd.f32 %v4034_v46, %v3930_v45  ;;  %v2042_v44 = vmul.f32 %v1970_v28, %v1970_v28 }
 0x260   : > { %v1966_v45 = vadd.f32 %v4034_v46, %v3886_v1  ;;  %v1964_v1 = vadd.f32 %v4034_v46, %v3858_v41  ;;  %v2033_v38 = vmul.f32 %v1961_v30, %v1961_v30 }
 0x261   : > { %v1976_v36 = vadd.f32 %v4034_v46, %v1940_v57  ;;  %v2041_v19 = vmul.f32 %v1969_v47, %v1969_v47 }
 0x262   : > { %v1564_v26 = vpop.f32.mrf.mxu2  ;;  %v2038_v11 = vmul.f32 %v1966_v45, %v1966_v45 }
 0x263   : > { %v2048_v52 = vmul.f32 %v1976_v36, %v1976_v36  ;;  %v1628_v5 = vadd.f32 %v1564_v26, %v3960_v22  ;;  %1993 = vmatpush.msrb.mxu1 %v1976_v36  ;;  %v1429_v3 = vpop.f32.mrf.mxu1  ;;  %v1721_v8 = vpop.f32.mrf.mxu3  ;;  %v2039_v26 = vmul.f32 %v1967_v29, %v1967_v29 }
 0x264   : > { %v4048_v42 = vadd.f32 %v1429_v3, %v4371_v13  ;;  %v1877_v33 = vpop.f32.mrf.mxu0  ;;  %v2036_v3 = vmul.f32 %v1964_v1, %v1964_v1 }
 0x265   : > { %v1785_v21 = vadd.f32 %v1721_v8, %v1628_v5  ;;  %1994 = vmatpush.msrb.mxu1 %v1975_v0  ;;  %2065 = vmatpush.msrb.mxu3 %v2048_v52 }
 0x267   : > { %v4053_v22 = vadd.f32 %v1877_v33, %v1785_v21  ;;  %1995 = vmatpush.msrb.mxu1 %v1974_v23  ;;  %2066 = vmatpush.msrb.mxu3 %v2047_v18  ;;  %v2037_v23 = vmul.f32 %v1965_v2, %v1965_v2 }
 0x269   : > { %1996 = vmatpush.msrb.mxu1 %v1973_v39  ;;  %2067 = vmatpush.msrb.mxu3 %v2046_v14  ;;  %v2034_v39 = vmul.f32 %v1962_v40, %v1962_v40 }
 0x26a   : > { %v1567_v20 = vpop.f32.mrf.mxu2 }
 0x26b   : > { %v1629_v37 = vadd.f32 %v1567_v20, %v3973_v12  ;;  %1997 = vmatpush.msrb.mxu1 %v1972_v51  ;;  %2068 = vmatpush.msrb.mxu3 %v2045_v17  ;;  %v1432_v27 = vpop.f32.mrf.mxu1  ;;  %v1724_v49 = vpop.f32.mrf.mxu3 }
 0x26c   : > { %v4059_v56 = vadd.f32 %v1432_v27, %v4372_v6  ;;  %v1880_v10 = vpop.f32.mrf.mxu0 }
 0x26d   : > { %v1786_v25 = vadd.f32 %v1724_v49, %v1629_v37  ;;  %1998 = vmatpush.msrb.mxu1 %v1971_v50  ;;  %2069 = vmatpush.msrb.mxu3 %v2044_v32 }
 0x26f   : > { %v4065_v12 = vadd.f32 %v1880_v10, %v1786_v25  ;;  %1999 = vmatpush.msrb.mxu1 %v1970_v28  ;;  %2070 = vmatpush.msrb.mxu3 %v2043_v24 }
 0x271   : > { %2000 = vmatpush.msrb.mxu1 %v1969_v47  ;;  %2071 = vmatpush.msrb.mxu3 %v2042_v44 }
 0x272   : > { %v1570_v63 = vpop.f32.mrf.mxu2 }
 0x273   : > { %v1630_v57 = vadd.f32 %v1570_v63, %v3984_v15  ;;  %2001 = vmatpush.msrb.mxu1 %v1968_v61  ;;  %2072 = vmatpush.msrb.mxu3 %v2041_v19  ;;  %v1435_v7 = vpop.f32.mrf.mxu1  ;;  %v1727_v4 = vpop.f32.mrf.mxu3 }
 0x274   : > { %v4073_v0 = vadd.f32 %v1435_v7, %v3704_v60  ;;  %v1883_v36 = vpop.f32.mrf.mxu0  ;;  %v1963_v60 = vadd.f32 %v4034_v46, %v3844_v31 }
 0x275   : > { %v1787_v62 = vadd.f32 %v1727_v4, %v1630_v57  ;;  %2002 = vmatpush.msrb.mxu1 %v1967_v29  ;;  %2073 = vmatpush.msrb.mxu3 %v2040_v54 }
 0x276   : > { %v2035_v31 = vmul.f32 %v1963_v60, %v1963_v60 }
 0x277   : > { %v4079_v15 = vadd.f32 %v1883_v36, %v1787_v62  ;;  %2003 = vmatpush.msrb.mxu1 %v1966_v45  ;;  %2074 = vmatpush.msrb.mxu3 %v2039_v26 }
 0x279   : > { %2004 = vmatpush.msrb.mxu1 %v1965_v2  ;;  %2075 = vmatpush.msrb.mxu3 %v2038_v11 }
 0x27a   : > { %v1573_v52 = vpop.f32.mrf.mxu2 }
 0x27b   : > { %v1631_v5 = vadd.f32 %v1573_v52, %v3996_v43  ;;  %2005 = vmatpush.msrb.mxu1 %v1964_v1  ;;  %2076 = vmatpush.msrb.mxu3 %v2037_v23  ;;  %v1730_v41 = vpop.f32.mrf.mxu3  ;;  %v1438_v47 = vpop.f32.mrf.mxu1 }
 0x27c   : > { %v1886_v8 = vpop.f32.mrf.mxu0 }
 0x27d   : > { %v1788_v13 = vadd.f32 %v1730_v41, %v1631_v5  ;;  %2006 = vmatpush.msrb.mxu1 %v1963_v60  ;;  %2077 = vmatpush.msrb.mxu3 %v2036_v3 }
 0x27f   : > { %v4088_v33 = vadd.f32 %v1886_v8, %v1788_v13  ;;  %2007 = vmatpush.msrb.mxu1 %v1962_v40  ;;  %2078 = vmatpush.msrb.mxu3 %v2035_v31 }
 0x281   : > { %2008 = vmatpush.msrb.mxu1 %v1961_v30  ;;  %2079 = vmatpush.msrb.mxu3 %v2034_v39 }
 0x282   : > { %v1576_v43 = vpop.f32.mrf.mxu2 }
 0x283   : > { %v1632_v21 = vadd.f32 %v1576_v43, %v4006_v55  ;;  %2080 = vmatpush.msrb.mxu3 %v2033_v38  ;;  %v1733_v18 = vpop.f32.mrf.mxu3  ;;  %v1441_v57 = vpop.f32.mrf.mxu1 }
 0x284   : > { %v1889_v16 = vpop.f32.mrf.mxu0 }
 0x285   : > { %v1789_v51 = vadd.f32 %v1733_v18, %v1632_v21 }
 0x287   : > { %v4091_v58 = vadd.f32 %v1889_v16, %v1789_v51 }
 0x28a   : > { %v1579_v14 = vpop.f32.mrf.mxu2 }
 0x28b   : > { %v1633_v50 = vadd.f32 %v1579_v14, %v4027_v35  ;;  %v1736_v17 = vpop.f32.mrf.mxu3  ;;  %v1444_v62 = vpop.f32.mrf.mxu1 }
 0x28c   : > { %v1892_v20 = vpop.f32.mrf.mxu0 }
 0x28d   : > { %v1790_v28 = vadd.f32 %v1736_v17, %v1633_v50  ;;  %v1486_v50 = vadd.f32 %v1444_v62, %v3746_v48 }
 0x28f   : > { %v4094_v37 = vadd.f32 %v1892_v20, %v1790_v28 }
 0x292   : > { %v1582_v27 = vpop.f32.mrf.mxu2 }
 0x293   : > { %v1634_v49 = vadd.f32 %v1582_v27, %v4048_v42  ;;  %v1739_v32 = vpop.f32.mrf.mxu3  ;;  %v1447_v11 = vpop.f32.mrf.mxu1  ;;  %v4373_v27 = vld [vmem:[#allocation31_spill] sm:$0xff] }
 0x294   : > { %v1895_v6 = vpop.f32.mrf.mxu0  ;;  %v1487_v51 = vadd.f32 %v1447_v11, %v3760_v9 }
 0x295   : > { %v1791_v55 = vadd.f32 %v1739_v32, %v1634_v49  ;;  %v1485_v49 = vadd.f32 %v1441_v57, %v4373_v27 }
 0x297   : > { %v4097_v10 = vadd.f32 %v1895_v6, %v1791_v55 }
 0x29a   : > { %v1585_v25 = vpop.f32.mrf.mxu2 }
 0x29b   : > { %v1635_v24 = vadd.f32 %v1585_v25, %v4059_v56  ;;  %v1742_v61 = vpop.f32.mrf.mxu3  ;;  %v1450_v40 = vpop.f32.mrf.mxu1 }
 0x29c   : > { %v1898_v44 = vpop.f32.mrf.mxu0  ;;  %v1488_v21 = vadd.f32 %v1450_v40, %v3774_v53 }
 0x29d   : > { %v1792_v35 = vadd.f32 %v1742_v61, %v1635_v24  ;;  %v4374_v24 = vld [vmem:[#allocation25_spill] sm:$0xff] }
 0x29e   : > { %v1484_v53 = vadd.f32 %v1438_v47, %v4374_v24 }
 0x29f   : > { %v4100_v29 = vadd.f32 %v1898_v44, %v1792_v35 }
 0x2a2   : > { %v1588_v19 = vpop.f32.mrf.mxu2 }
 0x2a3   : > { %v1636_v63 = vadd.f32 %v1588_v19, %v4073_v0  ;;  %v1745_v45 = vpop.f32.mrf.mxu3  ;;  %v1453_v30 = vpop.f32.mrf.mxu1 }
 0x2a4   : > { %v1901_v42 = vpop.f32.mrf.mxu0  ;;  %v1489_v39 = vadd.f32 %v1453_v30, %v3788_v59  ;;  %v1984_v30 = vadd.f32 %v4034_v46, %v4100_v29 }
 0x2a5   : > { %v1793_v7 = vadd.f32 %v1745_v45, %v1636_v63  ;;  %v2565_v63 = vmov 1.0  }
 0x2a6   : > { %2009 = vmatmul.f32.vlgmr.msrb.gmra.mxu1 %v2565_v63  ;;  %2081 = vmatmul.f32.vlgmr.msrb.gmra.mxu3 %v2565_v63 }
 0x2a7   : > { %v4103_v4 = vadd.f32 %v1901_v42, %v1793_v7 }
 0x2aa   : > { %v1591_v54 = vpop.f32.mrf.mxu2 }
 0x2ab   : > { %v1748_v36 = vpop.f32.mrf.mxu3  ;;  %v1456_v16 = vpop.f32.mrf.mxu1  ;;  %v1637_v48 = vadd.f32 %v1591_v54, %v1484_v53 }
 0x2ac   : > { %v4105_v2 = vpop.f32.mrf.mxu0  ;;  %v1490_v17 = vadd.f32 %v1456_v16, %v3802_v34  ;;  %v1978_v16 = vadd.f32 %v4034_v46, %v4065_v12 }
 0x2b2   : > { %v1594_v56 = vpop.f32.mrf.mxu2 }
 0x2b3   : > { %v1751_v26 = vpop.f32.mrf.mxu3  ;;  %v1638_v61 = vadd.f32 %v1594_v56, %v1485_v49  ;;  %v1794_v56 = vadd.f32 %v1748_v36, %v1637_v48 }
 0x2b4   : > { %v1907_v1 = vpop.f32.mrf.mxu0 }
 0x2b5   : > { %v1795_v42 = vadd.f32 %v1751_v26, %v1638_v61 }
 0x2ba   : > { %v1597_v60 = vpop.f32.mrf.mxu2 }
 0x2bb   : > { %v1754_v23 = vpop.f32.mrf.mxu3  ;;  %v1639_v6 = vadd.f32 %v1597_v60, %v1486_v50 }
 0x2bc   : > { %v1910_v52 = vpop.f32.mrf.mxu0 }
 0x2bd   : > { %v1796_v34 = vadd.f32 %v1754_v23, %v1639_v6  ;;  %v1950_v23 = vadd.f32 %v4105_v2, %v1794_v56 }
 0x2bf   : > { %v1952_v11 = vadd.f32 %v1910_v52, %v1796_v34 }
 0x2c1   : > { %v1988_v26 = vadd.f32 %v4034_v46, %v1952_v11 }
 0x2c2   : > { %v1600_v0 = vpop.f32.mrf.mxu2 }
 0x2c3   : > { %v1757_v5 = vpop.f32.mrf.mxu3  ;;  %v1640_v20 = vadd.f32 %v1600_v0, %v1487_v51  ;;  %v1951_v0 = vadd.f32 %v1907_v1, %v1795_v42  ;;  %v2060_v1 = vmul.f32 %v1988_v26, %v1988_v26  ;;  %v1977_v51 = vadd.f32 %v4034_v46, %v4053_v22 }
 0x2c4   : > { %v1913_v41 = vpop.f32.mrf.mxu0 }
 0x2c5   : > { %v1797_v35 = vadd.f32 %v1757_v5, %v1640_v20  ;;  %v1987_v36 = vadd.f32 %v4034_v46, %v1951_v0 }
 0x2c7   : > { %v1953_v7 = vadd.f32 %v1913_v41, %v1797_v35  ;;  %v2059_v2 = vmul.f32 %v1987_v36, %v1987_v36 }
 0x2c9   : > { %v1989_v5 = vadd.f32 %v4034_v46, %v1953_v7 }
 0x2ca   : > { %v1603_v3 = vpop.f32.mrf.mxu2 }
 0x2cb   : > { %v1760_v8 = vpop.f32.mrf.mxu3  ;;  %v1641_v14 = vadd.f32 %v1603_v3, %v1488_v21  ;;  %v2061_v52 = vmul.f32 %v1989_v5, %v1989_v5  ;;  %v1986_v3 = vadd.f32 %v4034_v46, %v1950_v23  ;;  %v1980_v21 = vadd.f32 %v4034_v46, %v4088_v33 }
 0x2cc   : > { %v1916_v13 = vpop.f32.mrf.mxu0 }
 0x2cd   : > { %v1798_v59 = vadd.f32 %v1760_v8, %v1641_v14  ;;  %v1985_v8 = vadd.f32 %v4034_v46, %v4103_v4  ;;  %v2056_v4 = vmul.f32 %v1984_v30, %v1984_v30  ;;  %v2050_v14 = vmul.f32 %v1978_v16, %v1978_v16 }
 0x2cf   : > { %v1954_v45 = vadd.f32 %v1916_v13, %v1798_v59  ;;  %v2058_v13 = vmul.f32 %v1986_v3, %v1986_v3 }
 0x2d1   : > { %v1990_v60 = vadd.f32 %v4034_v46, %v1954_v45 }
 0x2d2   : > { %v1606_v31 = vpop.f32.mrf.mxu2 }
 0x2d3   : > { %v1763_v38 = vpop.f32.mrf.mxu3  ;;  %v1642_v18 = vadd.f32 %v1606_v31, %v1489_v39  ;;  %v2062_v41 = vmul.f32 %v1990_v60, %v1990_v60  ;;  %v1983_v31 = vadd.f32 %v4034_v46, %v4097_v10  ;;  %v2057_v39 = vmul.f32 %v1985_v8, %v1985_v8 }
 0x2d4   : > { %v1919_v43 = vpop.f32.mrf.mxu0 }
 0x2d5   : > { %v1799_v28 = vadd.f32 %v1763_v38, %v1642_v18  ;;  %v1982_v38 = vadd.f32 %v4034_v46, %v4094_v37  ;;  %v2055_v29 = vmul.f32 %v1983_v31, %v1983_v31  ;;  %v1979_v18 = vadd.f32 %v4034_v46, %v4079_v15 }
 0x2d6   : > { %v2049_v15 = vmul.f32 %v1977_v51, %v1977_v51 }
 0x2d7   : > { %v1955_v9 = vadd.f32 %v1919_v43, %v1799_v28  ;;  %v1981_v43 = vadd.f32 %v4034_v46, %v4091_v58  ;;  %v2054_v10 = vmul.f32 %v1982_v38, %v1982_v38  ;;  %v2052_v58 = vmul.f32 %v1980_v21, %v1980_v21 }
 0x2d8   : > { %v2051_v33 = vmul.f32 %v1979_v18, %v1979_v18 }
 0x2d9   : > { %v1991_v62 = vadd.f32 %v4034_v46, %v1955_v9  ;;  %v2053_v37 = vmul.f32 %v1981_v43, %v1981_v43 }
 0x2da   : > { %v1609_v32 = vpop.f32.mrf.mxu2 }
 0x2db   : > { %v1643_v55 = vadd.f32 %v1609_v32, %v1490_v17  ;;  %v1766_v25 = vpop.f32.mrf.mxu3  ;;  %v2063_v54 = vmul.f32 %v1991_v62, %v1991_v62 }
 0x2dc   : > { %v1922_v44 = vpop.f32.mrf.mxu0 }
 0x2dd   : > { %v1800_v19 = vadd.f32 %v1766_v25, %v1643_v55 }
 0x2df   : > { %v1956_v57 = vadd.f32 %v1922_v44, %v1800_v19 }
 0x2e1   : > { %v1992_v47 = vadd.f32 %v4034_v46, %v1956_v57 }
 0x2e3   : > { %v2064_v40 = vmul.f32 %v1992_v47, %v1992_v47  ;;  %2013 = vmatpush.msrb.mxu2 %v1992_v47 }
 0x2e5   : > { %2014 = vmatpush.msrb.mxu2 %v1991_v62  ;;  %2085 = vmatpush.msra.mxu1 %v2064_v40 }
 0x2e7   : > { %2015 = vmatpush.msrb.mxu2 %v1990_v60  ;;  %2086 = vmatpush.msra.mxu1 %v2063_v54 }
 0x2e9   : > { %2016 = vmatpush.msrb.mxu2 %v1989_v5  ;;  %2087 = vmatpush.msra.mxu1 %v2062_v41 }
 0x2eb   : > { %2017 = vmatpush.msrb.mxu2 %v1988_v26  ;;  %2088 = vmatpush.msra.mxu1 %v2061_v52 }
 0x2ed   : > { %2018 = vmatpush.msrb.mxu2 %v1987_v36  ;;  %2089 = vmatpush.msra.mxu1 %v2060_v1 }
 0x2ef   : > { %2019 = vmatpush.msrb.mxu2 %v1986_v3  ;;  %2090 = vmatpush.msra.mxu1 %v2059_v2 }
 0x2f1   : > { %2020 = vmatpush.msrb.mxu2 %v1985_v8  ;;  %2091 = vmatpush.msra.mxu1 %v2058_v13 }
 0x2f3   : > { %2021 = vmatpush.msrb.mxu2 %v1984_v30  ;;  %2092 = vmatpush.msra.mxu1 %v2057_v39 }
 0x2f5   : > { %2022 = vmatpush.msrb.mxu2 %v1983_v31  ;;  %2093 = vmatpush.msra.mxu1 %v2056_v4 }
 0x2f7   : > { %2023 = vmatpush.msrb.mxu2 %v1982_v38  ;;  %2094 = vmatpush.msra.mxu1 %v2055_v29 }
 0x2f9   : > { %2024 = vmatpush.msrb.mxu2 %v1981_v43  ;;  %2095 = vmatpush.msra.mxu1 %v2054_v10 }
 0x2fb   : > { %2025 = vmatpush.msrb.mxu2 %v1980_v21  ;;  %2096 = vmatpush.msra.mxu1 %v2053_v37 }
 0x2fd   : > { %2026 = vmatpush.msrb.mxu2 %v1979_v18  ;;  %2097 = vmatpush.msra.mxu1 %v2052_v58 }
 0x2ff   : > { %2027 = vmatpush.msrb.mxu2 %v1978_v16  ;;  %2098 = vmatpush.msra.mxu1 %v2051_v33 }
 0x301   : > { %2028 = vmatpush.msrb.mxu2 %v1977_v51  ;;  %2099 = vmatpush.msra.mxu1 %v2050_v14 }
 0x302   : > { %2029 = vmatmul.f32.vlgmr.msrb.gmra.mxu2 %v2565_v63 }
 0x303   : > { %2100 = vmatpush.msra.mxu1 %v2049_v15 }
 0x304   : > { %2101 = vmatmul.f32.vlgmr.msra.gmra.mxu1 %v2565_v63 }
 0x323   : > { %v2010_v12 = vpop.f32.mrf.mxu1 }
 0x329   : > { %v2082_v50 = vpop.f32.mrf.mxu3 }
 0x381   : > { %v2102_v17 = vpop.f32.mrf.mxu1 }
 0x382   : > { %v2103_v20 = vadd.f32 %v2102_v17, %v2082_v50 }
 0x384   : > { %v2106_v46 = vrot.slane %v2103_v20, 7 }
 0x385   : > { %v2030_v22 = vpop.f32.mrf.mxu2 }
 0x386   : > { %v2031_v28 = vadd.f32 %v2030_v22, %v2010_v12 }
 0x388   : > { %v2109_v27 = vsel %vm2108_vm3, %v2031_v28, %v2106_v46 }
 0x389   : > { %2110 = vst [vmem:[%s188_s20] sm:$0x3] %v2109_v27 }
 0x38a PF: > { %s13_s14 = sadd.s32 1, %s2563_s14   ;;  %s4375_s12 = smov %s2559_s13 }
 0x38b   : > { %p10_p5 = scmp.ge.s32.totalorder %s13_s14, 4   ;;  %s4376_s13 = smov %s4378_s15 }
 0x38d   :  { %12 = sbr.rel (!%p10_p5) target bundleno = 2 (0x2), region = 71 }

// kernel: conv_bn_relu.3
= control target key start
LH: loop header
LB: loop body
LE: loop exit
PB: predicated region body
PF: predicated region fallthrough
CT: control target
= control target key end

     0   :  { %s2695_s18 = smov 0   ;;  %s2697_s19 = smov 0   ;;  %s4114_s0 = inlined_call_operand.vmem [shape: f32[2,18,18,8], index: 0, kind: input, shape index: {}]   ;;  %s4115_s1 = inlined_call_operand.vmem [shape: f32[9,8,128], index: 1, kind: input, shape index: {}]   ;;  %s4116_s2 = inlined_call_operand.vmem [shape: f32[1,128], index: 2, kind: input, shape index: {}]   ;;  %s4117_s3 = inlined_call_operand.vmem [shape: f32[1,128], index: 3, kind: input, shape index: {}]   ;;  %s4118_s4 = inlined_call_operand.vmem [shape: f32[1,128], index: 4, kind: input, shape index: {}]   ;;  %s4119_s5 = inlined_call_operand.vmem [shape: f32[2,16,16,128], index: 5, kind: output, shape index: {}]  }
   0x1   :  { %s2699_s20 = smov 0  }
   0x2 LB: > { %s27_s21 = sadd.s32 1, %s2659_s19  ;;  %p2283_p0 = scmp.ge.s32.totalorder %s2663_s20, 1  ;;  %s2663_s20 = sphi %s2699_s20, %s15_s20   ;;  %s2659_s19 = sphi %s2697_s19, %s4334_s19   ;;  %s2655_s18 = sphi %s2695_s18, %s4333_s18  }
   0x3   : > { %p29_p1 = scmp.ge.s32.totalorder %s27_s21, 2  ;;  %p201_p2 = scmp.lt.s32.totalorder %s2663_s20, 3 }
   0x5   : > { %s4336_s21 = smov (%p29_p1, %s27_s21), 0  ;;  %p202_p3 = pnand %p2283_p0, %p201_p2 }
   0x7   : > { %205 = sbr.rel (%p202_p3) target bundleno = 738 (0x2e2), region = 40 }
   0xc   : > { %v2287_v0 = vld [vmem:[%s4115_s1 + $0x8] sm:$0xff]  ;;  %p234_p4 = scmp.lt.s32.totalorder %s2655_s18, 1  ;;  %v2352_v1 = vld [vmem:[%s4115_s1 + $0x10] sm:$0xff]  ;;  %v2385_v2 = vld [vmem:[%s4115_s1 + $0x18] sm:$0xff]  ;;  %vm356_vm0 = vcmask 1046528   ;;  %vm439_vm1 = vcmask 64512  }
   0xd   : > { %2586 = vmatpush.msra.mxu1 %v2287_v0  ;;  %2587 = vmatpush.msra.mxu2 %v2287_v0  ;;  %v307_v3 = vld [vmem:[%s4115_s1] sm:$0xff]  ;;  %vm794_vm2 = vcmask 1045504  }
   0xe   : > { %s4338_s18 = smov (!%p234_p4, %s2655_s18), 1  ;;  %2588 = vmatpush.msra.mxu3 %v2287_v0  ;;  %v2418_v4 = vld [vmem:[%s4115_s1 + $0x20] sm:$0xff]  ;;  %519 = vmatpush.msra.mxu0 %v2287_v0 }
   0xf   : > { %956 = vmatpush.msrb.mxu2 %v2352_v1  ;;  %696 = vmatpush.msrb.mxu1 %v307_v3  ;;  %s2589_s7 = smul.u32 432, %s4338_s18  ;;  %s2585_s29 = sshll.u32 %s4338_s18, 8 }
  0x10   : > { %1109 = vmatpush.msrb.mxu3 %v2385_v2  ;;  %1266 = vmatpush.msrb.mxu0 %v2418_v4 }
  0x11   : > { %s2734_s10 = scalar_lea.vmem %s4114_s0, %s2589_s7  ;;  %s3834_s7 = scalar_lea.vmem %s4119_s5, %s2585_s29 }
  0x12   : > { %v2737_v5 = vld [vmem:[%s2734_s10 + $0x60] sm:$0xff]  ;;  %v2740_v6 = vld [vmem:[%s2734_s10 + $0x68] sm:$0xff]  ;;  %v2761_v17 = vld [vmem:[%s2734_s10 + $0x70] sm:$0x3] }
  0x13   : > { %v2743_v7 = vld [vmem:[%s2734_s10 + $0xc0] sm:$0xff]  ;;  %v377_v8 = vrot.slane %v2737_v5, 1  ;;  %v378_v9 = vrot.slane %v2740_v6, 1  ;;  %v2748_v10 = vld [vmem:[%s2734_s10 + $0xc8] sm:$0xff]  ;;  %v2770_v20 = vld [vmem:[%s2734_s10 + $0xd0] sm:$0x3] }
  0x14   : > { %v397_v11 = vrot.slane %v2743_v7, 1  ;;  %v2752_v12 = vld [vmem:[%s2734_s10 + $0x120] sm:$0xff]  ;;  %v2755_v13 = vld [vmem:[%s2734_s10 + $0x128] sm:$0xff]  ;;  %v398_v14 = vrot.slane %v2748_v10, 1  ;;  %v2786_v26 = vld [vmem:[%s2734_s10 + $0x130] sm:$0x3] }
  0x15   : > { %4195 = vst [vmem:[#allocation2_spill] sm:$0xff] %v2752_v12  ;;  %v417_v15 = vrot.slane %v2752_v12, 1  ;;  %v418_v16 = vrot.slane %v2755_v13, 1  ;;  %v2764_v18 = vld [vmem:[%s2734_s10] sm:$0xff]  ;;  %v2767_v19 = vsel %vm356_vm0, %v377_v8, %v378_v9  ;;  %v2773_v21 = vld [vmem:[%s2734_s10 + $0x8] sm:$0xff]  ;;  %v380_v27 = vrot.slane %v2761_v17, 1 }
  0x16   : > { %4196 = vst [vmem:[#allocation3_spill] sm:$0xff] %v2755_v13  ;;  %v357_v22 = vrot.slane %v2764_v18, 1  ;;  %2296 = vmatmul.msk.f32.vlgmr.msra.gmra.mxu1 %vm439_vm1, %v2767_v19  ;;  %v2779_v23 = vsel %vm356_vm0, %v397_v11, %v398_v14  ;;  %v358_v25 = vrot.slane %v2773_v21, 1  ;;  %v2794_v28 = vld [vmem:[%s2734_s10 + $0x10] sm:$0x3]  ;;  %v400_v29 = vrot.slane %v2770_v20, 1 }
  0x17   : > { %4197 = vst [vmem:[#allocation4_spill] sm:$0xff] %v2779_v23  ;;  %v2782_v24 = vsel %vm356_vm0, %v417_v15, %v418_v16  ;;  %2304 = vmatmul.msk.f32.vlgmr.msra.gmra.mxu2 %vm439_vm1, %v2779_v23  ;;  %v420_v31 = vrot.slane %v2786_v26, 1  ;;  %v360_v32 = vrot.slane %v2794_v28, 1  ;;  %v2802_v33 = vsel %vm356_vm0, %v378_v9, %v380_v27  ;;  %v2811_v36 = vld [vmem:[%s2734_s10 + $0x78] sm:$0xff]  ;;  %v2814_v37 = vld [vmem:[%s2734_s10 + $0x80] sm:$0xff]  ;;  %v2896_v4 = vld [vmem:[%s2734_s10 + $0x90] sm:$0xff] }
  0x18   : > { %4198 = vst [vmem:[#allocation5_spill] sm:$0xff] %v2782_v24  ;;  %2312 = vmatmul.msk.f32.vlgmr.msra.gmra.mxu3 %vm439_vm1, %v2782_v24  ;;  %v359_v30 = vsel %vm356_vm0, %v357_v22, %v358_v25  ;;  %v2805_v34 = vsel %vm356_vm0, %v398_v14, %v400_v29  ;;  %v2817_v38 = vld [vmem:[%s2734_s10 + $0xd8] sm:$0xff]  ;;  %v2820_v39 = vld [vmem:[%s2734_s10 + $0xe0] sm:$0xff]  ;;  %v382_v43 = vrot.slane %v2811_v36, 1  ;;  %v383_v44 = vrot.slane %v2814_v37, 1  ;;  %v2902_v9 = vld [vmem:[%s2734_s10 + $0xf0] sm:$0xff] }
  0x19   : > { %4199 = vst [vmem:[#allocation6_spill] sm:$0xff] %v2786_v26  ;;  %2288 = vmatmul.msk.f32.vlgmr.msra.gmra.mxu0 %vm439_vm1, %v359_v30  ;;  %v2808_v35 = vsel %vm356_vm0, %v418_v16, %v420_v31  ;;  %v2823_v40 = vld [vmem:[%s2734_s10 + $0x138] sm:$0xff]  ;;  %v2826_v41 = vld [vmem:[%s2734_s10 + $0x140] sm:$0xff]  ;;  %v361_v42 = vsel %vm356_vm0, %v358_v25, %v360_v32  ;;  %v402_v47 = vrot.slane %v2817_v38, 1  ;;  %v403_v48 = vrot.slane %v2820_v39, 1  ;;  %v2908_v14 = vld [vmem:[%s2734_s10 + $0x150] sm:$0xff] }
  0x1a   : > { %4200 = vst [vmem:[#allocation7_spill] sm:$0xff] %v2802_v33  ;;  %v2838_v45 = vld [vmem:[%s2734_s10 + $0x18] sm:$0xff]  ;;  %v2841_v46 = vld [vmem:[%s2734_s10 + $0x20] sm:$0xff]  ;;  %v422_v49 = vrot.slane %v2823_v40, 1  ;;  %v423_v50 = vrot.slane %v2826_v41, 1  ;;  %v2851_v53 = vsel %vm356_vm0, %v382_v43, %v383_v44  ;;  %v387_v22 = vrot.slane %v2896_v4, 1 }
  0x1b   : > { %4201 = vst [vmem:[#allocation8_spill] sm:$0xff] %v2805_v34  ;;  %v362_v51 = vrot.slane %v2838_v45, 1  ;;  %v363_v52 = vrot.slane %v2841_v46, 1  ;;  %v2854_v54 = vsel %vm356_vm0, %v402_v47, %v403_v48  ;;  %v2860_v56 = vld [vmem:[%s2734_s10 + $0x88] sm:$0x3]  ;;  %v2899_v8 = vld [vmem:[%s2734_s10 + $0x98] sm:$0xff] }
  0x1c   : > { %4202 = vst [vmem:[#allocation9_spill] sm:$0xff] %v2808_v35  ;;  %v2857_v55 = vsel %vm356_vm0, %v422_v49, %v423_v50  ;;  %v2863_v57 = vld [vmem:[%s2734_s10 + $0xe8] sm:$0x3]  ;;  %v385_v60 = vrot.slane %v2860_v56, 1  ;;  %v2905_v11 = vld [vmem:[%s2734_s10 + $0xf8] sm:$0xff]  ;;  %v388_v25 = vrot.slane %v2899_v8, 1 }
  0x1d   : > { %4203 = vst [vmem:[#allocation10_spill] sm:$0xff] %v2823_v40  ;;  %v2866_v58 = vld [vmem:[%s2734_s10 + $0x148] sm:$0x3]  ;;  %v2871_v59 = vsel %vm356_vm0, %v362_v51, %v363_v52  ;;  %v405_v62 = vrot.slane %v2863_v57, 1  ;;  %v2911_v15 = vld [vmem:[%s2734_s10 + $0x158] sm:$0xff]  ;;  %v2925_v27 = vld [vmem:[%s2734_s10 + $0x30] sm:$0xff] }
  0x1e   : > { %4204 = vst [vmem:[#allocation11_spill] sm:$0xff] %v2826_v41  ;;  %2297 = vmatmul.msk.f32.gmra.mxu1 %vm439_vm1, %v2802_v33  ;;  %v2879_v61 = vld [vmem:[%s2734_s10 + $0x28] sm:$0x3]  ;;  %v425_v63 = vrot.slane %v2866_v58, 1  ;;  %v2887_v1 = vsel %vm356_vm0, %v383_v44, %v385_v60  ;;  %v2928_v29 = vld [vmem:[%s2734_s10 + $0x38] sm:$0xff]  ;;  %v407_v30 = vrot.slane %v2902_v9, 1  ;;  %v2939_v47 = vsel %vm356_vm0, %v387_v22, %v388_v25 }
  0x1f   : > { %2305 = vmatmul.msk.f32.gmra.mxu2 %vm439_vm1, %v2805_v34  ;;  %4205 = vst [vmem:[#allocation12_spill] sm:$0xff] %v2851_v53  ;;  %v365_v0 = vrot.slane %v2879_v61, 1  ;;  %v2890_v2 = vsel %vm356_vm0, %v403_v48, %v405_v62  ;;  %v408_v31 = vrot.slane %v2905_v11, 1  ;;  %v427_v32 = vrot.slane %v2908_v14, 1  ;;  %v2951_v51 = vld [vmem:[%s2734_s10 + $0x100] sm:$0x3] }
  0x20   : > { %2313 = vmatmul.msk.f32.gmra.mxu3 %vm439_vm1, %v2808_v35  ;;  %4206 = vst [vmem:[#allocation13_spill] sm:$0xff] %v2857_v55  ;;  %v2893_v3 = vsel %vm356_vm0, %v423_v50, %v425_v63  ;;  %v367_v43 = vrot.slane %v2925_v27, 1  ;;  %v368_v44 = vrot.slane %v2928_v29, 1  ;;  %v2948_v50 = vld [vmem:[%s2734_s10 + $0xa0] sm:$0x3]  ;;  %v2517_v22 = vld [vmem:[%s4115_s1 + $0x38] sm:$0xff] }
  0x21   : > { %2289 = vmatmul.msk.f32.gmra.mxu0 %vm439_vm1, %v361_v42  ;;  %4207 = vst [vmem:[#allocation14_spill] sm:$0xff] %v2866_v58  ;;  %v2916_v16 = vsel %vm356_vm0, %v363_v52, %v365_v0  ;;  %v428_v42 = vrot.slane %v2911_v15, 1  ;;  %v2942_v48 = vsel %vm356_vm0, %v407_v30, %v408_v31  ;;  %v2954_v52 = vld [vmem:[%s2734_s10 + $0x160] sm:$0x3]  ;;  %v390_v63 = vrot.slane %v2948_v50, 1  ;;  %v2484_v0 = vld [vmem:[%s4115_s1 + $0x30] sm:$0xff]  ;;  %1732 = vmatpush.msra.mxu3 %v2517_v22 }
  0x22   : > { %4208 = vst [vmem:[#allocation15_spill] sm:$0xff] %v2887_v1  ;;  %v2959_v60 = vsel %vm356_vm0, %v367_v43, %v368_v44  ;;  %v2962_v62 = vld [vmem:[%s2734_s10 + $0x40] sm:$0x3]  ;;  %v2451_v30 = vld [vmem:[%s4115_s1 + $0x28] sm:$0xff]  ;;  %v430_v43 = vrot.slane %v2954_v52, 1  ;;  %1575 = vmatpush.msra.mxu2 %v2484_v0  ;;  %v2996_v0 = vld [vmem:[%s2734_s10 + $0xb0] sm:$0xff] }
  0x23   : > { %4209 = vst [vmem:[#allocation16_spill] sm:$0xff] %v2893_v3  ;;  %v2945_v49 = vsel %vm356_vm0, %v427_v32, %v428_v42  ;;  %v410_v32 = vrot.slane %v2951_v51, 1  ;;  %1422 = vmatpush.msra.mxu1 %v2451_v30  ;;  %v2999_v22 = vld [vmem:[%s2734_s10 + $0x108] sm:$0xff]  ;;  %v3002_v30 = vld [vmem:[%s2734_s10 + $0x110] sm:$0xff] }
  0x24   : > { %4210 = vst [vmem:[#allocation17_spill] sm:$0xff] %v2908_v14  ;;  %v2990_v14 = vsel %vm356_vm0, %v428_v42, %v430_v43  ;;  %v3008_v41 = vld [vmem:[%s2734_s10 + $0x170] sm:$0xff]  ;;  %v393_v42 = vrot.slane %v2996_v0, 1  ;;  %v413_v43 = vrot.slane %v3002_v30, 1 }
  0x25   : > { %4211 = vst [vmem:[#allocation18_spill] sm:$0xff] %v2911_v15  ;;  %v370_v15 = vrot.slane %v2962_v62, 1  ;;  %v2987_v58 = vsel %vm356_vm0, %v408_v31, %v410_v32  ;;  %v3025_v32 = vld [vmem:[%s2734_s10 + $0x50] sm:$0xff] }
  0x26   : > { %2298 = vmatmul.msk.f32.gmra.mxu1 %vm439_vm1, %v2851_v53  ;;  %4212 = vst [vmem:[#allocation19_spill] sm:$0xff] %v2939_v47  ;;  %v373_v40 = vrot.slane %v3025_v32, 1 }
  0x27   : > { %2306 = vmatmul.msk.f32.gmra.mxu2 %vm439_vm1, %v2854_v54  ;;  %4213 = vst [vmem:[#allocation20_spill] sm:$0xff] %v2945_v49 }
  0x28   : > { %2314 = vmatmul.msk.f32.gmra.mxu3 %vm439_vm1, %v2857_v55  ;;  %4214 = vst [vmem:[#allocation21_spill] sm:$0xff] %v2951_v51  ;;  %v433_v55 = vrot.slane %v3008_v41, 1 }
  0x29   : > { %2290 = vmatmul.msk.f32.gmra.mxu0 %vm439_vm1, %v2871_v59  ;;  %4215 = vst [vmem:[#allocation22_spill] sm:$0xff] %v2954_v52  ;;  %v2993_v52 = vld [vmem:[%s2734_s10 + $0xa8] sm:$0xff] }
  0x2a   : > { %4217 = vst [vmem:[#allocation24_spill] sm:$0xff] %v2990_v14  ;;  %v392_v31 = vrot.slane %v2993_v52, 1 }
  0x2b   : > { %4218 = vst [vmem:[#allocation25_spill] sm:$0xff] %v3002_v30 }
  0x2c   : > { %4220 = vst [vmem:[#allocation27_spill] sm:$0xff] %v3008_v41  ;;  %v3039_v35 = vsel %vm356_vm0, %v392_v31, %v393_v42  ;;  %v3051_v41 = vld [vmem:[%s2734_s10 + $0x118] sm:$0x3] }
  0x2d   : > { %4221 = vst [vmem:[#allocation28_spill] sm:$0xff] %v3039_v35  ;;  %v3067_v31 = vld [vmem:[%s2734_s10 + $0x58] sm:$0x3] }
  0x2e   : > { %2299 = vmatmul.msk.f32.gmra.mxu1 %vm439_vm1, %v2887_v1  ;;  %4224 = vst [vmem:[#allocation31_spill] sm:$0xff] %v3051_v41 }
  0x2f   : > { %2307 = vmatmul.msk.f32.gmra.mxu2 %vm439_vm1, %v2890_v2 }
  0x30   : > { %2315 = vmatmul.msk.f32.gmra.mxu3 %vm439_vm1, %v2893_v3  ;;  %v3005_v3 = vld [vmem:[%s2734_s10 + $0x168] sm:$0xff] }
  0x31   : > { %2291 = vmatmul.msk.f32.gmra.mxu0 %vm439_vm1, %v2916_v16  ;;  %4219 = vst [vmem:[#allocation26_spill] sm:$0xff] %v3005_v3 }
  0x36   : > { %2300 = vmatmul.msk.f32.gmra.mxu1 %vm439_vm1, %v2939_v47 }
  0x37   : > { %2308 = vmatmul.msk.f32.gmra.mxu2 %vm439_vm1, %v2942_v48 }
  0x38   : > { %2316 = vmatmul.msk.f32.gmra.mxu3 %vm439_vm1, %v2945_v49  ;;  %v2984_v49 = vsel %vm356_vm0, %v388_v25, %v390_v63  ;;  %v3013_v25 = vsel %vm356_vm0, %v368_v44, %v370_v15  ;;  %v3022_v63 = vld [vmem:[%s2734_s10 + $0x48] sm:$0xff]  ;;  %v2550_v15 = vld [vmem:[%s4115_s1 + $0x40] sm:$0xff]  ;;  %v412_v44 = vrot.slane %v2999_v22, 1 }
  0x39   : > { %2292 = vmatmul.msk.f32.gmra.mxu0 %vm439_vm1, %v2959_v60  ;;  %4216 = vst [vmem:[#allocation23_spill] sm:$0xff] %v2984_v49  ;;  %v372_v26 = vrot.slane %v3022_v63, 1 }
  0x3a   : > { %1888 = vmatpush.msra.mxu0 %v2550_v15  ;;  %v3042_v13 = vsel %vm356_vm0, %v412_v44, %v413_v43  ;;  %v3054_v15 = vld [vmem:[%s2734_s10 + $0x178] sm:$0x3]  ;;  %v415_v44 = vrot.slane %v3051_v41, 1 }
  0x3b   : > { %4222 = vst [vmem:[#allocation29_spill] sm:$0xff] %v3042_v13  ;;  %v3059_v12 = vsel %vm356_vm0, %v372_v26, %v373_v40  ;;  %v435_v30 = vrot.slane %v3054_v15, 1  ;;  %v375_v26 = vrot.slane %v3067_v31, 1 }
  0x3d   : > { %v3086_v41 = vsel %vm356_vm0, %v373_v40, %v375_v26  ;;  %v798_v40 = vrot.slane %v2794_v28, 2  ;;  %v810_v26 = vrot.slane %v3022_v63, 2 }
  0x3e   : > { %2301 = vmatmul.msk.f32.gmra.mxu1 %vm439_vm1, %v2984_v49 }
  0x3f   : > { %2309 = vmatmul.msk.f32.gmra.mxu2 %vm439_vm1, %v2987_v58 }
  0x40   : > { %2317 = vmatmul.msk.f32.gmra.mxu3 %vm439_vm1, %v2990_v14  ;;  %v432_v14 = vrot.slane %v3005_v3, 1  ;;  %v3048_v3 = vld [vmem:[%s2734_s10 + $0xb8] sm:$0x3] }
  0x41   : > { %2293 = vmatmul.msk.f32.gmra.mxu0 %vm439_vm1, %v3013_v25 }
  0x42   : > { %v3045_v24 = vsel %vm356_vm0, %v432_v14, %v433_v55  ;;  %v395_v14 = vrot.slane %v3048_v3, 1 }
  0x43   : > { %4223 = vst [vmem:[#allocation30_spill] sm:$0xff] %v3045_v24 }
  0x44   : > { %v3075_v51 = vsel %vm356_vm0, %v393_v42, %v395_v14  ;;  %v795_v42 = vrot.slane %v2764_v18, 2  ;;  %v801_v14 = vrot.slane %v2841_v46, 2 }
  0x45   : > { %4225 = vst [vmem:[#allocation32_spill] sm:$0xff] %v3075_v51 }
  0x46   : > { %2302 = vmatmul.msk.f32.gmra.mxu1 %vm439_vm1, %v3039_v35 }
  0x47   : > { %2310 = vmatmul.msk.f32.gmra.mxu2 %vm439_vm1, %v3042_v13  ;;  %v3078_v13 = vsel %vm356_vm0, %v413_v43, %v415_v44  ;;  %v796_v43 = vrot.slane %v2773_v21, 2 }
  0x48   : > { %2318 = vmatmul.msk.f32.gmra.mxu3 %vm439_vm1, %v3045_v24  ;;  %v3081_v24 = vsel %vm356_vm0, %v433_v55, %v435_v30 }
  0x49   : > { %2294 = vmatmul.msk.f32.gmra.mxu0 %vm439_vm1, %v3059_v12  ;;  %4226 = vst [vmem:[#allocation33_spill] sm:$0xff] %v3081_v24  ;;  %v797_v55 = vsel %vm794_vm2, %v795_v42, %v796_v43  ;;  %v799_v30 = vsel %vm794_vm2, %v796_v43, %v798_v40  ;;  %v811_v42 = vrot.slane %v3025_v32, 2  ;;  %v813_v43 = vrot.slane %v3067_v31, 2 }
  0x4a   : > { %v815_v40 = vrot.slane %v2737_v5, 2 }
  0x4e   : > { %2303 = vmatmul.msk.f32.gmra.mxu1 %vm439_vm1, %v3075_v51 }
  0x4f   : > { %2311 = vmatmul.msk.f32.gmra.mxu2 %vm439_vm1, %v3078_v13 }
  0x50   : > { %2319 = vmatmul.msk.f32.gmra.mxu3 %vm439_vm1, %v3081_v24 }
  0x51   : > { %2295 = vmatmul.msk.f32.gmra.mxu0 %vm439_vm1, %v3086_v41 }
  0x56   : > { %2320 = vmatmul.msk.f32.vlgmr.msrb.gmra.mxu1 %vm439_vm1, %v2764_v18  ;;  %v800_v18 = vrot.slane %v2838_v45, 2 }
  0x57   : > { %2353 = vmatmul.msk.f32.vlgmr.msrb.gmra.mxu2 %vm439_vm1, %v797_v55  ;;  %v3178_v55 = vsel %vm794_vm2, %v811_v42, %v813_v43 }
  0x58   : > { %2386 = vmatmul.msk.f32.vlgmr.msrb.gmra.mxu3 %vm439_vm1, %v2838_v45  ;;  %v3116_v28 = vsel %vm794_vm2, %v800_v18, %v801_v14 }
  0x59   : > { %2419 = vmatmul.msk.f32.vlgmr.msrb.gmra.mxu0 %vm439_vm1, %v2871_v59 }
  0x5e   : > { %2321 = vmatmul.msk.f32.gmra.mxu1 %vm439_vm1, %v2773_v21  ;;  %v803_v21 = vrot.slane %v2879_v61, 2 }
  0x5f   : > { %2354 = vmatmul.msk.f32.gmra.mxu2 %vm439_vm1, %v799_v30  ;;  %v816_v30 = vrot.slane %v2740_v6, 2 }
  0x60   : > { %2387 = vmatmul.msk.f32.gmra.mxu3 %vm439_vm1, %v2841_v46  ;;  %v3128_v59 = vsel %vm794_vm2, %v801_v14, %v803_v21  ;;  %v818_v21 = vrot.slane %v2761_v17, 2  ;;  %v820_v17 = vrot.slane %v2811_v36, 2 }
  0x61   : > { %2420 = vmatmul.msk.f32.gmra.mxu0 %vm439_vm1, %v2916_v16  ;;  %v806_v16 = vrot.slane %v2928_v29, 2  ;;  %v3193_v18 = vsel %vm794_vm2, %v815_v40, %v816_v30 }
  0x62   : > { %4227 = vst [vmem:[#allocation34_spill] sm:$0xff] %v3193_v18 }
  0x66   : > { %2322 = vmatmul.msk.f32.gmra.mxu1 %vm439_vm1, %v2838_v45  ;;  %v805_v45 = vrot.slane %v2925_v27, 2 }
  0x67   : > { %2355 = vmatmul.msk.f32.gmra.mxu2 %vm439_vm1, %v3116_v28 }
  0x68   : > { %2388 = vmatmul.msk.f32.gmra.mxu3 %vm439_vm1, %v2925_v27  ;;  %v3141_v61 = vsel %vm794_vm2, %v805_v45, %v806_v16 }
  0x69   : > { %2421 = vmatmul.msk.f32.gmra.mxu0 %vm439_vm1, %v2959_v60 }
  0x6e   : > { %2323 = vmatmul.msk.f32.gmra.mxu1 %vm439_vm1, %v2841_v46  ;;  %v808_v46 = vrot.slane %v2962_v62, 2  ;;  %v3166_v62 = vsel %vm794_vm2, %v810_v26, %v811_v42  ;;  %v821_v42 = vrot.slane %v2814_v37, 2 }
  0x6f   : > { %2356 = vmatmul.msk.f32.gmra.mxu2 %vm439_vm1, %v3128_v59 }
  0x70   : > { %2389 = vmatmul.msk.f32.gmra.mxu3 %vm439_vm1, %v2928_v29  ;;  %v3153_v44 = vsel %vm794_vm2, %v806_v16, %v808_v46 }
  0x71   : > { %2422 = vmatmul.msk.f32.gmra.mxu0 %vm439_vm1, %v3013_v25 }
  0x76   : > { %2324 = vmatmul.msk.f32.gmra.mxu1 %vm439_vm1, %v2925_v27 }
  0x77   : > { %2357 = vmatmul.msk.f32.gmra.mxu2 %vm439_vm1, %v3141_v61 }
  0x78   : > { %2390 = vmatmul.msk.f32.gmra.mxu3 %vm439_vm1, %v3022_v63 }
  0x79   : > { %2423 = vmatmul.msk.f32.gmra.mxu0 %vm439_vm1, %v3059_v12 }
  0x7e   : > { %2325 = vmatmul.msk.f32.gmra.mxu1 %vm439_vm1, %v2928_v29 }
  0x7f   : > { %2358 = vmatmul.msk.f32.gmra.mxu2 %vm439_vm1, %v3153_v44 }
  0x80   : > { %2391 = vmatmul.msk.f32.gmra.mxu3 %vm439_vm1, %v3025_v32 }
  0x81   : > { %2424 = vmatmul.msk.f32.gmra.mxu0 %vm439_vm1, %v3086_v41 }
  0x86   : > { %2326 = vmatmul.msk.f32.gmra.mxu1 %vm439_vm1, %v3022_v63 }
  0x87   : > { %2359 = vmatmul.msk.f32.gmra.mxu2 %vm439_vm1, %v3166_v62 }
  0x88   : > { %2392 = vmatmul.msk.f32.gmra.mxu3 %vm439_vm1, %v2737_v5 }
  0x89   : > { %2425 = vmatmul.msk.f32.gmra.mxu0 %vm439_vm1, %v2767_v19 }
  0x8e   : > { %2327 = vmatmul.msk.f32.gmra.mxu1 %vm439_vm1, %v3025_v32 }
  0x8f   : > { %2360 = vmatmul.msk.f32.gmra.mxu2 %vm439_vm1, %v3178_v55 }
  0x90   : > { %2393 = vmatmul.msk.f32.gmra.mxu3 %vm439_vm1, %v2740_v6 }
  0x91   : > { %2426 = vmatmul.msk.f32.gmra.mxu0 %vm439_vm1, %v2802_v33 }
  0x93   : > { %v3190_v31 = vpop.f32.mrf.mxu1 }
  0x96   : > { %2328 = vmatmul.msk.f32.gmra.mxu1 %vm439_vm1, %v2737_v5  ;;  %v3197_v14 = vpop.f32.mrf.mxu0  ;;  %v3213_v5 = vsel %vm794_vm2, %v816_v30, %v818_v21  ;;  %v3234_v30 = vsel %vm794_vm2, %v820_v17, %v821_v42 }
  0x97   : > { %2361 = vmatmul.msk.f32.gmra.mxu2 %vm439_vm1, %v3193_v18  ;;  %4229 = vst [vmem:[#allocation36_spill] sm:$0xff] %v3213_v5 }
  0x98   : > { %2394 = vmatmul.msk.f32.gmra.mxu3 %vm439_vm1, %v2811_v36  ;;  %4231 = vst [vmem:[#allocation38_spill] sm:$0xff] %v3234_v30 }
  0x99   : > { %2427 = vmatmul.msk.f32.gmra.mxu0 %vm439_vm1, %v2851_v53 }
  0x9a   : > { %v3206_v45 = vpop.f32.mrf.mxu2 }
  0x9b   : > { %v3208_v16 = vpop.f32.mrf.mxu3  ;;  %v3210_v46 = vpop.f32.mrf.mxu1 }
  0x9c   : > { %4228 = vst [vmem:[#allocation35_spill] sm:$0xff] %v3208_v16  ;;  %v823_v16 = vrot.slane %v2860_v56, 2  ;;  %v825_v56 = vrot.slane %v2896_v4, 2 }
  0x9e   : > { %2329 = vmatmul.msk.f32.gmra.mxu1 %vm439_vm1, %v2740_v6  ;;  %v3217_v26 = vpop.f32.mrf.mxu0 }
  0x9f   : > { %2362 = vmatmul.msk.f32.gmra.mxu2 %vm439_vm1, %v3213_v5 }
  0xa0   : > { %2395 = vmatmul.msk.f32.gmra.mxu3 %vm439_vm1, %v2814_v37 }
  0xa1   : > { %2428 = vmatmul.msk.f32.gmra.mxu0 %vm439_vm1, %v2887_v1 }
  0xa2   : > { %v3227_v43 = vpop.f32.mrf.mxu2 }
  0xa3   : > { %v3229_v40 = vpop.f32.mrf.mxu3  ;;  %v3231_v6 = vpop.f32.mrf.mxu1 }
  0xa4   : > { %4230 = vst [vmem:[#allocation37_spill] sm:$0xff] %v3229_v40 }
  0xa6   : > { %2330 = vmatmul.msk.f32.gmra.mxu1 %vm439_vm1, %v2811_v36  ;;  %v3238_v21 = vpop.f32.mrf.mxu0  ;;  %v3254_v36 = vsel %vm794_vm2, %v821_v42, %v823_v16 }
  0xa7   : > { %2363 = vmatmul.msk.f32.gmra.mxu2 %vm439_vm1, %v3234_v30  ;;  %4233 = vst [vmem:[#allocation40_spill] sm:$0xff] %v3254_v36 }
  0xa8   : > { %2396 = vmatmul.msk.f32.gmra.mxu3 %vm439_vm1, %v2896_v4 }
  0xa9   : > { %2429 = vmatmul.msk.f32.gmra.mxu0 %vm439_vm1, %v2939_v47 }
  0xaa   : > { %v3247_v40 = vpop.f32.mrf.mxu2 }
  0xab   : > { %v3249_v17 = vpop.f32.mrf.mxu3  ;;  %v3251_v1 = vpop.f32.mrf.mxu1 }
  0xac   : > { %4232 = vst [vmem:[#allocation39_spill] sm:$0xff] %v3249_v17  ;;  %v826_v17 = vrot.slane %v2899_v8, 2 }
  0xae   : > { %2331 = vmatmul.msk.f32.gmra.mxu1 %vm439_vm1, %v2814_v37  ;;  %v3258_v30 = vpop.f32.mrf.mxu0  ;;  %v3275_v47 = vsel %vm794_vm2, %v825_v56, %v826_v17 }
  0xaf   : > { %2364 = vmatmul.msk.f32.gmra.mxu2 %vm439_vm1, %v3254_v36  ;;  %4235 = vst [vmem:[#allocation42_spill] sm:$0xff] %v3275_v47 }
  0xb0   : > { %2397 = vmatmul.msk.f32.gmra.mxu3 %vm439_vm1, %v2899_v8 }
  0xb1   : > { %2430 = vmatmul.msk.f32.gmra.mxu0 %vm439_vm1, %v2984_v49  ;;  %v828_v49 = vrot.slane %v2948_v50, 2  ;;  %v830_v50 = vrot.slane %v2993_v52, 2 }
  0xb2   : > { %v3268_v16 = vpop.f32.mrf.mxu2 }
  0xb3   : > { %v3270_v42 = vpop.f32.mrf.mxu3  ;;  %v3272_v37 = vpop.f32.mrf.mxu1 }
  0xb4   : > { %4234 = vst [vmem:[#allocation41_spill] sm:$0xff] %v3270_v42 }
  0xb6   : > { %2332 = vmatmul.msk.f32.gmra.mxu1 %vm439_vm1, %v2896_v4  ;;  %v3279_v36 = vpop.f32.mrf.mxu0  ;;  %v3295_v4 = vsel %vm794_vm2, %v826_v17, %v828_v49 }
  0xb7   : > { %2365 = vmatmul.msk.f32.gmra.mxu2 %vm439_vm1, %v3275_v47  ;;  %4237 = vst [vmem:[#allocation44_spill] sm:$0xff] %v3295_v4 }
  0xb8   : > { %2398 = vmatmul.msk.f32.gmra.mxu3 %vm439_vm1, %v2993_v52 }
  0xb9   : > { %2431 = vmatmul.msk.f32.gmra.mxu0 %vm439_vm1, %v3039_v35 }
  0xba   : > { %v3288_v42 = vpop.f32.mrf.mxu2 }
  0xbb   : > { %v3290_v56 = vpop.f32.mrf.mxu3  ;;  %v3292_v53 = vpop.f32.mrf.mxu1 }
  0xbc   : > { %4236 = vst [vmem:[#allocation43_spill] sm:$0xff] %v3290_v56  ;;  %v831_v56 = vrot.slane %v2996_v0, 2 }
  0xbe   : > { %2333 = vmatmul.msk.f32.gmra.mxu1 %vm439_vm1, %v2899_v8  ;;  %v3299_v47 = vpop.f32.mrf.mxu0  ;;  %v3316_v35 = vsel %vm794_vm2, %v830_v50, %v831_v56 }
  0xbf   : > { %2366 = vmatmul.msk.f32.gmra.mxu2 %vm439_vm1, %v3295_v4  ;;  %4240 = vst [vmem:[#allocation47_spill] sm:$0xff] %v3316_v35 }
  0xc0   : > { %2399 = vmatmul.msk.f32.gmra.mxu3 %vm439_vm1, %v2996_v0 }
  0xc1   : > { %2432 = vmatmul.msk.f32.gmra.mxu0 %vm439_vm1, %v3075_v51  ;;  %v833_v51 = vrot.slane %v3048_v3, 2  ;;  %v835_v3 = vrot.slane %v2743_v7, 2 }
  0xc2   : > { %v3309_v49 = vpop.f32.mrf.mxu2 }
  0xc3   : > { %4238 = vst [vmem:[#allocation45_spill] sm:$0xff] %v3309_v49  ;;  %v3311_v17 = vpop.f32.mrf.mxu3  ;;  %v3313_v8 = vpop.f32.mrf.mxu1 }
  0xc4   : > { %4239 = vst [vmem:[#allocation46_spill] sm:$0xff] %v3311_v17 }
  0xc6   : > { %2334 = vmatmul.msk.f32.gmra.mxu1 %vm439_vm1, %v2993_v52  ;;  %v3320_v4 = vpop.f32.mrf.mxu0  ;;  %v3336_v52 = vsel %vm794_vm2, %v831_v56, %v833_v51 }
  0xc7   : > { %2367 = vmatmul.msk.f32.gmra.mxu2 %vm439_vm1, %v3316_v35  ;;  %4243 = vst [vmem:[#allocation50_spill] sm:$0xff] %v3336_v52 }
  0xc8   : > { %2400 = vmatmul.msk.f32.gmra.mxu3 %vm439_vm1, %v2743_v7 }
  0xc9   : > { %2433 = vmatmul.msk.f32.gmra.mxu0 %vm439_vm1, %v2779_v23 }
  0xca   : > { %v3329_v17 = vpop.f32.mrf.mxu2 }
  0xcb   : > { %4241 = vst [vmem:[#allocation48_spill] sm:$0xff] %v3329_v17  ;;  %v3331_v50 = vpop.f32.mrf.mxu3  ;;  %v3333_v5 = vpop.f32.mrf.mxu1 }
  0xcc   : > { %4242 = vst [vmem:[#allocation49_spill] sm:$0xff] %v3331_v50  ;;  %v836_v50 = vrot.slane %v2748_v10, 2 }
  0xce   : > { %2335 = vmatmul.msk.f32.gmra.mxu1 %vm439_vm1, %v2996_v0  ;;  %v3340_v35 = vpop.f32.mrf.mxu0  ;;  %v3355_v23 = vsel %vm794_vm2, %v835_v3, %v836_v50 }
  0xcf   : > { %2368 = vmatmul.msk.f32.gmra.mxu2 %vm439_vm1, %v3336_v52  ;;  %4246 = vst [vmem:[#allocation53_spill] sm:$0xff] %v3355_v23 }
  0xd0   : > { %2401 = vmatmul.msk.f32.gmra.mxu3 %vm439_vm1, %v2748_v10 }
  0xd1   : > { %2434 = vmatmul.msk.f32.gmra.mxu0 %vm439_vm1, %v2805_v34  ;;  %v838_v34 = vrot.slane %v2770_v20, 2  ;;  %v840_v20 = vrot.slane %v2817_v38, 2 }
  0xd2   : > { %v3350_v51 = vpop.f32.mrf.mxu2 }
  0xd3   : > { %4244 = vst [vmem:[#allocation51_spill] sm:$0xff] %v3350_v51  ;;  %v3352_v56 = vpop.f32.mrf.mxu3  ;;  %v698_v0 = vpop.f32.mrf.mxu1 }
  0xd4   : > { %4245 = vst [vmem:[#allocation52_spill] sm:$0xff] %v3352_v56  ;;  %v699_v51 = vadd.f32 %v698_v0, %v3197_v14  ;;  %v841_v14 = vrot.slane %v2820_v39, 2 }
  0xd6   : > { %2336 = vmatmul.msk.f32.gmra.mxu1 %vm439_vm1, %v2743_v7  ;;  %v1268_v52 = vpop.f32.mrf.mxu0  ;;  %v3368_v7 = vsel %vm794_vm2, %v836_v50, %v838_v34 }
  0xd7   : > { %2369 = vmatmul.msk.f32.gmra.mxu2 %vm439_vm1, %v3355_v23 }
  0xd8   : > { %2402 = vmatmul.msk.f32.gmra.mxu3 %vm439_vm1, %v2817_v38 }
  0xd9   : > { %2435 = vmatmul.msk.f32.gmra.mxu0 %vm439_vm1, %v2854_v54 }
  0xda   : > { %v958_v56 = vpop.f32.mrf.mxu2 }
  0xdb   : > { %v1111_v3 = vpop.f32.mrf.mxu3  ;;  %v1054_v17 = vadd.f32 %v958_v56, %v699_v51  ;;  %v701_v49 = vpop.f32.mrf.mxu1 }
  0xdc   : > { %v702_v34 = vadd.f32 %v701_v49, %v3217_v26  ;;  %v843_v26 = vrot.slane %v2863_v57, 2  ;;  %v845_v57 = vrot.slane %v2902_v9, 2 }
  0xdd   : > { %v1207_v33 = vadd.f32 %v1111_v3, %v1054_v17 }
  0xde   : > { %2337 = vmatmul.msk.f32.gmra.mxu1 %vm439_vm1, %v2748_v10  ;;  %v1271_v23 = vpop.f32.mrf.mxu0 }
  0xdf   : > { %v3372_v18 = vadd.f32 %v1268_v52, %v1207_v33  ;;  %2370 = vmatmul.msk.f32.gmra.mxu2 %vm439_vm1, %v3368_v7  ;;  %v3384_v52 = vsel %vm794_vm2, %v840_v20, %v841_v14 }
  0xe0   : > { %2403 = vmatmul.msk.f32.gmra.mxu3 %vm439_vm1, %v2820_v39 }
  0xe1   : > { %2436 = vmatmul.msk.f32.gmra.mxu0 %vm439_vm1, %v2890_v2 }
  0xe2   : > { %v961_v17 = vpop.f32.mrf.mxu2 }
  0xe3   : > { %v1114_v10 = vpop.f32.mrf.mxu3  ;;  %v1055_v50 = vadd.f32 %v961_v17, %v702_v34  ;;  %v704_v33 = vpop.f32.mrf.mxu1 }
  0xe4   : > { %v705_v49 = vadd.f32 %v704_v33, %v3238_v21  ;;  %v846_v21 = vrot.slane %v2905_v11, 2 }
  0xe5   : > { %v1208_v51 = vadd.f32 %v1114_v10, %v1055_v50 }
  0xe6   : > { %2338 = vmatmul.msk.f32.gmra.mxu1 %vm439_vm1, %v2817_v38  ;;  %v1274_v56 = vpop.f32.mrf.mxu0 }
  0xe7   : > { %v3388_v0 = vadd.f32 %v1271_v23, %v1208_v51  ;;  %2371 = vmatmul.msk.f32.gmra.mxu2 %vm439_vm1, %v3384_v52  ;;  %v3399_v23 = vsel %vm794_vm2, %v841_v14, %v843_v26  ;;  %v3415_v26 = vsel %vm794_vm2, %v845_v57, %v846_v21 }
  0xe8   : > { %2404 = vmatmul.msk.f32.gmra.mxu3 %vm439_vm1, %v2902_v9 }
  0xe9   : > { %2437 = vmatmul.msk.f32.gmra.mxu0 %vm439_vm1, %v2942_v48 }
  0xea   : > { %v964_v3 = vpop.f32.mrf.mxu2 }
  0xeb   : > { %v1117_v20 = vpop.f32.mrf.mxu3  ;;  %v1056_v34 = vadd.f32 %v964_v3, %v705_v49  ;;  %v707_v38 = vpop.f32.mrf.mxu1 }
  0xec   : > { %v708_v14 = vadd.f32 %v707_v38, %v3258_v30  ;;  %v4248_v30 = vld [vmem:[#allocation21_spill] sm:$0xff] }
  0xed   : > { %v1209_v17 = vadd.f32 %v1117_v20, %v1056_v34  ;;  %v848_v34 = vrot.slane %v4248_v30, 2 }
  0xee   : > { %2339 = vmatmul.msk.f32.gmra.mxu1 %vm439_vm1, %v2820_v39  ;;  %v1277_v10 = vpop.f32.mrf.mxu0 }
  0xef   : > { %v3403_v50 = vadd.f32 %v1274_v56, %v1209_v17  ;;  %2372 = vmatmul.msk.f32.gmra.mxu2 %vm439_vm1, %v3399_v23  ;;  %v4249_v17 = vld [vmem:[#allocation29_spill] sm:$0xff] }
  0xf0   : > { %2405 = vmatmul.msk.f32.gmra.mxu3 %vm439_vm1, %v2905_v11 }
  0xf1   : > { %2438 = vmatmul.msk.f32.gmra.mxu0 %vm439_vm1, %v2987_v58 }
  0xf2   : > { %v967_v33 = vpop.f32.mrf.mxu2 }
  0xf3   : > { %v1120_v39 = vpop.f32.mrf.mxu3  ;;  %v1057_v51 = vadd.f32 %v967_v33, %v708_v14  ;;  %v710_v56 = vpop.f32.mrf.mxu1 }
  0xf4   : > { %v711_v38 = vadd.f32 %v710_v56, %v3279_v36  ;;  %v4251_v36 = vld [vmem:[#allocation25_spill] sm:$0xff]  ;;  %v850_v56 = vrot.slane %v2999_v22, 2 }
  0xf5   : > { %v1210_v49 = vadd.f32 %v1120_v39, %v1057_v51  ;;  %v851_v30 = vrot.slane %v4251_v36, 2 }
  0xf6   : > { %2340 = vmatmul.msk.f32.gmra.mxu1 %vm439_vm1, %v2902_v9  ;;  %v1280_v3 = vpop.f32.mrf.mxu0 }
  0xf7   : > { %v3419_v20 = vadd.f32 %v1277_v10, %v1210_v49  ;;  %2373 = vmatmul.msk.f32.gmra.mxu2 %vm439_vm1, %v3415_v26  ;;  %v3430_v10 = vsel %vm794_vm2, %v846_v21, %v848_v34 }
  0xf8   : > { %2406 = vmatmul.msk.f32.gmra.mxu3 %vm439_vm1, %v2999_v22 }
  0xf9   : > { %4247 = vst [vmem:[#allocation54_spill] sm:$0xff] %v3419_v20  ;;  %2439 = vmatmul.msk.f32.gmra.mxu0 %vm439_vm1, %v4249_v17 }
  0xfa   : > { %v970_v57 = vpop.f32.mrf.mxu2 }
  0xfb   : > { %v1123_v14 = vpop.f32.mrf.mxu3  ;;  %v1058_v33 = vadd.f32 %v970_v57, %v711_v38  ;;  %v713_v9 = vpop.f32.mrf.mxu1  ;;  %v3446_v57 = vsel %vm794_vm2, %v850_v56, %v851_v30 }
  0xfc   : > { %v714_v21 = vadd.f32 %v713_v9, %v3299_v47  ;;  %v4253_v47 = vld [vmem:[#allocation2_spill] sm:$0xff]  ;;  %v4254_v9 = vld [vmem:[#allocation31_spill] sm:$0xff] }
  0xfd   : > { %v1211_v39 = vadd.f32 %v1123_v14, %v1058_v33 }
  0xfe   : > { %2341 = vmatmul.msk.f32.gmra.mxu1 %vm439_vm1, %v2905_v11  ;;  %v1283_v51 = vpop.f32.mrf.mxu0 }
  0xff   : > { %v3434_v49 = vadd.f32 %v1280_v3, %v1211_v39  ;;  %2374 = vmatmul.msk.f32.gmra.mxu2 %vm439_vm1, %v3430_v10 }
 0x100   : > { %2407 = vmatmul.msk.f32.gmra.mxu3 %vm439_vm1, %v4251_v36 }
 0x101   : > { %4250 = vst [vmem:[#allocation21_spill] sm:$0xff] %v3434_v49  ;;  %2440 = vmatmul.msk.f32.gmra.mxu0 %vm439_vm1, %v3078_v13  ;;  %v853_v49 = vrot.slane %v4254_v9, 2 }
 0x102   : > { %v973_v34 = vpop.f32.mrf.mxu2 }
 0x103   : > { %v1126_v11 = vpop.f32.mrf.mxu3  ;;  %v1059_v38 = vadd.f32 %v973_v34, %v714_v21  ;;  %v716_v3 = vpop.f32.mrf.mxu1  ;;  %v4255_v34 = vld [vmem:[#allocation5_spill] sm:$0xff] }
 0x104   : > { %v717_v21 = vadd.f32 %v716_v3, %v3320_v4  ;;  %v4257_v4 = vld [vmem:[#allocation3_spill] sm:$0xff]  ;;  %v855_v3 = vrot.slane %v4253_v47, 2 }
 0x105   : > { %v1212_v14 = vadd.f32 %v1126_v11, %v1059_v38  ;;  %v856_v9 = vrot.slane %v4257_v4, 2 }
 0x106   : > { %2342 = vmatmul.msk.f32.gmra.mxu1 %vm439_vm1, %v2999_v22  ;;  %v1286_v33 = vpop.f32.mrf.mxu0 }
 0x107   : > { %v3450_v39 = vadd.f32 %v1283_v51, %v1212_v14  ;;  %2375 = vmatmul.msk.f32.gmra.mxu2 %vm439_vm1, %v3446_v57  ;;  %v3461_v51 = vsel %vm794_vm2, %v851_v30, %v853_v49  ;;  %v4258_v30 = vld [vmem:[#allocation9_spill] sm:$0xff] }
 0x108   : > { %2408 = vmatmul.msk.f32.gmra.mxu3 %vm439_vm1, %v4253_v47 }
 0x109   : > { %4252 = vst [vmem:[#allocation29_spill] sm:$0xff] %v3450_v39  ;;  %2441 = vmatmul.msk.f32.gmra.mxu0 %vm439_vm1, %v4255_v34 }
 0x10a   : > { %v976_v56 = vpop.f32.mrf.mxu2 }
 0x10b   : > { %v1129_v11 = vpop.f32.mrf.mxu3  ;;  %v1060_v38 = vadd.f32 %v976_v56, %v717_v21  ;;  %v719_v22 = vpop.f32.mrf.mxu1 }
 0x10c   : > { %v720_v49 = vadd.f32 %v719_v22, %v3340_v35  ;;  %v4261_v35 = vld [vmem:[#allocation10_spill] sm:$0xff] }
 0x10d   : > { %v1213_v14 = vadd.f32 %v1129_v11, %v1060_v38  ;;  %v3477_v11 = vsel %vm794_vm2, %v855_v3, %v856_v9  ;;  %v4262_v22 = vld [vmem:[#allocation6_spill] sm:$0xff] }
 0x10e   : > { %2343 = vmatmul.msk.f32.gmra.mxu1 %vm439_vm1, %v4251_v36  ;;  %v1289_v39 = vpop.f32.mrf.mxu0  ;;  %4259 = vst [vmem:[#allocation2_spill] sm:$0xff] %v3477_v11 }
 0x10f   : > { %v3465_v20 = vadd.f32 %v1286_v33, %v1213_v14  ;;  %2376 = vmatmul.msk.f32.gmra.mxu2 %vm439_vm1, %v3461_v51 }
 0x110   : > { %2409 = vmatmul.msk.f32.gmra.mxu3 %vm439_vm1, %v4257_v4 }
 0x111   : > { %4256 = vst [vmem:[#allocation25_spill] sm:$0xff] %v3465_v20  ;;  %2442 = vmatmul.msk.f32.gmra.mxu0 %vm439_vm1, %v4258_v30  ;;  %v858_v30 = vrot.slane %v4262_v22, 2 }
 0x112   : > { %v979_v21 = vpop.f32.mrf.mxu2 }
 0x113   : > { %v1132_v36 = vpop.f32.mrf.mxu3  ;;  %v1061_v56 = vadd.f32 %v979_v21, %v720_v49  ;;  %v722_v33 = vpop.f32.mrf.mxu1  ;;  %v4263_v21 = vld [vmem:[#allocation13_spill] sm:$0xff] }
 0x114   : > { %v723_v49 = vadd.f32 %v722_v33, %v3190_v31  ;;  %v4265_v31 = vld [vmem:[#allocation11_spill] sm:$0xff]  ;;  %v860_v33 = vrot.slane %v4261_v35, 2 }
 0x115   : > { %v1214_v38 = vadd.f32 %v1132_v36, %v1061_v56  ;;  %v861_v22 = vrot.slane %v4265_v31, 2 }
 0x116   : > { %2344 = vmatmul.msk.f32.gmra.mxu1 %vm439_vm1, %v4253_v47  ;;  %v1292_v14 = vpop.f32.mrf.mxu0 }
 0x117   : > { %v3481_v20 = vadd.f32 %v1289_v39, %v1214_v38  ;;  %2377 = vmatmul.msk.f32.gmra.mxu2 %vm439_vm1, %v3477_v11  ;;  %v3492_v39 = vsel %vm794_vm2, %v856_v9, %v858_v30  ;;  %v4266_v30 = vld [vmem:[#allocation16_spill] sm:$0xff] }
 0x118   : > { %2410 = vmatmul.msk.f32.gmra.mxu3 %vm439_vm1, %v4261_v35 }
 0x119   : > { %4260 = vst [vmem:[#allocation31_spill] sm:$0xff] %v3481_v20  ;;  %2443 = vmatmul.msk.f32.gmra.mxu0 %vm439_vm1, %v4263_v21 }
 0x11a   : > { %v982_v3 = vpop.f32.mrf.mxu2 }
 0x11b   : > { %v1135_v36 = vpop.f32.mrf.mxu3  ;;  %v1062_v56 = vadd.f32 %v982_v3, %v723_v49  ;;  %v725_v47 = vpop.f32.mrf.mxu1 }
 0x11c   : > { %v726_v9 = vadd.f32 %v725_v47, %v3210_v46  ;;  %v4269_v46 = vld [vmem:[#allocation17_spill] sm:$0xff]  ;;  %v4270_v47 = vld [vmem:[#allocation14_spill] sm:$0xff] }
 0x11d   : > { %v1215_v38 = vadd.f32 %v1135_v36, %v1062_v56  ;;  %v3508_v36 = vsel %vm794_vm2, %v860_v33, %v861_v22 }
 0x11e   : > { %2345 = vmatmul.msk.f32.gmra.mxu1 %vm439_vm1, %v4257_v4  ;;  %v1295_v20 = vpop.f32.mrf.mxu0  ;;  %4267 = vst [vmem:[#allocation3_spill] sm:$0xff] %v3508_v36 }
 0x11f   : > { %v3496_v11 = vadd.f32 %v1292_v14, %v1215_v38  ;;  %2378 = vmatmul.msk.f32.gmra.mxu2 %vm439_vm1, %v3492_v39 }
 0x120   : > { %2411 = vmatmul.msk.f32.gmra.mxu3 %vm439_vm1, %v4265_v31 }
 0x121   : > { %4264 = vst [vmem:[#allocation5_spill] sm:$0xff] %v3496_v11  ;;  %2444 = vmatmul.msk.f32.gmra.mxu0 %vm439_vm1, %v4266_v30  ;;  %v863_v30 = vrot.slane %v4270_v47, 2 }
 0x122   : > { %v985_v49 = vpop.f32.mrf.mxu2 }
 0x123   : > { %v1138_v4 = vpop.f32.mrf.mxu3  ;;  %v1063_v3 = vadd.f32 %v985_v49, %v726_v9  ;;  %v728_v14 = vpop.f32.mrf.mxu1  ;;  %v4271_v49 = vld [vmem:[#allocation20_spill] sm:$0xff] }
 0x124   : > { %v729_v9 = vadd.f32 %v728_v14, %v3231_v6  ;;  %v4273_v6 = vld [vmem:[#allocation18_spill] sm:$0xff]  ;;  %v865_v14 = vrot.slane %v4269_v46, 2 }
 0x125   : > { %v1216_v56 = vadd.f32 %v1138_v4, %v1063_v3  ;;  %v866_v47 = vrot.slane %v4273_v6, 2 }
 0x126   : > { %2346 = vmatmul.msk.f32.gmra.mxu1 %vm439_vm1, %v4261_v35  ;;  %v1298_v38 = vpop.f32.mrf.mxu0 }
 0x127   : > { %v3512_v11 = vadd.f32 %v1295_v20, %v1216_v56  ;;  %2379 = vmatmul.msk.f32.gmra.mxu2 %vm439_vm1, %v3508_v36  ;;  %v3523_v20 = vsel %vm794_vm2, %v861_v22, %v863_v30  ;;  %v4274_v30 = vld [vmem:[#allocation24_spill] sm:$0xff] }
 0x128   : > { %2412 = vmatmul.msk.f32.gmra.mxu3 %vm439_vm1, %v4269_v46 }
 0x129   : > { %4268 = vst [vmem:[#allocation10_spill] sm:$0xff] %v3512_v11  ;;  %2445 = vmatmul.msk.f32.gmra.mxu0 %vm439_vm1, %v4271_v49 }
 0x12a   : > { %v988_v33 = vpop.f32.mrf.mxu2 }
 0x12b   : > { %v1141_v4 = vpop.f32.mrf.mxu3  ;;  %v1064_v3 = vadd.f32 %v988_v33, %v729_v9  ;;  %v731_v35 = vpop.f32.mrf.mxu1 }
 0x12c   : > { %v732_v22 = vadd.f32 %v731_v35, %v3251_v1  ;;  %v4277_v1 = vld [vmem:[#allocation26_spill] sm:$0xff] }
 0x12d   : > { %v1217_v56 = vadd.f32 %v1141_v4, %v1064_v3  ;;  %v3539_v4 = vsel %vm794_vm2, %v865_v14, %v866_v47  ;;  %v4278_v35 = vld [vmem:[#allocation22_spill] sm:$0xff] }
 0x12e   : > { %2347 = vmatmul.msk.f32.gmra.mxu1 %vm439_vm1, %v4265_v31  ;;  %v1301_v11 = vpop.f32.mrf.mxu0  ;;  %4275 = vst [vmem:[#allocation13_spill] sm:$0xff] %v3539_v4  ;;  %v4279_v14 = vld [vmem:[#allocation30_spill] sm:$0xff] }
 0x12f   : > { %v3527_v36 = vadd.f32 %v1298_v38, %v1217_v56  ;;  %2380 = vmatmul.msk.f32.gmra.mxu2 %vm439_vm1, %v3523_v20 }
 0x130   : > { %2413 = vmatmul.msk.f32.gmra.mxu3 %vm439_vm1, %v4273_v6 }
 0x131   : > { %4272 = vst [vmem:[#allocation6_spill] sm:$0xff] %v3527_v36  ;;  %2446 = vmatmul.msk.f32.gmra.mxu0 %vm439_vm1, %v4274_v30 }
 0x132   : > { %v991_v9 = vpop.f32.mrf.mxu2 }
 0x133   : > { %v1144_v31 = vpop.f32.mrf.mxu3  ;;  %v1065_v33 = vadd.f32 %v991_v9, %v732_v22  ;;  %v734_v38 = vpop.f32.mrf.mxu1  ;;  %v868_v22 = vrot.slane %v4278_v35, 2  ;;  %v870_v35 = vrot.slane %v4277_v1, 2 }
 0x134   : > { %v735_v9 = vadd.f32 %v734_v38, %v3272_v37  ;;  %v4281_v37 = vld [vmem:[#allocation27_spill] sm:$0xff] }
 0x135   : > { %v1218_v3 = vadd.f32 %v1144_v31, %v1065_v33  ;;  %v3565_v38 = vld [vmem:[%s2734_s10 + $0x188] sm:$0xff] }
 0x136   : > { %2348 = vmatmul.msk.f32.gmra.mxu1 %vm439_vm1, %v4269_v46  ;;  %v1304_v56 = vpop.f32.mrf.mxu0 }
 0x137   : > { %v3543_v36 = vadd.f32 %v1301_v11, %v1218_v3  ;;  %2381 = vmatmul.msk.f32.gmra.mxu2 %vm439_vm1, %v3539_v4  ;;  %v3554_v3 = vsel %vm794_vm2, %v866_v47, %v868_v22  ;;  %v871_v47 = vrot.slane %v4281_v37, 2 }
 0x138   : > { %2414 = vmatmul.msk.f32.gmra.mxu3 %vm439_vm1, %v4277_v1 }
 0x139   : > { %4276 = vst [vmem:[#allocation11_spill] sm:$0xff] %v3543_v36  ;;  %2447 = vmatmul.msk.f32.gmra.mxu0 %vm439_vm1, %v4279_v14 }
 0x13a   : > { %v994_v31 = vpop.f32.mrf.mxu2 }
 0x13b   : > { %v1147_v46 = vpop.f32.mrf.mxu3  ;;  %v1066_v33 = vadd.f32 %v994_v31, %v735_v9  ;;  %v737_v11 = vpop.f32.mrf.mxu1  ;;  %v3571_v9 = vld [vmem:[%s2734_s10 + $0x180] sm:$0xff]  ;;  %v1241_v31 = vrot.slane %v3565_v38, 1 }
 0x13c   : > { %v738_v22 = vadd.f32 %v737_v11, %v3292_v53  ;;  %4282 = vst [vmem:[#allocation14_spill] sm:$0xff] %v3571_v9 }
 0x13d   : > { %v1219_v36 = vadd.f32 %v1147_v46, %v1066_v33 }
 0x13e   : > { %2349 = vmatmul.msk.f32.gmra.mxu1 %vm439_vm1, %v4273_v6  ;;  %v1307_v30 = vpop.f32.mrf.mxu0 }
 0x13f   : > { %v3558_v4 = vadd.f32 %v1304_v56, %v1219_v36  ;;  %2382 = vmatmul.msk.f32.gmra.mxu2 %vm439_vm1, %v3554_v3  ;;  %v1240_v56 = vrot.slane %v3571_v9, 1 }
 0x140   : > { %2415 = vmatmul.msk.f32.gmra.mxu3 %vm439_vm1, %v4281_v37 }
 0x141   : > { %4280 = vst [vmem:[#allocation17_spill] sm:$0xff] %v3558_v4  ;;  %2448 = vmatmul.msk.f32.gmra.mxu0 %vm439_vm1, %v3081_v24  ;;  %v3578_v4 = vsel %vm794_vm2, %v870_v35, %v871_v47  ;;  %v3583_v11 = vsel %vm356_vm0, %v1240_v56, %v1241_v31  ;;  %v873_v35 = vrot.slane %v3054_v15, 2 }
 0x142   : > { %v997_v36 = vpop.f32.mrf.mxu2 }
 0x143   : > { %v1150_v6 = vpop.f32.mrf.mxu3  ;;  %v1067_v46 = vadd.f32 %v997_v36, %v738_v22  ;;  %v740_v33 = vpop.f32.mrf.mxu1  ;;  %v3592_v22 = vld [vmem:[%s2734_s10 + $0x190] sm:$0x3] }
 0x144   : > { %v741_v36 = vadd.f32 %v740_v33, %v3313_v8 }
 0x145   : > { %v1220_v14 = vadd.f32 %v1150_v6, %v1067_v46  ;;  %v3600_v46 = vsel %vm794_vm2, %v871_v47, %v873_v35 }
 0x146   : > { %2350 = vmatmul.msk.f32.gmra.mxu1 %vm439_vm1, %v4277_v1  ;;  %v1310_v53 = vpop.f32.mrf.mxu0 }
 0x147   : > { %v3585_v24 = vadd.f32 %v1307_v30, %v1220_v14  ;;  %2383 = vmatmul.msk.f32.gmra.mxu2 %vm439_vm1, %v3578_v4  ;;  %v1243_v30 = vrot.slane %v3592_v22, 1 }
 0x148   : > { %2416 = vmatmul.msk.f32.gmra.mxu3 %vm439_vm1, %v3571_v9 }
 0x149   : > { %4283 = vst [vmem:[#allocation20_spill] sm:$0xff] %v3585_v24  ;;  %2449 = vmatmul.msk.f32.gmra.mxu0 %vm439_vm1, %v3583_v11  ;;  %v3605_v15 = vsel %vm356_vm0, %v1241_v31, %v1243_v30 }
 0x14a   : > { %v1000_v1 = vpop.f32.mrf.mxu2 }
 0x14b   : > { %v1153_v6 = vpop.f32.mrf.mxu3  ;;  %v1068_v14 = vadd.f32 %v1000_v1, %v741_v36  ;;  %v743_v56 = vpop.f32.mrf.mxu1 }
 0x14c   : > { %v744_v33 = vadd.f32 %v743_v56, %v3333_v5 }
 0x14d   : > { %v1221_v24 = vadd.f32 %v1153_v6, %v1068_v14 }
 0x14e   : > { %2351 = vmatmul.msk.f32.gmra.mxu1 %vm439_vm1, %v4281_v37  ;;  %v1313_v9 = vpop.f32.mrf.mxu0 }
 0x14f   : > { %v3607_v8 = vadd.f32 %v1310_v53, %v1221_v24  ;;  %2384 = vmatmul.msk.f32.gmra.mxu2 %vm439_vm1, %v3600_v46 }
 0x150   : > { %2417 = vmatmul.msk.f32.gmra.mxu3 %vm439_vm1, %v3565_v38 }
 0x151   : > { %2450 = vmatmul.msk.f32.gmra.mxu0 %vm439_vm1, %v3605_v15 }
 0x152   : > { %v1003_v47 = vpop.f32.mrf.mxu2 }
 0x153   : > { %v1156_v35 = vpop.f32.mrf.mxu3  ;;  %v1069_v37 = vadd.f32 %v1003_v47, %v744_v33  ;;  %v746_v36 = vpop.f32.mrf.mxu1 }
 0x154   : > { %v747_v5 = vadd.f32 %v746_v36, %v3206_v45 }
 0x155   : > { %v1222_v1 = vadd.f32 %v1156_v35, %v1069_v37 }
 0x156   : > { %2452 = vmatmul.msk.f32.vlgmr.msra.gmra.mxu1 %vm439_vm1, %v3116_v28  ;;  %v1316_v24 = vpop.f32.mrf.mxu0 }
 0x157   : > { %v3618_v31 = vadd.f32 %v1313_v9, %v1222_v1  ;;  %2485 = vmatmul.msk.f32.vlgmr.msra.gmra.mxu2 %vm439_vm1, %v2925_v27 }
 0x158   : > { %2518 = vmatmul.msk.f32.vlgmr.msra.gmra.mxu3 %vm439_vm1, %v2959_v60 }
 0x159   : > { %2551 = vmatmul.msk.f32.vlgmr.msra.gmra.mxu0 %vm439_vm1, %v3141_v61 }
 0x15a   : > { %v1006_v53 = vpop.f32.mrf.mxu2 }
 0x15b   : > { %v1159_v6 = vpop.f32.mrf.mxu3  ;;  %v1070_v30 = vadd.f32 %v1006_v53, %v747_v5  ;;  %v749_v14 = vpop.f32.mrf.mxu1 }
 0x15c   : > { %v750_v27 = vadd.f32 %v749_v14, %v3227_v43 }
 0x15d   : > { %v1223_v56 = vadd.f32 %v1159_v6, %v1070_v30 }
 0x15e   : > { %2453 = vmatmul.msk.f32.gmra.mxu1 %vm439_vm1, %v3128_v59  ;;  %v1319_v28 = vpop.f32.mrf.mxu0 }
 0x15f   : > { %v3629_v9 = vadd.f32 %v1316_v24, %v1223_v56  ;;  %2486 = vmatmul.msk.f32.gmra.mxu2 %vm439_vm1, %v2928_v29 }
 0x160   : > { %2519 = vmatmul.msk.f32.gmra.mxu3 %vm439_vm1, %v3013_v25 }
 0x161   : > { %2552 = vmatmul.msk.f32.gmra.mxu0 %vm439_vm1, %v3153_v44 }
 0x162   : > { %v1009_v60 = vpop.f32.mrf.mxu2 }
 0x163   : > { %v1162_v45 = vpop.f32.mrf.mxu3  ;;  %v1071_v33 = vadd.f32 %v1009_v60, %v750_v27  ;;  %v752_v47 = vpop.f32.mrf.mxu1 }
 0x164   : > { %v753_v29 = vadd.f32 %v752_v47, %v3247_v40  ;;  %v2618_v47 = vld [vmem:[%s2734_s10 + $0x68] sm:$0xff] }
 0x165   : > { %v1224_v35 = vadd.f32 %v1162_v45, %v1071_v33 }
 0x166   : > { %2454 = vmatmul.msk.f32.gmra.mxu1 %vm439_vm1, %v3141_v61  ;;  %v1322_v59 = vpop.f32.mrf.mxu0 }
 0x167   : > { %v3640_v37 = vadd.f32 %v1319_v28, %v1224_v35  ;;  %2487 = vmatmul.msk.f32.gmra.mxu2 %vm439_vm1, %v3022_v63 }
 0x168   : > { %2520 = vmatmul.msk.f32.gmra.mxu3 %vm439_vm1, %v3059_v12 }
 0x169   : > { %2553 = vmatmul.msk.f32.gmra.mxu0 %vm439_vm1, %v3166_v62 }
 0x16a   : > { %v1012_v25 = vpop.f32.mrf.mxu2 }
 0x16b   : > { %v1165_v43 = vpop.f32.mrf.mxu3  ;;  %v1072_v36 = vadd.f32 %v1012_v25, %v753_v29  ;;  %v755_v1 = vpop.f32.mrf.mxu1 }
 0x16c   : > { %v756_v12 = vadd.f32 %v755_v1, %v3268_v16  ;;  %v4284_v16 = vld [vmem:[#allocation34_spill] sm:$0xff] }
 0x16d   : > { %v1225_v24 = vadd.f32 %v1165_v43, %v1072_v36 }
 0x16e   : > { %2455 = vmatmul.msk.f32.gmra.mxu1 %vm439_vm1, %v3153_v44  ;;  %v1325_v61 = vpop.f32.mrf.mxu0 }
 0x16f   : > { %v3651_v5 = vadd.f32 %v1322_v59, %v1225_v24  ;;  %2488 = vmatmul.msk.f32.gmra.mxu2 %vm439_vm1, %v3025_v32  ;;  %v2617_v32 = vld [vmem:[%s2734_s10 + $0x60] sm:$0xff]  ;;  %v4287_v59 = vld [vmem:[#allocation36_spill] sm:$0xff] }
 0x170   : > { %2521 = vmatmul.msk.f32.gmra.mxu3 %vm439_vm1, %v3086_v41 }
 0x171   : > { %2554 = vmatmul.msk.f32.gmra.mxu0 %vm439_vm1, %v3178_v55 }
 0x172   : > { %v1015_v63 = vpop.f32.mrf.mxu2 }
 0x173   : > { %v1168_v40 = vpop.f32.mrf.mxu3  ;;  %v1073_v53 = vadd.f32 %v1015_v63, %v756_v12  ;;  %v758_v6 = vpop.f32.mrf.mxu1  ;;  %v4288_v12 = vld [vmem:[#allocation12_spill] sm:$0xff] }
 0x174   : > { %v759_v41 = vadd.f32 %v758_v6, %v3288_v42  ;;  %v4286_v42 = vld [vmem:[#allocation45_spill] sm:$0xff]  ;;  %v4289_v63 = vld [vmem:[#allocation48_spill] sm:$0xff] }
 0x175   : > { %v1226_v30 = vadd.f32 %v1168_v40, %v1073_v53  ;;  %v4290_v53 = vld [vmem:[#allocation38_spill] sm:$0xff] }
 0x176   : > { %2456 = vmatmul.msk.f32.gmra.mxu1 %vm439_vm1, %v3166_v62  ;;  %v1328_v44 = vpop.f32.mrf.mxu0 }
 0x177   : > { %v3662_v14 = vadd.f32 %v1325_v61, %v1226_v30  ;;  %2489 = vmatmul.msk.f32.gmra.mxu2 %vm439_vm1, %v2617_v32  ;;  %v2619_v61 = vld [vmem:[%s2734_s10 + $0x78] sm:$0xff] }
 0x178   : > { %2522 = vmatmul.msk.f32.gmra.mxu3 %vm439_vm1, %v2767_v19  ;;  %v4285_v19 = vld [vmem:[#allocation7_spill] sm:$0xff] }
 0x179   : > { %2555 = vmatmul.msk.f32.gmra.mxu0 %vm439_vm1, %v4284_v16 }
 0x17a   : > { %v1018_v56 = vpop.f32.mrf.mxu2 }
 0x17b   : > { %v1171_v28 = vpop.f32.mrf.mxu3  ;;  %v1074_v27 = vadd.f32 %v1018_v56, %v759_v41  ;;  %v761_v60 = vpop.f32.mrf.mxu1 }
 0x17c   : > { %v762_v35 = vadd.f32 %v761_v60, %v4286_v42  ;;  %v4292_v60 = vld [vmem:[#allocation51_spill] sm:$0xff] }
 0x17d   : > { %v1227_v62 = vadd.f32 %v1171_v28, %v1074_v27  ;;  %v2620_v28 = vld [vmem:[%s2734_s10 + $0x80] sm:$0xff]  ;;  %v4291_v27 = vld [vmem:[#allocation15_spill] sm:$0xff] }
 0x17e   : > { %2457 = vmatmul.msk.f32.gmra.mxu1 %vm439_vm1, %v3178_v55  ;;  %v1331_v45 = vpop.f32.mrf.mxu0 }
 0x17f   : > { %v3673_v33 = vadd.f32 %v1328_v44, %v1227_v62  ;;  %2490 = vmatmul.msk.f32.gmra.mxu2 %vm439_vm1, %v2618_v47 }
 0x180   : > { %2523 = vmatmul.msk.f32.gmra.mxu3 %vm439_vm1, %v4285_v19 }
 0x181   : > { %2556 = vmatmul.msk.f32.gmra.mxu0 %vm439_vm1, %v4287_v59 }
 0x182   : > { %v1021_v29 = vpop.f32.mrf.mxu2 }
 0x183   : > { %v1174_v25 = vpop.f32.mrf.mxu3  ;;  %v1075_v43 = vadd.f32 %v1021_v29, %v762_v35  ;;  %v764_v36 = vpop.f32.mrf.mxu1 }
 0x184   : > { %v765_v40 = vadd.f32 %v764_v36, %v4289_v63  ;;  %v4294_v36 = vld [vmem:[#allocation19_spill] sm:$0xff] }
 0x185   : > { %v1228_v55 = vadd.f32 %v1174_v25, %v1075_v43  ;;  %v2621_v43 = vld [vmem:[%s2734_s10 + $0x90] sm:$0xff] }
 0x186   : > { %2458 = vmatmul.msk.f32.gmra.mxu1 %vm439_vm1, %v4284_v16  ;;  %v1334_v1 = vpop.f32.mrf.mxu0 }
 0x187   : > { %v3684_v24 = vadd.f32 %v1331_v45, %v1228_v55  ;;  %2491 = vmatmul.msk.f32.gmra.mxu2 %vm439_vm1, %v2619_v61  ;;  %v4293_v45 = vld [vmem:[#allocation40_spill] sm:$0xff]  ;;  %v4295_v55 = vld [vmem:[#allocation35_spill] sm:$0xff]  ;;  %v4296_v61 = vld [vmem:[#allocation42_spill] sm:$0xff] }
 0x188   : > { %2524 = vmatmul.msk.f32.gmra.mxu3 %vm439_vm1, %v4288_v12 }
 0x189   : > { %2557 = vmatmul.msk.f32.gmra.mxu0 %vm439_vm1, %v4290_v53 }
 0x18a   : > { %v1024_v6 = vpop.f32.mrf.mxu2 }
 0x18b   : > { %v1177_v30 = vpop.f32.mrf.mxu3  ;;  %v1076_v44 = vadd.f32 %v1024_v6, %v765_v40  ;;  %v767_v32 = vpop.f32.mrf.mxu1 }
 0x18c   : > { %v768_v62 = vadd.f32 %v767_v32, %v4292_v60  ;;  %v2622_v32 = vld [vmem:[%s2734_s10 + $0x98] sm:$0xff] }
 0x18d   : > { %v1229_v41 = vadd.f32 %v1177_v30, %v1076_v44 }
 0x18e   : > { %2459 = vmatmul.msk.f32.gmra.mxu1 %vm439_vm1, %v4287_v59  ;;  %v1337_v16 = vpop.f32.mrf.mxu0 }
 0x18f   : > { %v3695_v56 = vadd.f32 %v1334_v1, %v1229_v41  ;;  %2492 = vmatmul.msk.f32.gmra.mxu2 %vm439_vm1, %v2620_v28  ;;  %v4297_v41 = vld [vmem:[#allocation23_spill] sm:$0xff] }
 0x190   : > { %2525 = vmatmul.msk.f32.gmra.mxu3 %vm439_vm1, %v4291_v27  ;;  %v4299_v27 = vld [vmem:[#allocation44_spill] sm:$0xff] }
 0x191   : > { %2558 = vmatmul.msk.f32.gmra.mxu0 %vm439_vm1, %v4293_v45 }
 0x192   : > { %v1027_v47 = vpop.f32.mrf.mxu2 }
 0x193   : > { %v1180_v19 = vpop.f32.mrf.mxu3  ;;  %v1077_v42 = vadd.f32 %v1027_v47, %v768_v62  ;;  %v770_v35 = vpop.f32.mrf.mxu1 }
 0x194   : > { %v771_v1 = vadd.f32 %v770_v35, %v4295_v55  ;;  %v4302_v55 = vld [vmem:[#allocation47_spill] sm:$0xff] }
 0x195   : > { %v1230_v59 = vadd.f32 %v1180_v19, %v1077_v42 }
 0x196   : > { %2460 = vmatmul.msk.f32.gmra.mxu1 %vm439_vm1, %v4290_v53  ;;  %v1340_v29 = vpop.f32.mrf.mxu0 }
 0x197   : > { %v3706_v25 = vadd.f32 %v1337_v16, %v1230_v59  ;;  %2493 = vmatmul.msk.f32.gmra.mxu2 %vm439_vm1, %v2621_v43  ;;  %v4298_v16 = vld [vmem:[#allocation37_spill] sm:$0xff]  ;;  %v2623_v59 = vld [vmem:[%s2734_s10 + $0xa8] sm:$0xff] }
 0x198   : > { %2526 = vmatmul.msk.f32.gmra.mxu3 %vm439_vm1, %v4294_v36  ;;  %v4301_v43 = vld [vmem:[#allocation39_spill] sm:$0xff] }
 0x199   : > { %2559 = vmatmul.msk.f32.gmra.mxu0 %vm439_vm1, %v4296_v61 }
 0x19a   : > { %v1030_v12 = vpop.f32.mrf.mxu2 }
 0x19b   : > { %v1183_v63 = vpop.f32.mrf.mxu3  ;;  %v1078_v40 = vadd.f32 %v1030_v12, %v771_v1  ;;  %v773_v6 = vpop.f32.mrf.mxu1 }
 0x19c   : > { %v774_v28 = vadd.f32 %v773_v6, %v4298_v16 }
 0x19d   : > { %v1231_v53 = vadd.f32 %v1183_v63, %v1078_v40 }
 0x19e   : > { %2461 = vmatmul.msk.f32.gmra.mxu1 %vm439_vm1, %v4293_v45  ;;  %v1343_v30 = vpop.f32.mrf.mxu0 }
 0x19f   : > { %v3717_v44 = vadd.f32 %v1340_v29, %v1231_v53  ;;  %2494 = vmatmul.msk.f32.gmra.mxu2 %vm439_vm1, %v2622_v32  ;;  %v4300_v29 = vld [vmem:[#allocation28_spill] sm:$0xff] }
 0x1a0   : > { %2527 = vmatmul.msk.f32.gmra.mxu3 %vm439_vm1, %v4297_v41  ;;  %v4303_v32 = vld [vmem:[#allocation32_spill] sm:$0xff]  ;;  %v4304_v41 = vld [vmem:[#allocation41_spill] sm:$0xff] }
 0x1a1   : > { %2560 = vmatmul.msk.f32.gmra.mxu0 %vm439_vm1, %v4299_v27 }
 0x1a2   : > { %v1033_v60 = vpop.f32.mrf.mxu2 }
 0x1a3   : > { %v1186_v62 = vpop.f32.mrf.mxu3  ;;  %v1079_v47 = vadd.f32 %v1033_v60, %v774_v28  ;;  %v776_v19 = vpop.f32.mrf.mxu1  ;;  %v4305_v28 = vld [vmem:[#allocation50_spill] sm:$0xff] }
 0x1a4   : > { %v777_v36 = vadd.f32 %v776_v19, %v4301_v43  ;;  %v4307_v43 = vld [vmem:[#allocation43_spill] sm:$0xff] }
 0x1a5   : > { %v1232_v45 = vadd.f32 %v1186_v62, %v1079_v47 }
 0x1a6   : > { %2462 = vmatmul.msk.f32.gmra.mxu1 %vm439_vm1, %v4296_v61  ;;  %v1346_v42 = vpop.f32.mrf.mxu0 }
 0x1a7   : > { %v3728_v35 = vadd.f32 %v1343_v30, %v1232_v45  ;;  %2495 = vmatmul.msk.f32.gmra.mxu2 %vm439_vm1, %v2623_v59  ;;  %v2624_v30 = vld [vmem:[%s2734_s10 + $0xb0] sm:$0xff]  ;;  %v2625_v59 = vld [vmem:[%s2734_s10 + $0xc0] sm:$0xff] }
 0x1a8   : > { %2528 = vmatmul.msk.f32.gmra.mxu3 %vm439_vm1, %v4300_v29  ;;  %v4306_v29 = vld [vmem:[#allocation4_spill] sm:$0xff] }
 0x1a9   : > { %2561 = vmatmul.msk.f32.gmra.mxu0 %vm439_vm1, %v4302_v55 }
 0x1aa   : > { %v1036_v1 = vpop.f32.mrf.mxu2 }
 0x1ab   : > { %v1189_v12 = vpop.f32.mrf.mxu3  ;;  %v1080_v63 = vadd.f32 %v1036_v1, %v777_v36  ;;  %v779_v40 = vpop.f32.mrf.mxu1  ;;  %v4308_v1 = vld [vmem:[#allocation53_spill] sm:$0xff] }
 0x1ac   : > { %v780_v16 = vadd.f32 %v779_v40, %v4304_v41  ;;  %v4309_v41 = vld [vmem:[#allocation8_spill] sm:$0xff] }
 0x1ad   : > { %v1233_v61 = vadd.f32 %v1189_v12, %v1080_v63 }
 0x1ae   : > { %2463 = vmatmul.msk.f32.gmra.mxu1 %vm439_vm1, %v4299_v27  ;;  %v1349_v6 = vpop.f32.mrf.mxu0 }
 0x1af   : > { %v3739_v53 = vadd.f32 %v1346_v42, %v1233_v61  ;;  %2496 = vmatmul.msk.f32.gmra.mxu2 %vm439_vm1, %v2624_v30 }
 0x1b0   : > { %2529 = vmatmul.msk.f32.gmra.mxu3 %vm439_vm1, %v4303_v32  ;;  %v2626_v32 = vld [vmem:[%s2734_s10 + $0xc8] sm:$0xff] }
 0x1b1   : > { %2562 = vmatmul.msk.f32.gmra.mxu0 %vm439_vm1, %v4305_v28 }
 0x1b2   : > { %v1039_v60 = vpop.f32.mrf.mxu2 }
 0x1b3   : > { %v1192_v62 = vpop.f32.mrf.mxu3  ;;  %v1081_v47 = vadd.f32 %v1039_v60, %v780_v16  ;;  %v782_v19 = vpop.f32.mrf.mxu1  ;;  %v4310_v16 = vld [vmem:[#allocation46_spill] sm:$0xff] }
 0x1b4   : > { %v783_v36 = vadd.f32 %v782_v19, %v4307_v43  ;;  %v4311_v43 = vld [vmem:[#allocation49_spill] sm:$0xff] }
 0x1b5   : > { %v1234_v27 = vadd.f32 %v1192_v62, %v1081_v47 }
 0x1b6   : > { %2464 = vmatmul.msk.f32.gmra.mxu1 %vm439_vm1, %v4302_v55  ;;  %v1352_v45 = vpop.f32.mrf.mxu0 }
 0x1b7   : > { %v3750_v42 = vadd.f32 %v1349_v6, %v1234_v27  ;;  %2497 = vmatmul.msk.f32.gmra.mxu2 %vm439_vm1, %v2625_v59 }
 0x1b8   : > { %2530 = vmatmul.msk.f32.gmra.mxu3 %vm439_vm1, %v4306_v29  ;;  %v2627_v29 = vld [vmem:[%s2734_s10 + $0xd8] sm:$0xff] }
 0x1b9   : > { %2563 = vmatmul.msk.f32.gmra.mxu0 %vm439_vm1, %v4308_v1 }
 0x1ba   : > { %v1042_v12 = vpop.f32.mrf.mxu2 }
 0x1bb   : > { %v1195_v63 = vpop.f32.mrf.mxu3  ;;  %v1082_v40 = vadd.f32 %v1042_v12, %v783_v36  ;;  %v785_v61 = vpop.f32.mrf.mxu1 }
 0x1bc   : > { %v786_v60 = vadd.f32 %v785_v61, %v4310_v16 }
 0x1bd   : > { %v1235_v55 = vadd.f32 %v1195_v63, %v1082_v40 }
 0x1be   : > { %2465 = vmatmul.msk.f32.gmra.mxu1 %vm439_vm1, %v4305_v28  ;;  %v1355_v6 = vpop.f32.mrf.mxu0 }
 0x1bf   : > { %v3761_v30 = vadd.f32 %v1352_v45, %v1235_v55  ;;  %2498 = vmatmul.msk.f32.gmra.mxu2 %vm439_vm1, %v2626_v32  ;;  %v2628_v32 = vld [vmem:[%s2734_s10 + $0xe0] sm:$0xff] }
 0x1c0   : > { %2531 = vmatmul.msk.f32.gmra.mxu3 %vm439_vm1, %v4309_v41 }
 0x1c1   : > { %2564 = vmatmul.msk.f32.gmra.mxu0 %vm439_vm1, %v3368_v7 }
 0x1c2   : > { %v1045_v62 = vpop.f32.mrf.mxu2 }
 0x1c3   : > { %v1198_v47 = vpop.f32.mrf.mxu3  ;;  %v1083_v19 = vadd.f32 %v1045_v62, %v786_v60  ;;  %v788_v27 = vpop.f32.mrf.mxu1 }
 0x1c4   : > { %v789_v36 = vadd.f32 %v788_v27, %v4311_v43 }
 0x1c5   : > { %v1236_v28 = vadd.f32 %v1198_v47, %v1083_v19 }
 0x1c6   : > { %2466 = vmatmul.msk.f32.gmra.mxu1 %vm439_vm1, %v4308_v1  ;;  %v1358_v45 = vpop.f32.mrf.mxu0 }
 0x1c7   : > { %v3772_v59 = vadd.f32 %v1355_v6, %v1236_v28  ;;  %2499 = vmatmul.msk.f32.gmra.mxu2 %vm439_vm1, %v2627_v29  ;;  %v2629_v28 = vld [vmem:[%s2734_s10 + $0xf0] sm:$0xff] }
 0x1c8   : > { %2532 = vmatmul.msk.f32.gmra.mxu3 %vm439_vm1, %v2854_v54  ;;  %v4312_v54 = vld [vmem:[#allocation52_spill] sm:$0xff] }
 0x1c9   : > { %2565 = vmatmul.msk.f32.gmra.mxu0 %vm439_vm1, %v3384_v52 }
 0x1ca   : > { %v1048_v12 = vpop.f32.mrf.mxu2 }
 0x1cb   : > { %v1201_v63 = vpop.f32.mrf.mxu3  ;;  %v1084_v40 = vadd.f32 %v1048_v12, %v789_v36  ;;  %v791_v61 = vpop.f32.mrf.mxu1  ;;  %v3806_v12 = vld [vmem:[%s4116_s2] ss:$0 sm:$0xff] }
 0x1cc   : > { %v792_v41 = vadd.f32 %v791_v61, %v4312_v54 }
 0x1cd   : > { %v1237_v1 = vadd.f32 %v1201_v63, %v1084_v40  ;;  %v2630_v40 = vld [vmem:[%s2734_s10 + $0xf8] sm:$0xff] }
 0x1ce   : > { %2467 = vmatmul.msk.f32.gmra.mxu1 %vm439_vm1, %v3368_v7  ;;  %v1361_v55 = vpop.f32.mrf.mxu0 }
 0x1cf   : > { %v3783_v6 = vadd.f32 %v1358_v45, %v1237_v1  ;;  %2500 = vmatmul.msk.f32.gmra.mxu2 %vm439_vm1, %v2628_v32 }
 0x1d0   : > { %2533 = vmatmul.msk.f32.gmra.mxu3 %vm439_vm1, %v2890_v2 }
 0x1d1   : > { %2566 = vmatmul.msk.f32.gmra.mxu0 %vm439_vm1, %v3399_v23 }
 0x1d2   : > { %v1051_v16 = vpop.f32.mrf.mxu2 }
 0x1d3   : > { %v1204_v60 = vpop.f32.mrf.mxu3  ;;  %v1085_v62 = vadd.f32 %v1051_v16, %v792_v41  ;;  %v1424_v47 = vpop.f32.mrf.mxu1 }
 0x1d4   : > { %v1520_v2 = vadd.f32 %v1424_v47, %v3372_v18  ;;  %v3813_v18 = vld [vmem:[%s4117_s3] ss:$0 sm:$0xff] }
 0x1d5   : > { %v1238_v7 = vadd.f32 %v1204_v60, %v1085_v62 }
 0x1d6   : > { %2468 = vmatmul.msk.f32.gmra.mxu1 %vm439_vm1, %v3384_v52  ;;  %v1890_v19 = vpop.f32.mrf.mxu0 }
 0x1d7   : > { %v3794_v27 = vadd.f32 %v1361_v55, %v1238_v7  ;;  %2501 = vmatmul.msk.f32.gmra.mxu2 %vm439_vm1, %v2629_v28  ;;  %v2631_v7 = vld [vmem:[%s2734_s10 + $0x108] sm:$0xff] }
 0x1d8   : > { %2534 = vmatmul.msk.f32.gmra.mxu3 %vm439_vm1, %v2942_v48 }
 0x1d9   : > { %2567 = vmatmul.msk.f32.gmra.mxu0 %vm439_vm1, %v3415_v26 }
 0x1da   : > { %v1577_v45 = vpop.f32.mrf.mxu2 }
 0x1db   : > { %v1734_v29 = vpop.f32.mrf.mxu3  ;;  %v1673_v43 = vadd.f32 %v1577_v45, %v1520_v2  ;;  %v1427_v36 = vpop.f32.mrf.mxu1 }
 0x1dc   : > { %v1521_v61 = vadd.f32 %v1427_v36, %v3388_v0 }
 0x1dd   : > { %v1830_v52 = vadd.f32 %v1734_v29, %v1673_v43 }
 0x1de   : > { %2469 = vmatmul.msk.f32.gmra.mxu1 %vm439_vm1, %v3399_v23  ;;  %v1893_v48 = vpop.f32.mrf.mxu0  ;;  %v3824_v23 = vld [vmem:[%s4118_s4] ss:$0 sm:$0xff] }
 0x1df   : > { %v1986_v63 = vadd.f32 %v1890_v19, %v1830_v52  ;;  %2502 = vmatmul.msk.f32.gmra.mxu2 %vm439_vm1, %v2630_v40  ;;  %v4313_v40 = vld [vmem:[#allocation54_spill] sm:$0xff] }
 0x1e0   : > { %2535 = vmatmul.msk.f32.gmra.mxu3 %vm439_vm1, %v2987_v58 }
 0x1e1   : > { %v2022_v1 = vadd.f32 %v3806_v12, %v1986_v63  ;;  %2568 = vmatmul.msk.f32.gmra.mxu0 %vm439_vm1, %v3430_v10  ;;  %v2632_v63 = vld [vmem:[%s2734_s10 + $0x110] sm:$0xff] }
 0x1e2   : > { %v1580_v55 = vpop.f32.mrf.mxu2 }
 0x1e3   : > { %v1737_v32 = vpop.f32.mrf.mxu3  ;;  %v2058_v54 = vmul.f32 %v3813_v18, %v2022_v1  ;;  %v1674_v41 = vadd.f32 %v1580_v55, %v1521_v61  ;;  %v1430_v58 = vpop.f32.mrf.mxu1 }
 0x1e4   : > { %v1522_v19 = vadd.f32 %v1430_v58, %v3403_v50 }
 0x1e5   : > { %v2094_v0 = vadd.f32 %v3824_v23, %v2058_v54  ;;  %v1831_v16 = vadd.f32 %v1737_v32, %v1674_v41 }
 0x1e6   : > { %2470 = vmatmul.msk.f32.gmra.mxu1 %vm439_vm1, %v3415_v26  ;;  %v1896_v60 = vpop.f32.mrf.mxu0 }
 0x1e7   : > { %v2126_v62 = vmax.f32 %v2094_v0, 0.0  ;;  %v1987_v47 = vadd.f32 %v1893_v48, %v1831_v16  ;;  %2503 = vmatmul.msk.f32.gmra.mxu2 %vm439_vm1, %v2631_v7 }
 0x1e8   : > { %2536 = vmatmul.msk.f32.gmra.mxu3 %vm439_vm1, %v4249_v17 }
 0x1e9   : > { %2158 = vst [vmem:[%s3834_s7] sm:$0xff] %v2126_v62  ;;  %v2023_v28 = vadd.f32 %v3806_v12, %v1987_v47  ;;  %2569 = vmatmul.msk.f32.gmra.mxu0 %vm439_vm1, %v3446_v57  ;;  %v2633_v62 = vld [vmem:[%s2734_s10 + $0x120] sm:$0xff]  ;;  %v4314_v47 = vld [vmem:[#allocation21_spill] sm:$0xff] }
 0x1ea   : > { %v1583_v26 = vpop.f32.mrf.mxu2 }
 0x1eb   : > { %v1740_v2 = vpop.f32.mrf.mxu3  ;;  %v2059_v45 = vmul.f32 %v3813_v18, %v2023_v28  ;;  %v1675_v29 = vadd.f32 %v1583_v26, %v1522_v19  ;;  %v1433_v43 = vpop.f32.mrf.mxu1  ;;  %v4315_v28 = vld [vmem:[#allocation2_spill] sm:$0xff] }
 0x1ec   : > { %v1523_v61 = vadd.f32 %v1433_v43, %v4313_v40 }
 0x1ed   : > { %v2095_v36 = vadd.f32 %v3824_v23, %v2059_v45  ;;  %v1832_v52 = vadd.f32 %v1740_v2, %v1675_v29 }
 0x1ee   : > { %2471 = vmatmul.msk.f32.gmra.mxu1 %vm439_vm1, %v3430_v10  ;;  %v1899_v17 = vpop.f32.mrf.mxu0 }
 0x1ef   : > { %v2127_v50 = vmax.f32 %v2095_v36, 0.0  ;;  %v1988_v48 = vadd.f32 %v1896_v60, %v1832_v52  ;;  %2504 = vmatmul.msk.f32.gmra.mxu2 %vm439_vm1, %v2632_v63  ;;  %v4317_v63 = vld [vmem:[#allocation29_spill] sm:$0xff] }
 0x1f0   : > { %2537 = vmatmul.msk.f32.gmra.mxu3 %vm439_vm1, %v3078_v13 }
 0x1f1   : > { %2159 = vst [vmem:[%s3834_s7 + $0x8] sm:$0xff] %v2127_v50  ;;  %v2024_v1 = vadd.f32 %v3806_v12, %v1988_v48  ;;  %2570 = vmatmul.msk.f32.gmra.mxu0 %vm439_vm1, %v3461_v51  ;;  %v2634_v50 = vld [vmem:[%s2734_s10 + $0x128] sm:$0xff]  ;;  %v4316_v48 = vld [vmem:[#allocation9_spill] sm:$0xff] }
 0x1f2   : > { %v1586_v10 = vpop.f32.mrf.mxu2 }
 0x1f3   : > { %v1743_v55 = vpop.f32.mrf.mxu3  ;;  %v2060_v32 = vmul.f32 %v3813_v18, %v2024_v1  ;;  %v1676_v54 = vadd.f32 %v1586_v10, %v1523_v61  ;;  %v1436_v41 = vpop.f32.mrf.mxu1 }
 0x1f4   : > { %v1524_v7 = vadd.f32 %v1436_v41, %v4314_v47 }
 0x1f5   : > { %v2096_v58 = vadd.f32 %v3824_v23, %v2060_v32  ;;  %v1833_v0 = vadd.f32 %v1743_v55, %v1676_v54 }
 0x1f6   : > { %2472 = vmatmul.msk.f32.gmra.mxu1 %vm439_vm1, %v3446_v57  ;;  %v1902_v13 = vpop.f32.mrf.mxu0 }
 0x1f7   : > { %v2128_v16 = vmax.f32 %v2096_v58, 0.0  ;;  %v1989_v60 = vadd.f32 %v1899_v17, %v1833_v0  ;;  %2505 = vmatmul.msk.f32.gmra.mxu2 %vm439_vm1, %v2633_v62 }
 0x1f8   : > { %2538 = vmatmul.msk.f32.gmra.mxu3 %vm439_vm1, %v4255_v34 }
 0x1f9   : > { %2160 = vst [vmem:[%s3834_s7 + $0x10] sm:$0xff] %v2128_v16  ;;  %v2025_v19 = vadd.f32 %v3806_v12, %v1989_v60  ;;  %2571 = vmatmul.msk.f32.gmra.mxu0 %vm439_vm1, %v4315_v28  ;;  %v2635_v16 = vld [vmem:[%s2734_s10 + $0x138] sm:$0xff] }
 0x1fa   : > { %v1589_v57 = vpop.f32.mrf.mxu2  ;;  %v4318_v60 = vld [vmem:[#allocation25_spill] sm:$0xff] }
 0x1fb   : > { %v1746_v26 = vpop.f32.mrf.mxu3  ;;  %v2061_v2 = vmul.f32 %v3813_v18, %v2025_v19  ;;  %v1677_v45 = vadd.f32 %v1589_v57, %v1524_v7  ;;  %v1439_v29 = vpop.f32.mrf.mxu1  ;;  %v4319_v7 = vld [vmem:[#allocation3_spill] sm:$0xff] }
 0x1fc   : > { %v1525_v40 = vadd.f32 %v1439_v29, %v4317_v63 }
 0x1fd   : > { %v2097_v43 = vadd.f32 %v3824_v23, %v2061_v2  ;;  %v1834_v36 = vadd.f32 %v1746_v26, %v1677_v45 }
 0x1fe   : > { %2473 = vmatmul.msk.f32.gmra.mxu1 %vm439_vm1, %v3461_v51  ;;  %v1905_v34 = vpop.f32.mrf.mxu0 }
 0x1ff   : > { %v2129_v52 = vmax.f32 %v2097_v43, 0.0  ;;  %v1990_v17 = vadd.f32 %v1902_v13, %v1834_v36  ;;  %2506 = vmatmul.msk.f32.gmra.mxu2 %vm439_vm1, %v2634_v50 }
 0x200   : > { %2539 = vmatmul.msk.f32.gmra.mxu3 %vm439_vm1, %v4316_v48 }
 0x201   : > { %2161 = vst [vmem:[%s3834_s7 + $0x18] sm:$0xff] %v2129_v52  ;;  %v2026_v61 = vadd.f32 %v3806_v12, %v1990_v17  ;;  %2572 = vmatmul.msk.f32.gmra.mxu0 %vm439_vm1, %v3492_v39  ;;  %v4320_v52 = vld [vmem:[#allocation16_spill] sm:$0xff]  ;;  %v4321_v17 = vld [vmem:[#allocation31_spill] sm:$0xff] }
 0x202   : > { %v1592_v51 = vpop.f32.mrf.mxu2 }
 0x203   : > { %v1749_v1 = vpop.f32.mrf.mxu3  ;;  %v2062_v10 = vmul.f32 %v3813_v18, %v2026_v61  ;;  %v1678_v55 = vadd.f32 %v1592_v51, %v1525_v40  ;;  %v1442_v32 = vpop.f32.mrf.mxu1 }
 0x204   : > { %v1526_v62 = vadd.f32 %v1442_v32, %v4318_v60 }
 0x205   : > { %v2098_v54 = vadd.f32 %v3824_v23, %v2062_v10  ;;  %v1835_v41 = vadd.f32 %v1749_v1, %v1678_v55 }
 0x206   : > { %2474 = vmatmul.msk.f32.gmra.mxu1 %vm439_vm1, %v4315_v28  ;;  %v1908_v58 = vpop.f32.mrf.mxu0 }
 0x207   : > { %v2130_v0 = vmax.f32 %v2098_v54, 0.0  ;;  %v1991_v13 = vadd.f32 %v1905_v34, %v1835_v41  ;;  %2507 = vmatmul.msk.f32.gmra.mxu2 %vm439_vm1, %v2635_v16  ;;  %v2636_v34 = vld [vmem:[%s2734_s10 + $0x140] sm:$0xff]  ;;  %v2637_v41 = vld [vmem:[%s2734_s10 + $0x150] sm:$0xff]  ;;  %v4323_v16 = vld [vmem:[#allocation13_spill] sm:$0xff] }
 0x208   : > { %2540 = vmatmul.msk.f32.gmra.mxu3 %vm439_vm1, %v4263_v21 }
 0x209   : > { %2162 = vst [vmem:[%s3834_s7 + $0x20] sm:$0xff] %v2130_v0  ;;  %v2027_v47 = vadd.f32 %v3806_v12, %v1991_v13  ;;  %2573 = vmatmul.msk.f32.gmra.mxu0 %vm439_vm1, %v4319_v7 }
 0x20a   : > { %v1595_v19 = vpop.f32.mrf.mxu2 }
 0x20b   : > { %v1752_v28 = vpop.f32.mrf.mxu3  ;;  %v2063_v57 = vmul.f32 %v3813_v18, %v2027_v47  ;;  %v1679_v26 = vadd.f32 %v1595_v19, %v1526_v62  ;;  %v1445_v2 = vpop.f32.mrf.mxu1 }
 0x20c   : > { %v1527_v50 = vadd.f32 %v1445_v2, %v4321_v17 }
 0x20d   : > { %v2099_v45 = vadd.f32 %v3824_v23, %v2063_v57  ;;  %v1836_v29 = vadd.f32 %v1752_v28, %v1679_v26 }
 0x20e   : > { %2475 = vmatmul.msk.f32.gmra.mxu1 %vm439_vm1, %v3492_v39  ;;  %v1911_v21 = vpop.f32.mrf.mxu0 }
 0x20f   : > { %v2131_v43 = vmax.f32 %v2099_v45, 0.0  ;;  %v1992_v36 = vadd.f32 %v1908_v58, %v1836_v29  ;;  %2508 = vmatmul.msk.f32.gmra.mxu2 %vm439_vm1, %v2636_v34  ;;  %v4322_v58 = vld [vmem:[#allocation5_spill] sm:$0xff]  ;;  %v4324_v29 = vld [vmem:[#allocation24_spill] sm:$0xff] }
 0x210   : > { %2541 = vmatmul.msk.f32.gmra.mxu3 %vm439_vm1, %v4320_v52  ;;  %v2638_v45 = vld [vmem:[%s2734_s10 + $0x158] sm:$0xff] }
 0x211   : > { %2163 = vst [vmem:[%s3834_s7 + $0x28] sm:$0xff] %v2131_v43  ;;  %v2028_v48 = vadd.f32 %v3806_v12, %v1992_v36  ;;  %2574 = vmatmul.msk.f32.gmra.mxu0 %vm439_vm1, %v3523_v20 }
 0x212   : > { %v1598_v39 = vpop.f32.mrf.mxu2 }
 0x213   : > { %v1755_v63 = vpop.f32.mrf.mxu3  ;;  %v2064_v40 = vmul.f32 %v3813_v18, %v2028_v48  ;;  %v1680_v61 = vadd.f32 %v1598_v39, %v1527_v50  ;;  %v1448_v51 = vpop.f32.mrf.mxu1 }
 0x214   : > { %v1528_v0 = vadd.f32 %v1448_v51, %v4322_v58  ;;  %v2639_v51 = vld [vmem:[%s2734_s10 + $0x168] sm:$0xff] }
 0x215   : > { %v2100_v1 = vadd.f32 %v3824_v23, %v2064_v40  ;;  %v1837_v10 = vadd.f32 %v1755_v63, %v1680_v61 }
 0x216   : > { %2476 = vmatmul.msk.f32.gmra.mxu1 %vm439_vm1, %v4319_v7  ;;  %v1914_v55 = vpop.f32.mrf.mxu0 }
 0x217   : > { %v2132_v32 = vmax.f32 %v2100_v1, 0.0  ;;  %v1993_v54 = vadd.f32 %v1911_v21, %v1837_v10  ;;  %2509 = vmatmul.msk.f32.gmra.mxu2 %vm439_vm1, %v2637_v41  ;;  %v4325_v21 = vld [vmem:[#allocation10_spill] sm:$0xff] }
 0x218   : > { %2542 = vmatmul.msk.f32.gmra.mxu3 %vm439_vm1, %v4271_v49  ;;  %v4326_v1 = vld [vmem:[#allocation30_spill] sm:$0xff] }
 0x219   : > { %2164 = vst [vmem:[%s3834_s7 + $0x30] sm:$0xff] %v2132_v32  ;;  %v2029_v13 = vadd.f32 %v3806_v12, %v1993_v54  ;;  %2575 = vmatmul.msk.f32.gmra.mxu0 %vm439_vm1, %v4323_v16  ;;  %v4327_v10 = vld [vmem:[#allocation6_spill] sm:$0xff] }
 0x21a   : > { %v1601_v60 = vpop.f32.mrf.mxu2 }
 0x21b   : > { %v1758_v62 = vpop.f32.mrf.mxu3  ;;  %v2065_v47 = vmul.f32 %v3813_v18, %v2029_v13  ;;  %v1681_v7 = vadd.f32 %v1601_v60, %v1528_v0  ;;  %v1451_v19 = vpop.f32.mrf.mxu1 }
 0x21c   : > { %v1529_v43 = vadd.f32 %v1451_v19, %v4325_v21  ;;  %v2640_v19 = vld [vmem:[%s2734_s10 + $0x170] sm:$0xff] }
 0x21d   : > { %v2101_v28 = vadd.f32 %v3824_v23, %v2065_v47  ;;  %v1838_v57 = vadd.f32 %v1758_v62, %v1681_v7 }
 0x21e   : > { %2477 = vmatmul.msk.f32.gmra.mxu1 %vm439_vm1, %v3523_v20  ;;  %v1917_v49 = vpop.f32.mrf.mxu0 }
 0x21f   : > { %v2133_v26 = vmax.f32 %v2101_v28, 0.0  ;;  %v1994_v2 = vadd.f32 %v1914_v55, %v1838_v57  ;;  %2510 = vmatmul.msk.f32.gmra.mxu2 %vm439_vm1, %v2638_v45  ;;  %v4328_v28 = vld [vmem:[#allocation33_spill] sm:$0xff]  ;;  %v4329_v57 = vld [vmem:[#allocation11_spill] sm:$0xff] }
 0x220   : > { %2543 = vmatmul.msk.f32.gmra.mxu3 %vm439_vm1, %v4324_v29 }
 0x221   : > { %2165 = vst [vmem:[%s3834_s7 + $0x38] sm:$0xff] %v2133_v26  ;;  %v2030_v36 = vadd.f32 %v3806_v12, %v1994_v2  ;;  %2576 = vmatmul.msk.f32.gmra.mxu0 %vm439_vm1, %v3554_v3  ;;  %v4330_v2 = vld [vmem:[#allocation14_spill] sm:$0xff] }
 0x222   : > { %v1604_v20 = vpop.f32.mrf.mxu2  ;;  %v1396_v45 = vrot.slane %v4330_v2, 2 }
 0x223   : > { %v1761_v34 = vpop.f32.mrf.mxu3  ;;  %v2066_v52 = vmul.f32 %v3813_v18, %v2030_v36  ;;  %v1682_v17 = vadd.f32 %v1604_v20, %v1529_v43  ;;  %v1454_v50 = vpop.f32.mrf.mxu1 }
 0x224   : > { %v1530_v55 = vadd.f32 %v1454_v50, %v4327_v10 }
 0x225   : > { %v2102_v48 = vadd.f32 %v3824_v23, %v2066_v52  ;;  %v1839_v39 = vadd.f32 %v1761_v34, %v1682_v17 }
 0x226   : > { %2478 = vmatmul.msk.f32.gmra.mxu1 %vm439_vm1, %v4323_v16  ;;  %v1920_v63 = vpop.f32.mrf.mxu0 }
 0x227   : > { %v2134_v40 = vmax.f32 %v2102_v48, 0.0  ;;  %v1995_v61 = vadd.f32 %v1917_v49, %v1839_v39  ;;  %2511 = vmatmul.msk.f32.gmra.mxu2 %vm439_vm1, %v2639_v51 }
 0x228   : > { %2544 = vmatmul.msk.f32.gmra.mxu3 %vm439_vm1, %v4326_v1  ;;  %v1399_v1 = vrot.slane %v3592_v22, 2 }
 0x229   : > { %2166 = vst [vmem:[%s3834_s7 + $0x40] sm:$0xff] %v2134_v40  ;;  %v2031_v32 = vadd.f32 %v3806_v12, %v1995_v61  ;;  %2577 = vmatmul.msk.f32.gmra.mxu0 %vm439_vm1, %v3578_v4 }
 0x22a   : > { %v1607_v54 = vpop.f32.mrf.mxu2 }
 0x22b   : > { %v1764_v41 = vpop.f32.mrf.mxu3  ;;  %v2067_v58 = vmul.f32 %v3813_v18, %v2031_v32  ;;  %v1683_v0 = vadd.f32 %v1607_v54, %v1530_v55  ;;  %v1457_v13 = vpop.f32.mrf.mxu1 }
 0x22c   : > { %v1531_v49 = vadd.f32 %v1457_v13, %v4329_v57 }
 0x22d   : > { %v2103_v16 = vadd.f32 %v3824_v23, %v2067_v58  ;;  %v1840_v60 = vadd.f32 %v1764_v41, %v1683_v0  ;;  %v305_v58 = vld [vmem:[%s2734_s10 + $0x1a0] sm:$0xff] }
 0x22e   : > { %2479 = vmatmul.msk.f32.gmra.mxu1 %vm439_vm1, %v3554_v3  ;;  %v1923_v62 = vpop.f32.mrf.mxu0  ;;  %v1397_v3 = vrot.slane %v3565_v38, 2 }
 0x22f   : > { %v2135_v47 = vmax.f32 %v2103_v16, 0.0  ;;  %v1996_v7 = vadd.f32 %v1920_v63, %v1840_v60  ;;  %2512 = vmatmul.msk.f32.gmra.mxu2 %vm439_vm1, %v2640_v19  ;;  %v4331_v63 = vld [vmem:[#allocation17_spill] sm:$0xff] }
 0x230   : > { %2545 = vmatmul.msk.f32.gmra.mxu3 %vm439_vm1, %v4328_v28  ;;  %v1398_v50 = vsel %vm794_vm2, %v1396_v45, %v1397_v3  ;;  %v1400_v13 = vsel %vm794_vm2, %v1397_v3, %v1399_v1 }
 0x231   : > { %2167 = vst [vmem:[%s3834_s7 + $0x48] sm:$0xff] %v2135_v47  ;;  %v2032_v26 = vadd.f32 %v3806_v12, %v1996_v7  ;;  %2578 = vmatmul.msk.f32.gmra.mxu0 %vm439_vm1, %v3600_v46  ;;  %v4332_v47 = vld [vmem:[#allocation20_spill] sm:$0xff] }
 0x232   : > { %v1610_v29 = vpop.f32.mrf.mxu2 }
 0x233   : > { %v1767_v21 = vpop.f32.mrf.mxu3  ;;  %v2068_v43 = vmul.f32 %v3813_v18, %v2032_v26  ;;  %v1684_v36 = vadd.f32 %v1610_v29, %v1531_v49  ;;  %v1460_v20 = vpop.f32.mrf.mxu1  ;;  %v1863_v49 = vrot.slane %v305_v58, 2  ;;  %v306_v29 = vld [vmem:[%s2734_s10 + $0x1a8] sm:$0x3] }
 0x234   : > { %v1532_v40 = vadd.f32 %v1460_v20, %v4331_v63 }
 0x235   : > { %v2104_v34 = vadd.f32 %v3824_v23, %v2068_v43  ;;  %v1841_v52 = vadd.f32 %v1767_v21, %v1684_v36 }
 0x236   : > { %2480 = vmatmul.msk.f32.gmra.mxu1 %vm439_vm1, %v3578_v4  ;;  %v1926_v17 = vpop.f32.mrf.mxu0 }
 0x237   : > { %v2136_v48 = vmax.f32 %v2104_v34, 0.0  ;;  %v1997_v39 = vadd.f32 %v1923_v62, %v1841_v52  ;;  %2513 = vmatmul.msk.f32.gmra.mxu2 %vm439_vm1, %v4330_v2  ;;  %v1707_v62 = vrot.slane %v305_v58, 1  ;;  %v1709_v34 = vrot.slane %v306_v29, 1 }
 0x238   : > { %2546 = vmatmul.msk.f32.gmra.mxu3 %vm439_vm1, %v3583_v11  ;;  %v304_v11 = vld [vmem:[%s2734_s10 + $0x198] sm:$0xff] }
 0x239   : > { %2168 = vst [vmem:[%s3834_s7 + $0x50] sm:$0xff] %v2136_v48  ;;  %v2033_v61 = vadd.f32 %v3806_v12, %v1997_v39  ;;  %2579 = vmatmul.msk.f32.gmra.mxu0 %vm439_vm1, %v1398_v50  ;;  %v1706_v22 = vrot.slane %v304_v11, 1  ;;  %v1862_v57 = vrot.slane %v304_v11, 2  ;;  %v1865_v39 = vrot.slane %v306_v29, 2 }
 0x23a   : > { %v1613_v4 = vpop.f32.mrf.mxu2 }
 0x23b   : > { %v1770_v51 = vpop.f32.mrf.mxu3  ;;  %v2069_v10 = vmul.f32 %v3813_v18, %v2033_v61  ;;  %v1685_v55 = vadd.f32 %v1613_v4, %v1532_v40  ;;  %v1463_v32 = vpop.f32.mrf.mxu1  ;;  %v1864_v43 = vsel %vm794_vm2, %v1862_v57, %v1863_v49  ;;  %v1710_v4 = vsel %vm356_vm0, %v1707_v62, %v1709_v34 }
 0x23c   : > { %v1533_v7 = vadd.f32 %v1463_v32, %v4332_v47 }
 0x23d   : > { %v2105_v54 = vadd.f32 %v3824_v23, %v2069_v10  ;;  %v1842_v41 = vadd.f32 %v1770_v51, %v1685_v55  ;;  %v1866_v10 = vsel %vm794_vm2, %v1863_v49, %v1865_v39 }
 0x23e   : > { %2481 = vmatmul.msk.f32.gmra.mxu1 %vm439_vm1, %v3600_v46  ;;  %v1929_v0 = vpop.f32.mrf.mxu0 }
 0x23f   : > { %v2137_v16 = vmax.f32 %v2105_v54, 0.0  ;;  %v1998_v60 = vadd.f32 %v1926_v17, %v1842_v41  ;;  %2514 = vmatmul.msk.f32.gmra.mxu2 %vm439_vm1, %v3565_v38 }
 0x240   : > { %2547 = vmatmul.msk.f32.gmra.mxu3 %vm439_vm1, %v3605_v15  ;;  %v1708_v15 = vsel %vm356_vm0, %v1706_v22, %v1707_v62 }
 0x241   : > { %2169 = vst [vmem:[%s3834_s7 + $0x58] sm:$0xff] %v2137_v16  ;;  %v2034_v19 = vadd.f32 %v3806_v12, %v1998_v60  ;;  %2580 = vmatmul.msk.f32.gmra.mxu0 %vm439_vm1, %v1400_v13 }
 0x242   : > { %v1616_v46 = vpop.f32.mrf.mxu2 }
 0x243   : > { %v1773_v28 = vpop.f32.mrf.mxu3  ;;  %v2070_v38 = vmul.f32 %v3813_v18, %v2034_v19  ;;  %v1686_v26 = vadd.f32 %v1616_v46, %v1533_v7  ;;  %v1466_v2 = vpop.f32.mrf.mxu1 }
 0x244   : > { %v1534_v52 = vadd.f32 %v1466_v2, %v3607_v8 }
 0x245   : > { %v2106_v45 = vadd.f32 %v3824_v23, %v2070_v38  ;;  %v1843_v3 = vadd.f32 %v1773_v28, %v1686_v26 }
 0x246   : > { %2482 = vmatmul.msk.f32.gmra.mxu1 %vm439_vm1, %v1398_v50  ;;  %v1932_v21 = vpop.f32.mrf.mxu0 }
 0x247   : > { %v2138_v36 = vmax.f32 %v2106_v45, 0.0  ;;  %v1999_v20 = vadd.f32 %v1929_v0, %v1843_v3  ;;  %2515 = vmatmul.msk.f32.gmra.mxu2 %vm439_vm1, %v304_v11 }
 0x248   : > { %2548 = vmatmul.msk.f32.gmra.mxu3 %vm439_vm1, %v1708_v15 }
 0x249   : > { %2170 = vst [vmem:[%s3834_s7 + $0x60] sm:$0xff] %v2138_v36  ;;  %v2035_v17 = vadd.f32 %v3806_v12, %v1999_v20  ;;  %2581 = vmatmul.msk.f32.gmra.mxu0 %vm439_vm1, %v1864_v43 }
 0x24a   : > { %v1619_v48 = vpop.f32.mrf.mxu2 }
 0x24b   : > { %v1776_v50 = vpop.f32.mrf.mxu3  ;;  %v2071_v63 = vmul.f32 %v3813_v18, %v2035_v17  ;;  %v1687_v40 = vadd.f32 %v1619_v48, %v1534_v52  ;;  %v1469_v61 = vpop.f32.mrf.mxu1 }
 0x24c   : > { %v1535_v54 = vadd.f32 %v1469_v61, %v3618_v31 }
 0x24d   : > { %v2107_v51 = vadd.f32 %v3824_v23, %v2071_v63  ;;  %v1844_v1 = vadd.f32 %v1776_v50, %v1687_v40 }
 0x24e   : > { %2483 = vmatmul.msk.f32.gmra.mxu1 %vm439_vm1, %v1400_v13  ;;  %v1935_v8 = vpop.f32.mrf.mxu0 }
 0x24f   : > { %v2139_v55 = vmax.f32 %v2107_v51, 0.0  ;;  %v2000_v32 = vadd.f32 %v1932_v21, %v1844_v1  ;;  %2516 = vmatmul.msk.f32.gmra.mxu2 %vm439_vm1, %v305_v58 }
 0x250   : > { %2549 = vmatmul.msk.f32.gmra.mxu3 %vm439_vm1, %v1710_v4 }
 0x251   : > { %2171 = vst [vmem:[%s3834_s7 + $0x68] sm:$0xff] %v2139_v55  ;;  %v2036_v41 = vadd.f32 %v3806_v12, %v2000_v32  ;;  %2582 = vmatmul.msk.f32.gmra.mxu0 %vm439_vm1, %v1866_v10 }
 0x252   : > { %v1622_v11 = vpop.f32.mrf.mxu2 }
 0x253   : > { %v1779_v0 = vpop.f32.mrf.mxu3  ;;  %v2072_v13 = vmul.f32 %v3813_v18, %v2036_v41  ;;  %v1688_v16 = vadd.f32 %v1622_v11, %v1535_v54  ;;  %v1472_v60 = vpop.f32.mrf.mxu1 }
 0x254   : > { %v1536_v31 = vadd.f32 %v1472_v60, %v3629_v9 }
 0x255   : > { %v2108_v22 = vadd.f32 %v3824_v23, %v2072_v13  ;;  %v1845_v62 = vadd.f32 %v1779_v0, %v1688_v16 }
 0x256   : > { %v1938_v58 = vpop.f32.mrf.mxu0 }
 0x257   : > { %v2140_v47 = vmax.f32 %v2108_v22, 0.0  ;;  %v2001_v7 = vadd.f32 %v1935_v8, %v1845_v62 }
 0x259   : > { %2172 = vst [vmem:[%s3834_s7 + $0x70] sm:$0xff] %v2140_v47  ;;  %v2037_v19 = vadd.f32 %v3806_v12, %v2001_v7 }
 0x25a   : > { %v1625_v46 = vpop.f32.mrf.mxu2 }
 0x25b   : > { %v1782_v28 = vpop.f32.mrf.mxu3  ;;  %v2073_v57 = vmul.f32 %v3813_v18, %v2037_v19  ;;  %v1689_v49 = vadd.f32 %v1625_v46, %v1536_v31  ;;  %v1475_v38 = vpop.f32.mrf.mxu1 }
 0x25c   : > { %v1537_v29 = vadd.f32 %v1475_v38, %v3640_v37 }
 0x25d   : > { %v2109_v26 = vadd.f32 %v3824_v23, %v2073_v57  ;;  %v1846_v2 = vadd.f32 %v1782_v28, %v1689_v49 }
 0x25e   : > { %v1941_v15 = vpop.f32.mrf.mxu0 }
 0x25f   : > { %v2141_v45 = vmax.f32 %v2109_v26, 0.0  ;;  %v2002_v3 = vadd.f32 %v1938_v58, %v1846_v2 }
 0x261   : > { %2173 = vst [vmem:[%s3834_s7 + $0x78] sm:$0xff] %v2141_v45  ;;  %v2038_v9 = vadd.f32 %v3806_v12, %v2002_v3 }
 0x262   : > { %v1628_v21 = vpop.f32.mrf.mxu2 }
 0x263   : > { %v1785_v43 = vpop.f32.mrf.mxu3  ;;  %v2074_v36 = vmul.f32 %v3813_v18, %v2038_v9  ;;  %v1690_v20 = vadd.f32 %v1628_v21, %v1537_v29  ;;  %v1478_v34 = vpop.f32.mrf.mxu1 }
 0x264   : > { %v1538_v63 = vadd.f32 %v1478_v34, %v3651_v5 }
 0x265   : > { %v2110_v52 = vadd.f32 %v3824_v23, %v2074_v36  ;;  %v1847_v17 = vadd.f32 %v1785_v43, %v1690_v20 }
 0x266   : > { %v1944_v48 = vpop.f32.mrf.mxu0 }
 0x267   : > { %v2142_v50 = vmax.f32 %v2110_v52, 0.0  ;;  %v2003_v39 = vadd.f32 %v1941_v15, %v1847_v17 }
 0x269   : > { %2174 = vst [vmem:[%s3834_s7 + $0x80] sm:$0xff] %v2142_v50  ;;  %v2039_v37 = vadd.f32 %v3806_v12, %v2003_v39 }
 0x26a   : > { %v1631_v40 = vpop.f32.mrf.mxu2 }
 0x26b   : > { %v1788_v61 = vpop.f32.mrf.mxu3  ;;  %v2075_v4 = vmul.f32 %v3813_v18, %v2039_v37  ;;  %v1691_v51 = vadd.f32 %v1631_v40, %v1538_v63  ;;  %v1481_v1 = vpop.f32.mrf.mxu1 }
 0x26c   : > { %v1539_v41 = vadd.f32 %v1481_v1, %v3662_v14 }
 0x26d   : > { %v2111_v8 = vadd.f32 %v3824_v23, %v2075_v4  ;;  %v1848_v10 = vadd.f32 %v1788_v61, %v1691_v51 }
 0x26e   : > { %v1947_v55 = vpop.f32.mrf.mxu0 }
 0x26f   : > { %v2143_v32 = vmax.f32 %v2111_v8, 0.0  ;;  %v2004_v54 = vadd.f32 %v1944_v48, %v1848_v10 }
 0x271   : > { %2175 = vst [vmem:[%s3834_s7 + $0x88] sm:$0xff] %v2143_v32  ;;  %v2040_v5 = vadd.f32 %v3806_v12, %v2004_v54 }
 0x272   : > { %v1634_v11 = vpop.f32.mrf.mxu2 }
 0x273   : > { %v1791_v0 = vpop.f32.mrf.mxu3  ;;  %v2076_v13 = vmul.f32 %v3813_v18, %v2040_v5  ;;  %v1692_v16 = vadd.f32 %v1634_v11, %v1539_v41  ;;  %v1484_v60 = vpop.f32.mrf.mxu1 }
 0x274   : > { %v1540_v31 = vadd.f32 %v1484_v60, %v3673_v33 }
 0x275   : > { %v2112_v22 = vadd.f32 %v3824_v23, %v2076_v13  ;;  %v1849_v62 = vadd.f32 %v1791_v0, %v1692_v16 }
 0x276   : > { %v1950_v58 = vpop.f32.mrf.mxu0 }
 0x277   : > { %v2144_v47 = vmax.f32 %v2112_v22, 0.0  ;;  %v2005_v7 = vadd.f32 %v1947_v55, %v1849_v62 }
 0x279   : > { %2176 = vst [vmem:[%s3834_s7 + $0x90] sm:$0xff] %v2144_v47  ;;  %v2041_v14 = vadd.f32 %v3806_v12, %v2005_v7 }
 0x27a   : > { %v1637_v19 = vpop.f32.mrf.mxu2 }
 0x27b   : > { %v1794_v46 = vpop.f32.mrf.mxu3  ;;  %v2077_v28 = vmul.f32 %v3813_v18, %v2041_v14  ;;  %v1693_v57 = vadd.f32 %v1637_v19, %v1540_v31  ;;  %v1487_v49 = vpop.f32.mrf.mxu1 }
 0x27c   : > { %v1541_v3 = vadd.f32 %v1487_v49, %v3684_v24 }
 0x27d   : > { %v2113_v38 = vadd.f32 %v3824_v23, %v2077_v28  ;;  %v1850_v26 = vadd.f32 %v1794_v46, %v1693_v57 }
 0x27e   : > { %v1953_v2 = vpop.f32.mrf.mxu0 }
 0x27f   : > { %v2145_v15 = vmax.f32 %v2113_v38, 0.0  ;;  %v2006_v45 = vadd.f32 %v1950_v58, %v1850_v26 }
 0x281   : > { %2177 = vst [vmem:[%s3834_s7 + $0x98] sm:$0xff] %v2145_v15  ;;  %v2042_v33 = vadd.f32 %v3806_v12, %v2006_v45 }
 0x282   : > { %v1640_v29 = vpop.f32.mrf.mxu2 }
 0x283   : > { %v1797_v9 = vpop.f32.mrf.mxu3  ;;  %v2078_v21 = vmul.f32 %v3813_v18, %v2042_v33  ;;  %v1694_v43 = vadd.f32 %v1640_v29, %v1541_v3  ;;  %v1490_v36 = vpop.f32.mrf.mxu1 }
 0x284   : > { %v1542_v50 = vadd.f32 %v1490_v36, %v3695_v56 }
 0x285   : > { %v2114_v20 = vadd.f32 %v3824_v23, %v2078_v21  ;;  %v1851_v34 = vadd.f32 %v1797_v9, %v1694_v43 }
 0x286   : > { %v1956_v52 = vpop.f32.mrf.mxu0 }
 0x287   : > { %v2146_v17 = vmax.f32 %v2114_v20, 0.0  ;;  %v2007_v48 = vadd.f32 %v1953_v2, %v1851_v34 }
 0x289   : > { %2178 = vst [vmem:[%s3834_s7 + $0xa0] sm:$0xff] %v2146_v17  ;;  %v2043_v24 = vadd.f32 %v3806_v12, %v2007_v48 }
 0x28a   : > { %v1643_v39 = vpop.f32.mrf.mxu2 }
 0x28b   : > { %v1800_v63 = vpop.f32.mrf.mxu3  ;;  %v2079_v37 = vmul.f32 %v3813_v18, %v2043_v24  ;;  %v1695_v40 = vadd.f32 %v1643_v39, %v1542_v50  ;;  %v1493_v61 = vpop.f32.mrf.mxu1 }
 0x28c   : > { %v1543_v55 = vadd.f32 %v1493_v61, %v3706_v25 }
 0x28d   : > { %v2115_v4 = vadd.f32 %v3824_v23, %v2079_v37  ;;  %v1852_v51 = vadd.f32 %v1800_v63, %v1695_v40 }
 0x28e   : > { %v1959_v1 = vpop.f32.mrf.mxu0 }
 0x28f   : > { %v2147_v8 = vmax.f32 %v2115_v4, 0.0  ;;  %v2008_v10 = vadd.f32 %v1956_v52, %v1852_v51 }
 0x291   : > { %2179 = vst [vmem:[%s3834_s7 + $0xa8] sm:$0xff] %v2147_v8  ;;  %v2044_v56 = vadd.f32 %v3806_v12, %v2008_v10 }
 0x292   : > { %v1646_v32 = vpop.f32.mrf.mxu2 }
 0x293   : > { %v1803_v54 = vpop.f32.mrf.mxu3  ;;  %v2080_v41 = vmul.f32 %v3813_v18, %v2044_v56  ;;  %v1696_v5 = vadd.f32 %v1646_v32, %v1543_v55  ;;  %v1496_v11 = vpop.f32.mrf.mxu1 }
 0x294   : > { %v1544_v62 = vadd.f32 %v1496_v11, %v3717_v44 }
 0x295   : > { %v2116_v0 = vadd.f32 %v3824_v23, %v2080_v41  ;;  %v1853_v13 = vadd.f32 %v1803_v54, %v1696_v5 }
 0x296   : > { %v1962_v16 = vpop.f32.mrf.mxu0 }
 0x297   : > { %v2148_v60 = vmax.f32 %v2116_v0, 0.0  ;;  %v2009_v22 = vadd.f32 %v1959_v1, %v1853_v13 }
 0x299   : > { %2180 = vst [vmem:[%s3834_s7 + $0xb0] sm:$0xff] %v2148_v60  ;;  %v2045_v25 = vadd.f32 %v3806_v12, %v2009_v22 }
 0x29a   : > { %v1649_v58 = vpop.f32.mrf.mxu2 }
 0x29b   : > { %v1806_v47 = vpop.f32.mrf.mxu3  ;;  %v2081_v7 = vmul.f32 %v3813_v18, %v2045_v25  ;;  %v1697_v31 = vadd.f32 %v1649_v58, %v1544_v62  ;;  %v1499_v14 = vpop.f32.mrf.mxu1 }
 0x29c   : > { %v1545_v38 = vadd.f32 %v1499_v14, %v3728_v35 }
 0x29d   : > { %v2117_v19 = vadd.f32 %v3824_v23, %v2081_v7  ;;  %v1854_v46 = vadd.f32 %v1806_v47, %v1697_v31 }
 0x29e   : > { %v1965_v28 = vpop.f32.mrf.mxu0 }
 0x29f   : > { %v2149_v57 = vmax.f32 %v2117_v19, 0.0  ;;  %v2010_v49 = vadd.f32 %v1962_v16, %v1854_v46 }
 0x2a1   : > { %2181 = vst [vmem:[%s3834_s7 + $0xb8] sm:$0xff] %v2149_v57  ;;  %v2046_v44 = vadd.f32 %v3806_v12, %v2010_v49 }
 0x2a2   : > { %v1652_v26 = vpop.f32.mrf.mxu2 }
 0x2a3   : > { %v1809_v2 = vpop.f32.mrf.mxu3  ;;  %v2082_v15 = vmul.f32 %v3813_v18, %v2046_v44  ;;  %v1698_v45 = vadd.f32 %v1652_v26, %v1545_v38  ;;  %v1502_v3 = vpop.f32.mrf.mxu1 }
 0x2a4   : > { %v1546_v36 = vadd.f32 %v1502_v3, %v3739_v53 }
 0x2a5   : > { %v2118_v33 = vadd.f32 %v3824_v23, %v2082_v15  ;;  %v1855_v29 = vadd.f32 %v1809_v2, %v1698_v45 }
 0x2a6   : > { %v1968_v9 = vpop.f32.mrf.mxu0 }
 0x2a7   : > { %v2150_v21 = vmax.f32 %v2118_v33, 0.0  ;;  %v2011_v43 = vadd.f32 %v1965_v28, %v1855_v29 }
 0x2a9   : > { %2182 = vst [vmem:[%s3834_s7 + $0xc0] sm:$0xff] %v2150_v21  ;;  %v2047_v35 = vadd.f32 %v3806_v12, %v2011_v43 }
 0x2aa   : > { %v1655_v20 = vpop.f32.mrf.mxu2 }
 0x2ab   : > { %v1812_v34 = vpop.f32.mrf.mxu3  ;;  %v2083_v52 = vmul.f32 %v3813_v18, %v2047_v35  ;;  %v1699_v17 = vadd.f32 %v1655_v20, %v1546_v36  ;;  %v1505_v48 = vpop.f32.mrf.mxu1 }
 0x2ac   : > { %v1547_v40 = vadd.f32 %v1505_v48, %v3750_v42 }
 0x2ad   : > { %v2119_v50 = vadd.f32 %v3824_v23, %v2083_v52  ;;  %v1856_v24 = vadd.f32 %v1812_v34, %v1699_v17 }
 0x2ae   : > { %v1971_v39 = vpop.f32.mrf.mxu0 }
 0x2af   : > { %v2151_v63 = vmax.f32 %v2119_v50, 0.0  ;;  %v2012_v37 = vadd.f32 %v1968_v9, %v1856_v24 }
 0x2b1   : > { %2183 = vst [vmem:[%s3834_s7 + $0xc8] sm:$0xff] %v2151_v63  ;;  %v2048_v53 = vadd.f32 %v3806_v12, %v2012_v37 }
 0x2b2   : > { %v1658_v61 = vpop.f32.mrf.mxu2 }
 0x2b3   : > { %v1815_v4 = vpop.f32.mrf.mxu3  ;;  %v2084_v51 = vmul.f32 %v3813_v18, %v2048_v53  ;;  %v1700_v1 = vadd.f32 %v1658_v61, %v1547_v40  ;;  %v1508_v8 = vpop.f32.mrf.mxu1 }
 0x2b4   : > { %v1548_v41 = vadd.f32 %v1508_v8, %v3761_v30 }
 0x2b5   : > { %v2120_v10 = vadd.f32 %v3824_v23, %v2084_v51  ;;  %v1857_v55 = vadd.f32 %v1815_v4, %v1700_v1 }
 0x2b6   : > { %v1974_v56 = vpop.f32.mrf.mxu0 }
 0x2b7   : > { %v2152_v32 = vmax.f32 %v2120_v10, 0.0  ;;  %v2013_v54 = vadd.f32 %v1971_v39, %v1857_v55 }
 0x2b9   : > { %2184 = vst [vmem:[%s3834_s7 + $0xd0] sm:$0xff] %v2152_v32  ;;  %v2049_v42 = vadd.f32 %v3806_v12, %v2013_v54 }
 0x2ba   : > { %v1661_v5 = vpop.f32.mrf.mxu2 }
 0x2bb   : > { %v1818_v11 = vpop.f32.mrf.mxu3  ;;  %v2085_v0 = vmul.f32 %v3813_v18, %v2049_v42  ;;  %v1701_v13 = vadd.f32 %v1661_v5, %v1548_v41  ;;  %v1511_v16 = vpop.f32.mrf.mxu1 }
 0x2bc   : > { %v1549_v47 = vadd.f32 %v1511_v16, %v3772_v59 }
 0x2bd   : > { %v2121_v60 = vadd.f32 %v3824_v23, %v2085_v0  ;;  %v1858_v22 = vadd.f32 %v1818_v11, %v1701_v13 }
 0x2be   : > { %v1977_v58 = vpop.f32.mrf.mxu0 }
 0x2bf   : > { %v2153_v62 = vmax.f32 %v2121_v60, 0.0  ;;  %v2014_v25 = vadd.f32 %v1974_v56, %v1858_v22 }
 0x2c1   : > { %2185 = vst [vmem:[%s3834_s7 + $0xd8] sm:$0xff] %v2153_v62  ;;  %v2050_v30 = vadd.f32 %v3806_v12, %v2014_v25 }
 0x2c2   : > { %v1664_v7 = vpop.f32.mrf.mxu2 }
 0x2c3   : > { %v1821_v31 = vpop.f32.mrf.mxu3  ;;  %v2086_v14 = vmul.f32 %v3813_v18, %v2050_v30  ;;  %v1702_v19 = vadd.f32 %v1664_v7, %v1549_v47  ;;  %v1514_v46 = vpop.f32.mrf.mxu1 }
 0x2c4   : > { %v1550_v44 = vadd.f32 %v1514_v46, %v3783_v6 }
 0x2c5   : > { %v2122_v28 = vadd.f32 %v3824_v23, %v2086_v14  ;;  %v1859_v57 = vadd.f32 %v1821_v31, %v1702_v19 }
 0x2c6   : > { %v1980_v59 = vpop.f32.mrf.mxu0 }
 0x2c7   : > { %v2154_v49 = vmax.f32 %v2122_v28, 0.0  ;;  %v2015_v38 = vadd.f32 %v1977_v58, %v1859_v57 }
 0x2c9   : > { %2186 = vst [vmem:[%s3834_s7 + $0xe0] sm:$0xff] %v2154_v49  ;;  %v2051_v26 = vadd.f32 %v3806_v12, %v2015_v38 }
 0x2ca   : > { %v1667_v2 = vpop.f32.mrf.mxu2 }
 0x2cb   : > { %v1824_v15 = vpop.f32.mrf.mxu3  ;;  %v2087_v45 = vmul.f32 %v3813_v18, %v2051_v26  ;;  %v1703_v3 = vadd.f32 %v1667_v2, %v1550_v44  ;;  %v1517_v9 = vpop.f32.mrf.mxu1 }
 0x2cc   : > { %v1551_v36 = vadd.f32 %v1517_v9, %v3794_v27 }
 0x2cd   : > { %v2123_v33 = vadd.f32 %v3824_v23, %v2087_v45  ;;  %v1860_v29 = vadd.f32 %v1824_v15, %v1703_v3 }
 0x2ce   : > { %v1983_v17 = vpop.f32.mrf.mxu0 }
 0x2cf   : > { %v2155_v21 = vmax.f32 %v2123_v33, 0.0  ;;  %v2016_v43 = vadd.f32 %v1980_v59, %v1860_v29 }
 0x2d1   : > { %2187 = vst [vmem:[%s3834_s7 + $0xe8] sm:$0xff] %v2155_v21  ;;  %v2052_v6 = vadd.f32 %v3806_v12, %v2016_v43 }
 0x2d2   : > { %v1670_v35 = vpop.f32.mrf.mxu2 }
 0x2d3   : > { %v1827_v20 = vpop.f32.mrf.mxu3  ;;  %v2088_v34 = vmul.f32 %v3813_v18, %v2052_v6  ;;  %v1704_v52 = vadd.f32 %v1670_v35, %v1551_v36 }
 0x2d5   : > { %v2124_v48 = vadd.f32 %v3824_v23, %v2088_v34  ;;  %v1861_v50 = vadd.f32 %v1827_v20, %v1704_v52 }
 0x2d7   : > { %v2156_v24 = vmax.f32 %v2124_v48, 0.0  ;;  %v2017_v39 = vadd.f32 %v1983_v17, %v1861_v50 }
 0x2d9   : > { %2188 = vst [vmem:[%s3834_s7 + $0xf0] sm:$0xff] %v2156_v24  ;;  %v2053_v63 = vadd.f32 %v3806_v12, %v2017_v39 }
 0x2db   : > { %v2089_v37 = vmul.f32 %v3813_v18, %v2053_v63 }
 0x2dd   : > { %v2125_v27 = vadd.f32 %v3824_v23, %v2089_v37 }
 0x2df   : > { %v2157_v40 = vmax.f32 %v2125_v27, 0.0 }
 0x2e1   : > { %2189 = vst [vmem:[%s3834_s7 + $0xf8] sm:$0xff] %v2157_v40 }
 0x2e2 PF: > { %s15_s20 = sadd.s32 1, %s2663_s20   ;;  %s4333_s18 = smov %s2659_s19 }
 0x2e3   : > { %p12_p5 = scmp.ge.s32.totalorder %s15_s20, 4   ;;  %s4334_s19 = smov %s4336_s21 }
 0x2e5   :  { %14 = sbr.rel (!%p12_p5) target bundleno = 2 (0x2), region = 79 }

</bundles_post_ra>
